<compile_context>
chip_gen: v7x
topology: tpu7x:2x2x1
jax: 0.10.0
libtpu: 0.0.40
codegen_flags: <defaults>
</compile_context>

<pallas_src>
import jax
import jax.numpy as jnp
import numpy as np
from jax.experimental import pallas as pl
from jax.experimental.pallas import tpu as pltpu

# Problem geometry (img_size = 31 is the only size consistent with fc(100->1)).
IMG = 31
K1, S1, C1 = 16, 3, 200          # conv1
OH = (IMG - K1) // S1 + 1        # 6
K2, S2, C2 = 6, 2, 100           # conv2 (6x6 input, 6x6 kernel -> 1x1 output)
NS = OH * OH                     # 36 conv1 spatial positions = conv2 taps
KP = K1 * K1                     # 256 im2col features (already lane dense)
C1P, C2P = 256, 128              # lane-dense padded channel counts
EPS = 1e-5


# ----------------------------------------------------------------------------
# Fused kernel: conv1 matmul + BN(batch stats) + ReLU -> conv2 contraction +
# ReLU -> fc.  Single invocation (no grid); everything resident in VMEM.
#   p_ref : [NS*N, 256] f32   im2col patches, row = spatial*N + n
#   w1_ref: [256, 256]  bf16  conv1 weight (padded out-channels)
#   b1/g1/be1: [1, 256] f32   conv1 bias, BN gamma, BN beta (padded)
#   w2_ref: [36, 256, 128] bf16  conv2 weight per tap (padded in/out channels)
#   b2_ref: [1, 128] f32      conv2 bias (padded)
#   w3_ref: [1, 128] f32      fc weight row (padded)
#   b3_ref: [1, 1]  f32       fc bias
#   o_ref : [N, 1]  f32       energy
#   feat_ref: [NS*N, 256] f32 VMEM scratch for the conv1 feature map
# ----------------------------------------------------------------------------
def fused_forward_kernel(p_ref, w1_ref, b1_ref, g1_ref, be1_ref,
                         w2_ref, b2_ref, w3_ref, b3_ref,
                         o_ref, feat_ref):
    n = o_ref.shape[0]

    # ---- conv1 as one im2col matmul: [NS*n, 256] @ [256, 256] (MXU, bf16) ----
    x = jnp.dot(p_ref[...].astype(jnp.bfloat16), w1_ref[...],
                preferred_element_type=jnp.float32)
    x = x + b1_ref[...]

    # ---- BatchNorm2d: training-mode batch statistics (biased variance).
    # TODO(synk): eval-mode running statistics / momentum update are not
    # modeled (a freshly constructed module is in training mode, matching the
    # PyTorch reference).  Padded channels are exactly 0 and stay 0.
    mean = jnp.mean(x, axis=0, keepdims=True)
    xc = x - mean                                   # reused for var + normalize
    var = jnp.mean(xc * xc, axis=0, keepdims=True)
    scale = g1_ref[...] * jax.lax.rsqrt(var + EPS)  # rsqrt -> EUP
    feat = jnp.maximum(xc * scale + be1_ref[...], 0.0)
    feat_ref[...] = feat                            # stays in VMEM

    # ---- conv2: full 6x6 contraction over (spatial tap, channel) + bias + ReLU
    # rows [s*n, (s+1)*n) of feat_ref are the n samples at spatial tap s.
    def tap(s):
        fs = feat_ref[pl.ds(s * n, n), :].astype(jnp.bfloat16)     # [n, 256]
        return jnp.dot(fs, w2_ref[s], preferred_element_type=jnp.float32)

    y = tap(0)
    for s in range(1, NS):                          # static, fully unrolled
        y = y + tap(s)
    y = jnp.maximum(y + b2_ref[...], 0.0)           # [n, 128]

    # ---- fc: Linear(100 -> 1) as a lane reduction (f32) ----
    o_ref[...] = jnp.sum(y * w3_ref[...], axis=1, keepdims=True) + b3_ref[...]


# ----------------------------------------------------------------------------
# One-time parameter repacking (hoisted out of the forward pass).
# ----------------------------------------------------------------------------
def pack_params(params):
    w1, b1, g1, be1, w2, b2, w3, b3 = params
    # conv1 [200,1,16,16] -> [256, 200] -> pad out-channels to 256, bf16.
    w1m = w1.reshape(C1, KP).T.astype(jnp.bfloat16)                 # [256, 200]
    w1p = jnp.zeros((KP, C1P), jnp.bfloat16).at[:, :C1].set(w1m)
    b1p = jnp.zeros((1, C1P), jnp.float32).at[:, :C1].set(b1.reshape(1, C1))
    g1p = jnp.zeros((1, C1P), jnp.float32).at[:, :C1].set(g1.reshape(1, C1))
    be1p = jnp.zeros((1, C1P), jnp.float32).at[:, :C1].set(be1.reshape(1, C1))
    # conv2 [100,200,6,6] -> (kh,kw,c,o) -> [36,200,100] -> pad to [36,256,128].
    w2r = jnp.transpose(w2, (2, 3, 1, 0)).reshape(NS, C1, C2).astype(jnp.bfloat16)
    w2p = jnp.zeros((NS, C1P, C2P), jnp.bfloat16).at[:, :C1, :C2].set(w2r)
    b2p = jnp.zeros((1, C2P), jnp.float32).at[:, :C2].set(b2.reshape(1, C2))
    # fc [1,100] -> padded row [1,128].
    w3p = jnp.zeros((1, C2P), jnp.float32).at[:, :C2].set(w3.reshape(1, C2))
    b3p = b3.reshape(1, 1).astype(jnp.float32)
    return (w1p, b1p, g1p, be1p, w2p, b2p, w3p, b3p)


# ----------------------------------------------------------------------------
# Forward pass: one XLA im2col op + one fused Pallas kernel.
# ----------------------------------------------------------------------------
@jax.jit
def f_forward(x, packed):
    """x: [N, 1, 31, 31] f32 (NCHW, like PyTorch) -> energy [N, 1] f32."""
    w1p, b1p, g1p, be1p, w2p, b2p, w3p, b3p = packed
    n = x.shape[0]
    # im2col in one op; 'HWNC' output puts rows in (spatial, batch) order so
    # the reshape below is a free (contiguous) view.
    patches = jax.lax.conv_general_dilated_patches(
        x, filter_shape=(K1, K1), window_strides=(S1, S1), padding='VALID',
        dimension_numbers=('NCHW', 'OIHW', 'HWNC'),
        precision=jax.lax.Precision.HIGHEST)               # [6, 6, N, 256]
    patches = patches.reshape(NS * n, KP)                  # row = s*N + n
    # TODO(synk): the im2col itself could also be folded into the kernel (the
    # whole 7.7 KB image fits in VMEM) to remove the last non-Pallas op.
    return pl.pallas_call(
        fused_forward_kernel,
        out_shape=jax.ShapeDtypeStruct((n, 1), jnp.float32),
        in_specs=[pl.BlockSpec(memory_space=pltpu.MemorySpace.VMEM)] * 9,
        out_specs=pl.BlockSpec(memory_space=pltpu.MemorySpace.VMEM),
        scratch_shapes=[pltpu.VMEM((NS * n, C1P), jnp.float32)],
    )(patches, w1p, b1p, g1p, be1p, w2p, b2p, w3p, b3p)


# ----------------------------------------------------------------------------
# Pure-JAX f32 reference of the PyTorch forward (for correctness check).
# ----------------------------------------------------------------------------
def f_reference(x, params):
    w1, b1, g1, be1, w2, b2, w3, b3 = params
    hp = jax.lax.Precision.HIGHEST
    y = jax.lax.conv_general_dilated(
        x, w1, (S1, S1), 'VALID',
        dimension_numbers=('NCHW', 'OIHW', 'NCHW'), precision=hp)
    y = y + b1.reshape(1, C1, 1, 1)
    mean = jnp.mean(y, axis=(0, 2, 3), keepdims=True)
    var = jnp.mean((y - mean) ** 2, axis=(0, 2, 3), keepdims=True)
    y = (y - mean) * jax.lax.rsqrt(var + EPS) * g1.reshape(1, C1, 1, 1) \
        + be1.reshape(1, C1, 1, 1)
    y = jnp.maximum(y, 0.0)
    z = jax.lax.conv_general_dilated(
        y, w2, (S2, S2), 'VALID',
        dimension_numbers=('NCHW', 'OIHW', 'NCHW'), precision=hp)
    z = jnp.maximum(z + b2.reshape(1, C2, 1, 1), 0.0)
    z = z.reshape(x.shape[0], -1)                          # [N, 100]
    return z @ w3.T + b3.reshape(1, 1)


def init_params(key):
    """Matches F._init_weights(): conv ~ N(0,0.01), fc ~ N(0,0.001), biases 0,
    BatchNorm gamma=1 / beta=0."""
    k1, k2, k3 = jax.random.split(key, 3)
    w1 = 0.01 * jax.random.normal(k1, (C1, 1, K1, K1), jnp.float32)
    b1 = jnp.zeros((C1,), jnp.float32)
    g1 = jnp.ones((C1,), jnp.float32)
    be1 = jnp.zeros((C1,), jnp.float32)
    w2 = 0.01 * jax.random.normal(k2, (C2, C1, K2, K2), jnp.float32)
    b2 = jnp.zeros((C2,), jnp.float32)
    w3 = 0.001 * jax.random.normal(k3, (1, C2), jnp.float32)
    b3 = jnp.zeros((1,), jnp.float32)
    return (w1, b1, g1, be1, w2, b2, w3, b3)


if __name__ == "__main__":
    key = jax.random.PRNGKey(0)
    kx, kp = jax.random.split(key)
    # img_size = 31 is the only size consistent with fc(in_features=100).
    x = jax.random.normal(kx, (2, 1, IMG, IMG), jnp.float32)   # NCHW like PyTorch
    params = init_params(kp)
    packed = pack_params(params)          # one-time prepack (not per forward)

    energy = f_forward(x, packed)
    jax.block_until_ready(energy)
    assert energy.shape == (2, 1) and energy.dtype == jnp.float32

    ref = f_reference(x, params)
    np.testing.assert_allclose(np.asarray(energy), np.asarray(ref),
                               rtol=0.1, atol=1e-3)
    print("KERNEL_OK")
</pallas_src>

<mosaic_0001>
module attributes {stable_mosaic.version = 11 : i64} {
  func.func @fused_forward_kernel(%arg0: memref<72x256xf32, #tpu.memory_space<vmem>>, %arg1: memref<256x256xbf16, #tpu.memory_space<vmem>>, %arg2: memref<1x256xf32, #tpu.memory_space<vmem>>, %arg3: memref<1x256xf32, #tpu.memory_space<vmem>>, %arg4: memref<1x256xf32, #tpu.memory_space<vmem>>, %arg5: memref<36x256x128xbf16, #tpu.memory_space<vmem>>, %arg6: memref<1x128xf32, #tpu.memory_space<vmem>>, %arg7: memref<1x128xf32, #tpu.memory_space<vmem>>, %arg8: memref<1x1xf32, #tpu.memory_space<vmem>>, %arg9: memref<2x1xf32, #tpu.memory_space<vmem>>, %arg10: memref<72x256xf32, #tpu.memory_space<vmem>>) attributes {dimension_semantics = [], scalar_prefetch = 0 : i64, scratch_operands = 1 : i64, tpu.core_type = #tpu.core_type<tc>} {
    %c0 = arith.constant 0 : index
    %c0_0 = arith.constant 0 : index
    %0 = vector.load %arg0[%c0, %c0_0] : memref<72x256xf32, #tpu.memory_space<vmem>>, vector<72x256xf32>
    %1 = arith.truncf %0 : vector<72x256xf32> to vector<72x256xbf16>
    %c0_1 = arith.constant 0 : index
    %c0_2 = arith.constant 0 : index
    %2 = vector.load %arg1[%c0_1, %c0_2] : memref<256x256xbf16, #tpu.memory_space<vmem>>, vector<256x256xbf16>
    %cst = arith.constant dense<0.000000e+00> : vector<72x256xf32>
    %3 = tpu.matmul %1, %2, %cst {dimension_numbers = #tpu.dot_dimension_numbers<[1], [0], [0], [1], [0, 0, 1, 1], [], []>} : vector<72x256xbf16>, vector<256x256xbf16>, vector<72x256xf32> -> vector<72x256xf32>
    %c0_3 = arith.constant 0 : index
    %c0_4 = arith.constant 0 : index
    %4 = vector.load %arg2[%c0_3, %c0_4] : memref<1x256xf32, #tpu.memory_space<vmem>>, vector<1x256xf32>
    %5 = vector.broadcast %4 : vector<1x256xf32> to vector<72x256xf32>
    %6 = arith.addf %3, %5 : vector<72x256xf32>
    %cst_5 = arith.constant dense<0.000000e+00> : vector<256xf32>
    %7 = vector.multi_reduction <add>, %6, %cst_5 [0] : vector<72x256xf32> to vector<256xf32>
    %8 = vector.shape_cast %7 : vector<256xf32> to vector<1x256xf32>
    %cst_6 = arith.constant 7.200000e+01 : f32
    %9 = vector.broadcast %cst_6 : f32 to vector<1x256xf32>
    %10 = arith.divf %8, %9 : vector<1x256xf32>
    %11 = vector.broadcast %10 : vector<1x256xf32> to vector<72x256xf32>
    %12 = arith.subf %6, %11 : vector<72x256xf32>
    %13 = arith.mulf %12, %12 : vector<72x256xf32>
    %cst_7 = arith.constant dense<0.000000e+00> : vector<256xf32>
    %14 = vector.multi_reduction <add>, %13, %cst_7 [0] : vector<72x256xf32> to vector<256xf32>
    %15 = vector.shape_cast %14 : vector<256xf32> to vector<1x256xf32>
    %cst_8 = arith.constant 7.200000e+01 : f32
    %16 = vector.broadcast %cst_8 : f32 to vector<1x256xf32>
    %17 = arith.divf %15, %16 : vector<1x256xf32>
    %c0_9 = arith.constant 0 : index
    %c0_10 = arith.constant 0 : index
    %18 = vector.load %arg3[%c0_9, %c0_10] : memref<1x256xf32, #tpu.memory_space<vmem>>, vector<1x256xf32>
    %cst_11 = arith.constant 9.99999974E-6 : f32
    %19 = vector.broadcast %cst_11 : f32 to vector<1x256xf32>
    %20 = arith.addf %17, %19 : vector<1x256xf32>
    %21 = math.rsqrt %20 : vector<1x256xf32>
    %22 = arith.mulf %18, %21 : vector<1x256xf32>
    %23 = vector.broadcast %22 : vector<1x256xf32> to vector<72x256xf32>
    %24 = arith.mulf %12, %23 : vector<72x256xf32>
    %c0_12 = arith.constant 0 : index
    %c0_13 = arith.constant 0 : index
    %25 = vector.load %arg4[%c0_12, %c0_13] : memref<1x256xf32, #tpu.memory_space<vmem>>, vector<1x256xf32>
    %26 = vector.broadcast %25 : vector<1x256xf32> to vector<72x256xf32>
    %27 = arith.addf %24, %26 : vector<72x256xf32>
    %cst_14 = arith.constant 0.000000e+00 : f32
    %28 = vector.broadcast %cst_14 : f32 to vector<72x256xf32>
    %29 = arith.maximumf %27, %28 : vector<72x256xf32>
    %c0_15 = arith.constant 0 : index
    %c0_16 = arith.constant 0 : index
    %30 = vector.load %arg10[%c0_15, %c0_16] : memref<72x256xf32, #tpu.memory_space<vmem>>, vector<72x256xf32>
    tpu.vector_store %arg10[%c0_15, %c0_16], %29 {strides = array<i32>} : memref<72x256xf32, #tpu.memory_space<vmem>>, vector<72x256xf32>,
    %c0_17 = arith.constant 0 : index
    %c0_18 = arith.constant 0 : index
    %31 = vector.load %arg10[%c0_17, %c0_18] : memref<72x256xf32, #tpu.memory_space<vmem>>, vector<2x256xf32>
    %32 = arith.truncf %31 : vector<2x256xf32> to vector<2x256xbf16>
    %c0_19 = arith.constant 0 : index
    %c0_20 = arith.constant 0 : index
    %c0_21 = arith.constant 0 : index
    %33 = vector.load %arg5[%c0_19, %c0_20, %c0_21] : memref<36x256x128xbf16, #tpu.memory_space<vmem>>, vector<1x256x128xbf16>
    %34 = vector.shape_cast %33 : vector<1x256x128xbf16> to vector<256x128xbf16>
    %cst_22 = arith.constant dense<0.000000e+00> : vector<2x128xf32>
    %35 = tpu.matmul %32, %34, %cst_22 {dimension_numbers = #tpu.dot_dimension_numbers<[1], [0], [0], [1], [0, 0, 1, 1], [], []>} : vector<2x256xbf16>, vector<256x128xbf16>, vector<2x128xf32> -> vector<2x128xf32>
    %c2 = arith.constant 2 : index
    %c0_23 = arith.constant 0 : index
    %36 = vector.load %arg10[%c2, %c0_23] : memref<72x256xf32, #tpu.memory_space<vmem>>, vector<2x256xf32>
    %37 = arith.truncf %36 : vector<2x256xf32> to vector<2x256xbf16>
    %c1 = arith.constant 1 : index
    %c0_24 = arith.constant 0 : index
    %c0_25 = arith.constant 0 : index
    %38 = vector.load %arg5[%c1, %c0_24, %c0_25] : memref<36x256x128xbf16, #tpu.memory_space<vmem>>, vector<1x256x128xbf16>
    %39 = vector.shape_cast %38 : vector<1x256x128xbf16> to vector<256x128xbf16>
    %cst_26 = arith.constant dense<0.000000e+00> : vector<2x128xf32>
    %40 = tpu.matmul %37, %39, %cst_26 {dimension_numbers = #tpu.dot_dimension_numbers<[1], [0], [0], [1], [0, 0, 1, 1], [], []>} : vector<2x256xbf16>, vector<256x128xbf16>, vector<2x128xf32> -> vector<2x128xf32>
    %41 = arith.addf %35, %40 : vector<2x128xf32>
    %c4 = arith.constant 4 : index
    %c0_27 = arith.constant 0 : index
    %42 = vector.load %arg10[%c4, %c0_27] : memref<72x256xf32, #tpu.memory_space<vmem>>, vector<2x256xf32>
    %43 = arith.truncf %42 : vector<2x256xf32> to vector<2x256xbf16>
    %c2_28 = arith.constant 2 : index
    %c0_29 = arith.constant 0 : index
    %c0_30 = arith.constant 0 : index
    %44 = vector.load %arg5[%c2_28, %c0_29, %c0_30] : memref<36x256x128xbf16, #tpu.memory_space<vmem>>, vector<1x256x128xbf16>
    %45 = vector.shape_cast %44 : vector<1x256x128xbf16> to vector<256x128xbf16>
    %cst_31 = arith.constant dense<0.000000e+00> : vector<2x128xf32>
    %46 = tpu.matmul %43, %45, %cst_31 {dimension_numbers = #tpu.dot_dimension_numbers<[1], [0], [0], [1], [0, 0, 1, 1], [], []>} : vector<2x256xbf16>, vector<256x128xbf16>, vector<2x128xf32> -> vector<2x128xf32>
    %47 = arith.addf %41, %46 : vector<2x128xf32>
    %c6 = arith.constant 6 : index
    %c0_32 = arith.constant 0 : index
    %48 = vector.load %arg10[%c6, %c0_32] : memref<72x256xf32, #tpu.memory_space<vmem>>, vector<2x256xf32>
    %49 = arith.truncf %48 : vector<2x256xf32> to vector<2x256xbf16>
    %c3 = arith.constant 3 : index
    %c0_33 = arith.constant 0 : index
    %c0_34 = arith.constant 0 : index
    %50 = vector.load %arg5[%c3, %c0_33, %c0_34] : memref<36x256x128xbf16, #tpu.memory_space<vmem>>, vector<1x256x128xbf16>
    %51 = vector.shape_cast %50 : vector<1x256x128xbf16> to vector<256x128xbf16>
    %cst_35 = arith.constant dense<0.000000e+00> : vector<2x128xf32>
    %52 = tpu.matmul %49, %51, %cst_35 {dimension_numbers = #tpu.dot_dimension_numbers<[1], [0], [0], [1], [0, 0, 1, 1], [], []>} : vector<2x256xbf16>, vector<256x128xbf16>, vector<2x128xf32> -> vector<2x128xf32>
    %53 = arith.addf %47, %52 : vector<2x128xf32>
    %c8 = arith.constant 8 : index
    %c0_36 = arith.constant 0 : index
    %54 = vector.load %arg10[%c8, %c0_36] : memref<72x256xf32, #tpu.memory_space<vmem>>, vector<2x256xf32>
    %55 = arith.truncf %54 : vector<2x256xf32> to vector<2x256xbf16>
    %c4_37 = arith.constant 4 : index
    %c0_38 = arith.constant 0 : index
    %c0_39 = arith.constant 0 : index
    %56 = vector.load %arg5[%c4_37, %c0_38, %c0_39] : memref<36x256x128xbf16, #tpu.memory_space<vmem>>, vector<1x256x128xbf16>
    %57 = vector.shape_cast %56 : vector<1x256x128xbf16> to vector<256x128xbf16>
    %cst_40 = arith.constant dense<0.000000e+00> : vector<2x128xf32>
    %58 = tpu.matmul %55, %57, %cst_40 {dimension_numbers = #tpu.dot_dimension_numbers<[1], [0], [0], [1], [0, 0, 1, 1], [], []>} : vector<2x256xbf16>, vector<256x128xbf16>, vector<2x128xf32> -> vector<2x128xf32>
    %59 = arith.addf %53, %58 : vector<2x128xf32>
    %c10 = arith.constant 10 : index
    %c0_41 = arith.constant 0 : index
    %60 = vector.load %arg10[%c10, %c0_41] : memref<72x256xf32, #tpu.memory_space<vmem>>, vector<2x256xf32>
    %61 = arith.truncf %60 : vector<2x256xf32> to vector<2x256xbf16>
    %c5 = arith.constant 5 : index
    %c0_42 = arith.constant 0 : index
    %c0_43 = arith.constant 0 : index
    %62 = vector.load %arg5[%c5, %c0_42, %c0_43] : memref<36x256x128xbf16, #tpu.memory_space<vmem>>, vector<1x256x128xbf16>
    %63 = vector.shape_cast %62 : vector<1x256x128xbf16> to vector<256x128xbf16>
    %cst_44 = arith.constant dense<0.000000e+00> : vector<2x128xf32>
    %64 = tpu.matmul %61, %63, %cst_44 {dimension_numbers = #tpu.dot_dimension_numbers<[1], [0], [0], [1], [0, 0, 1, 1], [], []>} : vector<2x256xbf16>, vector<256x128xbf16>, vector<2x128xf32> -> vector<2x128xf32>
    %65 = arith.addf %59, %64 : vector<2x128xf32>
    %c12 = arith.constant 12 : index
    %c0_45 = arith.constant 0 : index
    %66 = vector.load %arg10[%c12, %c0_45] : memref<72x256xf32, #tpu.memory_space<vmem>>, vector<2x256xf32>
    %67 = arith.truncf %66 : vector<2x256xf32> to vector<2x256xbf16>
    %c6_46 = arith.constant 6 : index
    %c0_47 = arith.constant 0 : index
    %c0_48 = arith.constant 0 : index
    %68 = vector.load %arg5[%c6_46, %c0_47, %c0_48] : memref<36x256x128xbf16, #tpu.memory_space<vmem>>, vector<1x256x128xbf16>
    %69 = vector.shape_cast %68 : vector<1x256x128xbf16> to vector<256x128xbf16>
    %cst_49 = arith.constant dense<0.000000e+00> : vector<2x128xf32>
    %70 = tpu.matmul %67, %69, %cst_49 {dimension_numbers = #tpu.dot_dimension_numbers<[1], [0], [0], [1], [0, 0, 1, 1], [], []>} : vector<2x256xbf16>, vector<256x128xbf16>, vector<2x128xf32> -> vector<2x128xf32>
    %71 = arith.addf %65, %70 : vector<2x128xf32>
    %c14 = arith.constant 14 : index
    %c0_50 = arith.constant 0 : index
    %72 = vector.load %arg10[%c14, %c0_50] : memref<72x256xf32, #tpu.memory_space<vmem>>, vector<2x256xf32>
    %73 = arith.truncf %72 : vector<2x256xf32> to vector<2x256xbf16>
    %c7 = arith.constant 7 : index
    %c0_51 = arith.constant 0 : index
    %c0_52 = arith.constant 0 : index
    %74 = vector.load %arg5[%c7, %c0_51, %c0_52] : memref<36x256x128xbf16, #tpu.memory_space<vmem>>, vector<1x256x128xbf16>
    %75 = vector.shape_cast %74 : vector<1x256x128xbf16> to vector<256x128xbf16>
    %cst_53 = arith.constant dense<0.000000e+00> : vector<2x128xf32>
    %76 = tpu.matmul %73, %75, %cst_53 {dimension_numbers = #tpu.dot_dimension_numbers<[1], [0], [0], [1], [0, 0, 1, 1], [], []>} : vector<2x256xbf16>, vector<256x128xbf16>, vector<2x128xf32> -> vector<2x128xf32>
    %77 = arith.addf %71, %76 : vector<2x128xf32>
    %c16 = arith.constant 16 : index
    %c0_54 = arith.constant 0 : index
    %78 = vector.load %arg10[%c16, %c0_54] : memref<72x256xf32, #tpu.memory_space<vmem>>, vector<2x256xf32>
    %79 = arith.truncf %78 : vector<2x256xf32> to vector<2x256xbf16>
    %c8_55 = arith.constant 8 : index
    %c0_56 = arith.constant 0 : index
    %c0_57 = arith.constant 0 : index
    %80 = vector.load %arg5[%c8_55, %c0_56, %c0_57] : memref<36x256x128xbf16, #tpu.memory_space<vmem>>, vector<1x256x128xbf16>
    %81 = vector.shape_cast %80 : vector<1x256x128xbf16> to vector<256x128xbf16>
    %cst_58 = arith.constant dense<0.000000e+00> : vector<2x128xf32>
    %82 = tpu.matmul %79, %81, %cst_58 {dimension_numbers = #tpu.dot_dimension_numbers<[1], [0], [0], [1], [0, 0, 1, 1], [], []>} : vector<2x256xbf16>, vector<256x128xbf16>, vector<2x128xf32> -> vector<2x128xf32>
    %83 = arith.addf %77, %82 : vector<2x128xf32>
    %c18 = arith.constant 18 : index
    %c0_59 = arith.constant 0 : index
    %84 = vector.load %arg10[%c18, %c0_59] : memref<72x256xf32, #tpu.memory_space<vmem>>, vector<2x256xf32>
    %85 = arith.truncf %84 : vector<2x256xf32> to vector<2x256xbf16>
    %c9 = arith.constant 9 : index
    %c0_60 = arith.constant 0 : index
    %c0_61 = arith.constant 0 : index
    %86 = vector.load %arg5[%c9, %c0_60, %c0_61] : memref<36x256x128xbf16, #tpu.memory_space<vmem>>, vector<1x256x128xbf16>
    %87 = vector.shape_cast %86 : vector<1x256x128xbf16> to vector<256x128xbf16>
    %cst_62 = arith.constant dense<0.000000e+00> : vector<2x128xf32>
    %88 = tpu.matmul %85, %87, %cst_62 {dimension_numbers = #tpu.dot_dimension_numbers<[1], [0], [0], [1], [0, 0, 1, 1], [], []>} : vector<2x256xbf16>, vector<256x128xbf16>, vector<2x128xf32> -> vector<2x128xf32>
    %89 = arith.addf %83, %88 : vector<2x128xf32>
    %c20 = arith.constant 20 : index
    %c0_63 = arith.constant 0 : index
    %90 = vector.load %arg10[%c20, %c0_63] : memref<72x256xf32, #tpu.memory_space<vmem>>, vector<2x256xf32>
    %91 = arith.truncf %90 : vector<2x256xf32> to vector<2x256xbf16>
    %c10_64 = arith.constant 10 : index
    %c0_65 = arith.constant 0 : index
    %c0_66 = arith.constant 0 : index
    %92 = vector.load %arg5[%c10_64, %c0_65, %c0_66] : memref<36x256x128xbf16, #tpu.memory_space<vmem>>, vector<1x256x128xbf16>
    %93 = vector.shape_cast %92 : vector<1x256x128xbf16> to vector<256x128xbf16>
    %cst_67 = arith.constant dense<0.000000e+00> : vector<2x128xf32>
    %94 = tpu.matmul %91, %93, %cst_67 {dimension_numbers = #tpu.dot_dimension_numbers<[1], [0], [0], [1], [0, 0, 1, 1], [], []>} : vector<2x256xbf16>, vector<256x128xbf16>, vector<2x128xf32> -> vector<2x128xf32>
    %95 = arith.addf %89, %94 : vector<2x128xf32>
    %c22 = arith.constant 22 : index
    %c0_68 = arith.constant 0 : index
    %96 = vector.load %arg10[%c22, %c0_68] : memref<72x256xf32, #tpu.memory_space<vmem>>, vector<2x256xf32>
    %97 = arith.truncf %96 : vector<2x256xf32> to vector<2x256xbf16>
    %c11 = arith.constant 11 : index
    %c0_69 = arith.constant 0 : index
    %c0_70 = arith.constant 0 : index
    %98 = vector.load %arg5[%c11, %c0_69, %c0_70] : memref<36x256x128xbf16, #tpu.memory_space<vmem>>, vector<1x256x128xbf16>
    %99 = vector.shape_cast %98 : vector<1x256x128xbf16> to vector<256x128xbf16>
    %cst_71 = arith.constant dense<0.000000e+00> : vector<2x128xf32>
    %100 = tpu.matmul %97, %99, %cst_71 {dimension_numbers = #tpu.dot_dimension_numbers<[1], [0], [0], [1], [0, 0, 1, 1], [], []>} : vector<2x256xbf16>, vector<256x128xbf16>, vector<2x128xf32> -> vector<2x128xf32>
    %101 = arith.addf %95, %100 : vector<2x128xf32>
    %c24 = arith.constant 24 : index
    %c0_72 = arith.constant 0 : index
    %102 = vector.load %arg10[%c24, %c0_72] : memref<72x256xf32, #tpu.memory_space<vmem>>, vector<2x256xf32>
    %103 = arith.truncf %102 : vector<2x256xf32> to vector<2x256xbf16>
    %c12_73 = arith.constant 12 : index
    %c0_74 = arith.constant 0 : index
    %c0_75 = arith.constant 0 : index
    %104 = vector.load %arg5[%c12_73, %c0_74, %c0_75] : memref<36x256x128xbf16, #tpu.memory_space<vmem>>, vector<1x256x128xbf16>
    %105 = vector.shape_cast %104 : vector<1x256x128xbf16> to vector<256x128xbf16>
    %cst_76 = arith.constant dense<0.000000e+00> : vector<2x128xf32>
    %106 = tpu.matmul %103, %105, %cst_76 {dimension_numbers = #tpu.dot_dimension_numbers<[1], [0], [0], [1], [0, 0, 1, 1], [], []>} : vector<2x256xbf16>, vector<256x128xbf16>, vector<2x128xf32> -> vector<2x128xf32>
    %107 = arith.addf %101, %106 : vector<2x128xf32>
    %c26 = arith.constant 26 : index
    %c0_77 = arith.constant 0 : index
    %108 = vector.load %arg10[%c26, %c0_77] : memref<72x256xf32, #tpu.memory_space<vmem>>, vector<2x256xf32>
    %109 = arith.truncf %108 : vector<2x256xf32> to vector<2x256xbf16>
    %c13 = arith.constant 13 : index
    %c0_78 = arith.constant 0 : index
    %c0_79 = arith.constant 0 : index
    %110 = vector.load %arg5[%c13, %c0_78, %c0_79] : memref<36x256x128xbf16, #tpu.memory_space<vmem>>, vector<1x256x128xbf16>
    %111 = vector.shape_cast %110 : vector<1x256x128xbf16> to vector<256x128xbf16>
    %cst_80 = arith.constant dense<0.000000e+00> : vector<2x128xf32>
    %112 = tpu.matmul %109, %111, %cst_80 {dimension_numbers = #tpu.dot_dimension_numbers<[1], [0], [0], [1], [0, 0, 1, 1], [], []>} : vector<2x256xbf16>, vector<256x128xbf16>, vector<2x128xf32> -> vector<2x128xf32>
    %113 = arith.addf %107, %112 : vector<2x128xf32>
    %c28 = arith.constant 28 : index
    %c0_81 = arith.constant 0 : index
    %114 = vector.load %arg10[%c28, %c0_81] : memref<72x256xf32, #tpu.memory_space<vmem>>, vector<2x256xf32>
    %115 = arith.truncf %114 : vector<2x256xf32> to vector<2x256xbf16>
    %c14_82 = arith.constant 14 : index
    %c0_83 = arith.constant 0 : index
    %c0_84 = arith.constant 0 : index
    %116 = vector.load %arg5[%c14_82, %c0_83, %c0_84] : memref<36x256x128xbf16, #tpu.memory_space<vmem>>, vector<1x256x128xbf16>
    %117 = vector.shape_cast %116 : vector<1x256x128xbf16> to vector<256x128xbf16>
    %cst_85 = arith.constant dense<0.000000e+00> : vector<2x128xf32>
    %118 = tpu.matmul %115, %117, %cst_85 {dimension_numbers = #tpu.dot_dimension_numbers<[1], [0], [0], [1], [0, 0, 1, 1], [], []>} : vector<2x256xbf16>, vector<256x128xbf16>, vector<2x128xf32> -> vector<2x128xf32>
    %119 = arith.addf %113, %118 : vector<2x128xf32>
    %c30 = arith.constant 30 : index
    %c0_86 = arith.constant 0 : index
    %120 = vector.load %arg10[%c30, %c0_86] : memref<72x256xf32, #tpu.memory_space<vmem>>, vector<2x256xf32>
    %121 = arith.truncf %120 : vector<2x256xf32> to vector<2x256xbf16>
    %c15 = arith.constant 15 : index
    %c0_87 = arith.constant 0 : index
    %c0_88 = arith.constant 0 : index
    %122 = vector.load %arg5[%c15, %c0_87, %c0_88] : memref<36x256x128xbf16, #tpu.memory_space<vmem>>, vector<1x256x128xbf16>
    %123 = vector.shape_cast %122 : vector<1x256x128xbf16> to vector<256x128xbf16>
    %cst_89 = arith.constant dense<0.000000e+00> : vector<2x128xf32>
    %124 = tpu.matmul %121, %123, %cst_89 {dimension_numbers = #tpu.dot_dimension_numbers<[1], [0], [0], [1], [0, 0, 1, 1], [], []>} : vector<2x256xbf16>, vector<256x128xbf16>, vector<2x128xf32> -> vector<2x128xf32>
    %125 = arith.addf %119, %124 : vector<2x128xf32>
    %c32 = arith.constant 32 : index
    %c0_90 = arith.constant 0 : index
    %126 = vector.load %arg10[%c32, %c0_90] : memref<72x256xf32, #tpu.memory_space<vmem>>, vector<2x256xf32>
    %127 = arith.truncf %126 : vector<2x256xf32> to vector<2x256xbf16>
    %c16_91 = arith.constant 16 : index
    %c0_92 = arith.constant 0 : index
    %c0_93 = arith.constant 0 : index
    %128 = vector.load %arg5[%c16_91, %c0_92, %c0_93] : memref<36x256x128xbf16, #tpu.memory_space<vmem>>, vector<1x256x128xbf16>
    %129 = vector.shape_cast %128 : vector<1x256x128xbf16> to vector<256x128xbf16>
    %cst_94 = arith.constant dense<0.000000e+00> : vector<2x128xf32>
    %130 = tpu.matmul %127, %129, %cst_94 {dimension_numbers = #tpu.dot_dimension_numbers<[1], [0], [0], [1], [0, 0, 1, 1], [], []>} : vector<2x256xbf16>, vector<256x128xbf16>, vector<2x128xf32> -> vector<2x128xf32>
    %131 = arith.addf %125, %130 : vector<2x128xf32>
    %c34 = arith.constant 34 : index
    %c0_95 = arith.constant 0 : index
    %132 = vector.load %arg10[%c34, %c0_95] : memref<72x256xf32, #tpu.memory_space<vmem>>, vector<2x256xf32>
    %133 = arith.truncf %132 : vector<2x256xf32> to vector<2x256xbf16>
    %c17 = arith.constant 17 : index
    %c0_96 = arith.constant 0 : index
    %c0_97 = arith.constant 0 : index
    %134 = vector.load %arg5[%c17, %c0_96, %c0_97] : memref<36x256x128xbf16, #tpu.memory_space<vmem>>, vector<1x256x128xbf16>
    %135 = vector.shape_cast %134 : vector<1x256x128xbf16> to vector<256x128xbf16>
    %cst_98 = arith.constant dense<0.000000e+00> : vector<2x128xf32>
    %136 = tpu.matmul %133, %135, %cst_98 {dimension_numbers = #tpu.dot_dimension_numbers<[1], [0], [0], [1], [0, 0, 1, 1], [], []>} : vector<2x256xbf16>, vector<256x128xbf16>, vector<2x128xf32> -> vector<2x128xf32>
    %137 = arith.addf %131, %136 : vector<2x128xf32>
    %c36 = arith.constant 36 : index
    %c0_99 = arith.constant 0 : index
    %138 = vector.load %arg10[%c36, %c0_99] : memref<72x256xf32, #tpu.memory_space<vmem>>, vector<2x256xf32>
    %139 = arith.truncf %138 : vector<2x256xf32> to vector<2x256xbf16>
    %c18_100 = arith.constant 18 : index
    %c0_101 = arith.constant 0 : index
    %c0_102 = arith.constant 0 : index
    %140 = vector.load %arg5[%c18_100, %c0_101, %c0_102] : memref<36x256x128xbf16, #tpu.memory_space<vmem>>, vector<1x256x128xbf16>
    %141 = vector.shape_cast %140 : vector<1x256x128xbf16> to vector<256x128xbf16>
    %cst_103 = arith.constant dense<0.000000e+00> : vector<2x128xf32>
    %142 = tpu.matmul %139, %141, %cst_103 {dimension_numbers = #tpu.dot_dimension_numbers<[1], [0], [0], [1], [0, 0, 1, 1], [], []>} : vector<2x256xbf16>, vector<256x128xbf16>, vector<2x128xf32> -> vector<2x128xf32>
    %143 = arith.addf %137, %142 : vector<2x128xf32>
    %c38 = arith.constant 38 : index
    %c0_104 = arith.constant 0 : index
    %144 = vector.load %arg10[%c38, %c0_104] : memref<72x256xf32, #tpu.memory_space<vmem>>, vector<2x256xf32>
    %145 = arith.truncf %144 : vector<2x256xf32> to vector<2x256xbf16>
    %c19 = arith.constant 19 : index
    %c0_105 = arith.constant 0 : index
    %c0_106 = arith.constant 0 : index
    %146 = vector.load %arg5[%c19, %c0_105, %c0_106] : memref<36x256x128xbf16, #tpu.memory_space<vmem>>, vector<1x256x128xbf16>
    %147 = vector.shape_cast %146 : vector<1x256x128xbf16> to vector<256x128xbf16>
    %cst_107 = arith.constant dense<0.000000e+00> : vector<2x128xf32>
    %148 = tpu.matmul %145, %147, %cst_107 {dimension_numbers = #tpu.dot_dimension_numbers<[1], [0], [0], [1], [0, 0, 1, 1], [], []>} : vector<2x256xbf16>, vector<256x128xbf16>, vector<2x128xf32> -> vector<2x128xf32>
    %149 = arith.addf %143, %148 : vector<2x128xf32>
    %c40 = arith.constant 40 : index
    %c0_108 = arith.constant 0 : index
    %150 = vector.load %arg10[%c40, %c0_108] : memref<72x256xf32, #tpu.memory_space<vmem>>, vector<2x256xf32>
    %151 = arith.truncf %150 : vector<2x256xf32> to vector<2x256xbf16>
    %c20_109 = arith.constant 20 : index
    %c0_110 = arith.constant 0 : index
    %c0_111 = arith.constant 0 : index
    %152 = vector.load %arg5[%c20_109, %c0_110, %c0_111] : memref<36x256x128xbf16, #tpu.memory_space<vmem>>, vector<1x256x128xbf16>
    %153 = vector.shape_cast %152 : vector<1x256x128xbf16> to vector<256x128xbf16>
    %cst_112 = arith.constant dense<0.000000e+00> : vector<2x128xf32>
    %154 = tpu.matmul %151, %153, %cst_112 {dimension_numbers = #tpu.dot_dimension_numbers<[1], [0], [0], [1], [0, 0, 1, 1], [], []>} : vector<2x256xbf16>, vector<256x128xbf16>, vector<2x128xf32> -> vector<2x128xf32>
    %155 = arith.addf %149, %154 : vector<2x128xf32>
    %c42 = arith.constant 42 : index
    %c0_113 = arith.constant 0 : index
    %156 = vector.load %arg10[%c42, %c0_113] : memref<72x256xf32, #tpu.memory_space<vmem>>, vector<2x256xf32>
    %157 = arith.truncf %156 : vector<2x256xf32> to vector<2x256xbf16>
    %c21 = arith.constant 21 : index
    %c0_114 = arith.constant 0 : index
    %c0_115 = arith.constant 0 : index
    %158 = vector.load %arg5[%c21, %c0_114, %c0_115] : memref<36x256x128xbf16, #tpu.memory_space<vmem>>, vector<1x256x128xbf16>
    %159 = vector.shape_cast %158 : vector<1x256x128xbf16> to vector<256x128xbf16>
    %cst_116 = arith.constant dense<0.000000e+00> : vector<2x128xf32>
    %160 = tpu.matmul %157, %159, %cst_116 {dimension_numbers = #tpu.dot_dimension_numbers<[1], [0], [0], [1], [0, 0, 1, 1], [], []>} : vector<2x256xbf16>, vector<256x128xbf16>, vector<2x128xf32> -> vector<2x128xf32>
    %161 = arith.addf %155, %160 : vector<2x128xf32>
    %c44 = arith.constant 44 : index
    %c0_117 = arith.constant 0 : index
    %162 = vector.load %arg10[%c44, %c0_117] : memref<72x256xf32, #tpu.memory_space<vmem>>, vector<2x256xf32>
    %163 = arith.truncf %162 : vector<2x256xf32> to vector<2x256xbf16>
    %c22_118 = arith.constant 22 : index
    %c0_119 = arith.constant 0 : index
    %c0_120 = arith.constant 0 : index
    %164 = vector.load %arg5[%c22_118, %c0_119, %c0_120] : memref<36x256x128xbf16, #tpu.memory_space<vmem>>, vector<1x256x128xbf16>
    %165 = vector.shape_cast %164 : vector<1x256x128xbf16> to vector<256x128xbf16>
    %cst_121 = arith.constant dense<0.000000e+00> : vector<2x128xf32>
    %166 = tpu.matmul %163, %165, %cst_121 {dimension_numbers = #tpu.dot_dimension_numbers<[1], [0], [0], [1], [0, 0, 1, 1], [], []>} : vector<2x256xbf16>, vector<256x128xbf16>, vector<2x128xf32> -> vector<2x128xf32>
    %167 = arith.addf %161, %166 : vector<2x128xf32>
    %c46 = arith.constant 46 : index
    %c0_122 = arith.constant 0 : index
    %168 = vector.load %arg10[%c46, %c0_122] : memref<72x256xf32, #tpu.memory_space<vmem>>, vector<2x256xf32>
    %169 = arith.truncf %168 : vector<2x256xf32> to vector<2x256xbf16>
    %c23 = arith.constant 23 : index
    %c0_123 = arith.constant 0 : index
    %c0_124 = arith.constant 0 : index
    %170 = vector.load %arg5[%c23, %c0_123, %c0_124] : memref<36x256x128xbf16, #tpu.memory_space<vmem>>, vector<1x256x128xbf16>
    %171 = vector.shape_cast %170 : vector<1x256x128xbf16> to vector<256x128xbf16>
    %cst_125 = arith.constant dense<0.000000e+00> : vector<2x128xf32>
    %172 = tpu.matmul %169, %171, %cst_125 {dimension_numbers = #tpu.dot_dimension_numbers<[1], [0], [0], [1], [0, 0, 1, 1], [], []>} : vector<2x256xbf16>, vector<256x128xbf16>, vector<2x128xf32> -> vector<2x128xf32>
    %173 = arith.addf %167, %172 : vector<2x128xf32>
    %c48 = arith.constant 48 : index
    %c0_126 = arith.constant 0 : index
    %174 = vector.load %arg10[%c48, %c0_126] : memref<72x256xf32, #tpu.memory_space<vmem>>, vector<2x256xf32>
    %175 = arith.truncf %174 : vector<2x256xf32> to vector<2x256xbf16>
    %c24_127 = arith.constant 24 : index
    %c0_128 = arith.constant 0 : index
    %c0_129 = arith.constant 0 : index
    %176 = vector.load %arg5[%c24_127, %c0_128, %c0_129] : memref<36x256x128xbf16, #tpu.memory_space<vmem>>, vector<1x256x128xbf16>
    %177 = vector.shape_cast %176 : vector<1x256x128xbf16> to vector<256x128xbf16>
    %cst_130 = arith.constant dense<0.000000e+00> : vector<2x128xf32>
    %178 = tpu.matmul %175, %177, %cst_130 {dimension_numbers = #tpu.dot_dimension_numbers<[1], [0], [0], [1], [0, 0, 1, 1], [], []>} : vector<2x256xbf16>, vector<256x128xbf16>, vector<2x128xf32> -> vector<2x128xf32>
    %179 = arith.addf %173, %178 : vector<2x128xf32>
    %c50 = arith.constant 50 : index
    %c0_131 = arith.constant 0 : index
    %180 = vector.load %arg10[%c50, %c0_131] : memref<72x256xf32, #tpu.memory_space<vmem>>, vector<2x256xf32>
    %181 = arith.truncf %180 : vector<2x256xf32> to vector<2x256xbf16>
    %c25 = arith.constant 25 : index
    %c0_132 = arith.constant 0 : index
    %c0_133 = arith.constant 0 : index
    %182 = vector.load %arg5[%c25, %c0_132, %c0_133] : memref<36x256x128xbf16, #tpu.memory_space<vmem>>, vector<1x256x128xbf16>
    %183 = vector.shape_cast %182 : vector<1x256x128xbf16> to vector<256x128xbf16>
    %cst_134 = arith.constant dense<0.000000e+00> : vector<2x128xf32>
    %184 = tpu.matmul %181, %183, %cst_134 {dimension_numbers = #tpu.dot_dimension_numbers<[1], [0], [0], [1], [0, 0, 1, 1], [], []>} : vector<2x256xbf16>, vector<256x128xbf16>, vector<2x128xf32> -> vector<2x128xf32>
    %185 = arith.addf %179, %184 : vector<2x128xf32>
    %c52 = arith.constant 52 : index
    %c0_135 = arith.constant 0 : index
    %186 = vector.load %arg10[%c52, %c0_135] : memref<72x256xf32, #tpu.memory_space<vmem>>, vector<2x256xf32>
    %187 = arith.truncf %186 : vector<2x256xf32> to vector<2x256xbf16>
    %c26_136 = arith.constant 26 : index
    %c0_137 = arith.constant 0 : index
    %c0_138 = arith.constant 0 : index
    %188 = vector.load %arg5[%c26_136, %c0_137, %c0_138] : memref<36x256x128xbf16, #tpu.memory_space<vmem>>, vector<1x256x128xbf16>
    %189 = vector.shape_cast %188 : vector<1x256x128xbf16> to vector<256x128xbf16>
    %cst_139 = arith.constant dense<0.000000e+00> : vector<2x128xf32>
    %190 = tpu.matmul %187, %189, %cst_139 {dimension_numbers = #tpu.dot_dimension_numbers<[1], [0], [0], [1], [0, 0, 1, 1], [], []>} : vector<2x256xbf16>, vector<256x128xbf16>, vector<2x128xf32> -> vector<2x128xf32>
    %191 = arith.addf %185, %190 : vector<2x128xf32>
    %c54 = arith.constant 54 : index
    %c0_140 = arith.constant 0 : index
    %192 = vector.load %arg10[%c54, %c0_140] : memref<72x256xf32, #tpu.memory_space<vmem>>, vector<2x256xf32>
    %193 = arith.truncf %192 : vector<2x256xf32> to vector<2x256xbf16>
    %c27 = arith.constant 27 : index
    %c0_141 = arith.constant 0 : index
    %c0_142 = arith.constant 0 : index
    %194 = vector.load %arg5[%c27, %c0_141, %c0_142] : memref<36x256x128xbf16, #tpu.memory_space<vmem>>, vector<1x256x128xbf16>
    %195 = vector.shape_cast %194 : vector<1x256x128xbf16> to vector<256x128xbf16>
    %cst_143 = arith.constant dense<0.000000e+00> : vector<2x128xf32>
    %196 = tpu.matmul %193, %195, %cst_143 {dimension_numbers = #tpu.dot_dimension_numbers<[1], [0], [0], [1], [0, 0, 1, 1], [], []>} : vector<2x256xbf16>, vector<256x128xbf16>, vector<2x128xf32> -> vector<2x128xf32>
    %197 = arith.addf %191, %196 : vector<2x128xf32>
    %c56 = arith.constant 56 : index
    %c0_144 = arith.constant 0 : index
    %198 = vector.load %arg10[%c56, %c0_144] : memref<72x256xf32, #tpu.memory_space<vmem>>, vector<2x256xf32>
    %199 = arith.truncf %198 : vector<2x256xf32> to vector<2x256xbf16>
    %c28_145 = arith.constant 28 : index
    %c0_146 = arith.constant 0 : index
    %c0_147 = arith.constant 0 : index
    %200 = vector.load %arg5[%c28_145, %c0_146, %c0_147] : memref<36x256x128xbf16, #tpu.memory_space<vmem>>, vector<1x256x128xbf16>
    %201 = vector.shape_cast %200 : vector<1x256x128xbf16> to vector<256x128xbf16>
    %cst_148 = arith.constant dense<0.000000e+00> : vector<2x128xf32>
    %202 = tpu.matmul %199, %201, %cst_148 {dimension_numbers = #tpu.dot_dimension_numbers<[1], [0], [0], [1], [0, 0, 1, 1], [], []>} : vector<2x256xbf16>, vector<256x128xbf16>, vector<2x128xf32> -> vector<2x128xf32>
    %203 = arith.addf %197, %202 : vector<2x128xf32>
    %c58 = arith.constant 58 : index
    %c0_149 = arith.constant 0 : index
    %204 = vector.load %arg10[%c58, %c0_149] : memref<72x256xf32, #tpu.memory_space<vmem>>, vector<2x256xf32>
    %205 = arith.truncf %204 : vector<2x256xf32> to vector<2x256xbf16>
    %c29 = arith.constant 29 : index
    %c0_150 = arith.constant 0 : index
    %c0_151 = arith.constant 0 : index
    %206 = vector.load %arg5[%c29, %c0_150, %c0_151] : memref<36x256x128xbf16, #tpu.memory_space<vmem>>, vector<1x256x128xbf16>
    %207 = vector.shape_cast %206 : vector<1x256x128xbf16> to vector<256x128xbf16>
    %cst_152 = arith.constant dense<0.000000e+00> : vector<2x128xf32>
    %208 = tpu.matmul %205, %207, %cst_152 {dimension_numbers = #tpu.dot_dimension_numbers<[1], [0], [0], [1], [0, 0, 1, 1], [], []>} : vector<2x256xbf16>, vector<256x128xbf16>, vector<2x128xf32> -> vector<2x128xf32>
    %209 = arith.addf %203, %208 : vector<2x128xf32>
    %c60 = arith.constant 60 : index
    %c0_153 = arith.constant 0 : index
    %210 = vector.load %arg10[%c60, %c0_153] : memref<72x256xf32, #tpu.memory_space<vmem>>, vector<2x256xf32>
    %211 = arith.truncf %210 : vector<2x256xf32> to vector<2x256xbf16>
    %c30_154 = arith.constant 30 : index
    %c0_155 = arith.constant 0 : index
    %c0_156 = arith.constant 0 : index
    %212 = vector.load %arg5[%c30_154, %c0_155, %c0_156] : memref<36x256x128xbf16, #tpu.memory_space<vmem>>, vector<1x256x128xbf16>
    %213 = vector.shape_cast %212 : vector<1x256x128xbf16> to vector<256x128xbf16>
    %cst_157 = arith.constant dense<0.000000e+00> : vector<2x128xf32>
    %214 = tpu.matmul %211, %213, %cst_157 {dimension_numbers = #tpu.dot_dimension_numbers<[1], [0], [0], [1], [0, 0, 1, 1], [], []>} : vector<2x256xbf16>, vector<256x128xbf16>, vector<2x128xf32> -> vector<2x128xf32>
    %215 = arith.addf %209, %214 : vector<2x128xf32>
    %c62 = arith.constant 62 : index
    %c0_158 = arith.constant 0 : index
    %216 = vector.load %arg10[%c62, %c0_158] : memref<72x256xf32, #tpu.memory_space<vmem>>, vector<2x256xf32>
    %217 = arith.truncf %216 : vector<2x256xf32> to vector<2x256xbf16>
    %c31 = arith.constant 31 : index
    %c0_159 = arith.constant 0 : index
    %c0_160 = arith.constant 0 : index
    %218 = vector.load %arg5[%c31, %c0_159, %c0_160] : memref<36x256x128xbf16, #tpu.memory_space<vmem>>, vector<1x256x128xbf16>
    %219 = vector.shape_cast %218 : vector<1x256x128xbf16> to vector<256x128xbf16>
    %cst_161 = arith.constant dense<0.000000e+00> : vector<2x128xf32>
    %220 = tpu.matmul %217, %219, %cst_161 {dimension_numbers = #tpu.dot_dimension_numbers<[1], [0], [0], [1], [0, 0, 1, 1], [], []>} : vector<2x256xbf16>, vector<256x128xbf16>, vector<2x128xf32> -> vector<2x128xf32>
    %221 = arith.addf %215, %220 : vector<2x128xf32>
    %c64 = arith.constant 64 : index
    %c0_162 = arith.constant 0 : index
    %222 = vector.load %arg10[%c64, %c0_162] : memref<72x256xf32, #tpu.memory_space<vmem>>, vector<2x256xf32>
    %223 = arith.truncf %222 : vector<2x256xf32> to vector<2x256xbf16>
    %c32_163 = arith.constant 32 : index
    %c0_164 = arith.constant 0 : index
    %c0_165 = arith.constant 0 : index
    %224 = vector.load %arg5[%c32_163, %c0_164, %c0_165] : memref<36x256x128xbf16, #tpu.memory_space<vmem>>, vector<1x256x128xbf16>
    %225 = vector.shape_cast %224 : vector<1x256x128xbf16> to vector<256x128xbf16>
    %cst_166 = arith.constant dense<0.000000e+00> : vector<2x128xf32>
    %226 = tpu.matmul %223, %225, %cst_166 {dimension_numbers = #tpu.dot_dimension_numbers<[1], [0], [0], [1], [0, 0, 1, 1], [], []>} : vector<2x256xbf16>, vector<256x128xbf16>, vector<2x128xf32> -> vector<2x128xf32>
    %227 = arith.addf %221, %226 : vector<2x128xf32>
    %c66 = arith.constant 66 : index
    %c0_167 = arith.constant 0 : index
    %228 = vector.load %arg10[%c66, %c0_167] : memref<72x256xf32, #tpu.memory_space<vmem>>, vector<2x256xf32>
    %229 = arith.truncf %228 : vector<2x256xf32> to vector<2x256xbf16>
    %c33 = arith.constant 33 : index
    %c0_168 = arith.constant 0 : index
    %c0_169 = arith.constant 0 : index
    %230 = vector.load %arg5[%c33, %c0_168, %c0_169] : memref<36x256x128xbf16, #tpu.memory_space<vmem>>, vector<1x256x128xbf16>
    %231 = vector.shape_cast %230 : vector<1x256x128xbf16> to vector<256x128xbf16>
    %cst_170 = arith.constant dense<0.000000e+00> : vector<2x128xf32>
    %232 = tpu.matmul %229, %231, %cst_170 {dimension_numbers = #tpu.dot_dimension_numbers<[1], [0], [0], [1], [0, 0, 1, 1], [], []>} : vector<2x256xbf16>, vector<256x128xbf16>, vector<2x128xf32> -> vector<2x128xf32>
    %233 = arith.addf %227, %232 : vector<2x128xf32>
    %c68 = arith.constant 68 : index
    %c0_171 = arith.constant 0 : index
    %234 = vector.load %arg10[%c68, %c0_171] : memref<72x256xf32, #tpu.memory_space<vmem>>, vector<2x256xf32>
    %235 = arith.truncf %234 : vector<2x256xf32> to vector<2x256xbf16>
    %c34_172 = arith.constant 34 : index
    %c0_173 = arith.constant 0 : index
    %c0_174 = arith.constant 0 : index
    %236 = vector.load %arg5[%c34_172, %c0_173, %c0_174] : memref<36x256x128xbf16, #tpu.memory_space<vmem>>, vector<1x256x128xbf16>
    %237 = vector.shape_cast %236 : vector<1x256x128xbf16> to vector<256x128xbf16>
    %cst_175 = arith.constant dense<0.000000e+00> : vector<2x128xf32>
    %238 = tpu.matmul %235, %237, %cst_175 {dimension_numbers = #tpu.dot_dimension_numbers<[1], [0], [0], [1], [0, 0, 1, 1], [], []>} : vector<2x256xbf16>, vector<256x128xbf16>, vector<2x128xf32> -> vector<2x128xf32>
    %239 = arith.addf %233, %238 : vector<2x128xf32>
    %c70 = arith.constant 70 : index
    %c0_176 = arith.constant 0 : index
    %240 = vector.load %arg10[%c70, %c0_176] : memref<72x256xf32, #tpu.memory_space<vmem>>, vector<2x256xf32>
    %241 = arith.truncf %240 : vector<2x256xf32> to vector<2x256xbf16>
    %c35 = arith.constant 35 : index
    %c0_177 = arith.constant 0 : index
    %c0_178 = arith.constant 0 : index
    %242 = vector.load %arg5[%c35, %c0_177, %c0_178] : memref<36x256x128xbf16, #tpu.memory_space<vmem>>, vector<1x256x128xbf16>
    %243 = vector.shape_cast %242 : vector<1x256x128xbf16> to vector<256x128xbf16>
    %cst_179 = arith.constant dense<0.000000e+00> : vector<2x128xf32>
    %244 = tpu.matmul %241, %243, %cst_179 {dimension_numbers = #tpu.dot_dimension_numbers<[1], [0], [0], [1], [0, 0, 1, 1], [], []>} : vector<2x256xbf16>, vector<256x128xbf16>, vector<2x128xf32> -> vector<2x128xf32>
    %245 = arith.addf %239, %244 : vector<2x128xf32>
    %c0_180 = arith.constant 0 : index
    %c0_181 = arith.constant 0 : index
    %246 = vector.load %arg6[%c0_180, %c0_181] : memref<1x128xf32, #tpu.memory_space<vmem>>, vector<1x128xf32>
    %247 = vector.broadcast %246 : vector<1x128xf32> to vector<2x128xf32>
    %248 = arith.addf %245, %247 : vector<2x128xf32>
    %cst_182 = arith.constant 0.000000e+00 : f32
    %249 = vector.broadcast %cst_182 : f32 to vector<2x128xf32>
    %250 = arith.maximumf %248, %249 : vector<2x128xf32>
    %c0_183 = arith.constant 0 : index
    %c0_184 = arith.constant 0 : index
    %251 = vector.load %arg7[%c0_183, %c0_184] : memref<1x128xf32, #tpu.memory_space<vmem>>, vector<1x128xf32>
    %252 = vector.broadcast %251 : vector<1x128xf32> to vector<2x128xf32>
    %253 = arith.mulf %250, %252 : vector<2x128xf32>
    %cst_185 = arith.constant dense<0.000000e+00> : vector<2xf32>
    %254 = vector.multi_reduction <add>, %253, %cst_185 [1] : vector<2x128xf32> to vector<2xf32>
    %255 = vector.shape_cast %254 : vector<2xf32> to vector<2x1xf32>
    %c0_186 = arith.constant 0 : index
    %c0_187 = arith.constant 0 : index
    %256 = vector.load %arg8[%c0_186, %c0_187] : memref<1x1xf32, #tpu.memory_space<vmem>>, vector<1x1xf32>
    %257 = vector.broadcast %256 : vector<1x1xf32> to vector<2x1xf32>
    %258 = arith.addf %255, %257 : vector<2x1xf32>
    %c0_188 = arith.constant 0 : index
    %c0_189 = arith.constant 0 : index
    %259 = vector.load %arg9[%c0_188, %c0_189] : memref<2x1xf32, #tpu.memory_space<vmem>>, vector<2x1xf32>
    tpu.vector_store %arg9[%c0_188, %c0_189], %258 {strides = array<i32>} : memref<2x1xf32, #tpu.memory_space<vmem>>, vector<2x1xf32>,
    return
  }
}

</mosaic_0001>

<bundles_post_ra>
// kernel: f_forward.1
= control target key start
LH: loop header
LB: loop body
LE: loop exit
PB: predicated region body
PF: predicated region fallthrough
CT: control target
= control target key end

     0   :  { %vm7004_vm0 = vcmask 1041408   ;;  %vm7016_vm1 = vcmask 1024   ;;  %s12357_s1 = inlined_call_operand.vmem [shape: bf16[256,256], index: 1, kind: input, shape index: {}]   ;;  %s12358_s0 = inlined_call_operand.vmem [shape: f32[72,256], index: 0, kind: input, shape index: {}]   ;;  %s12359_s5 = inlined_call_operand.vmem [shape: bf16[36,256,128], index: 5, kind: input, shape index: {}]   ;;  %s12360_s2 = inlined_call_operand.vmem [shape: f32[1,256], index: 2, kind: input, shape index: {}]   ;;  %s12361_s3 = inlined_call_operand.vmem [shape: f32[1,256], index: 3, kind: input, shape index: {}]   ;;  %s12362_s4 = inlined_call_operand.vmem [shape: f32[1,256], index: 4, kind: input, shape index: {}]   ;;  %s12363_s8 = inlined_call_operand.<no memory space> [shape: f32[1,1], index: 8, kind: input, shape index: {}]   ;;  %s12364_s6 = inlined_call_operand.vmem [shape: f32[1,128], index: 6, kind: input, shape index: {}]   ;;  %s12365_s7 = inlined_call_operand.vmem [shape: f32[1,128], index: 7, kind: input, shape index: {}]   ;;  %s12366_s9 = inlined_call_operand.vmem [shape: f32[2,1], index: 9, kind: output, shape index: {}]  }
   0x1   :  { %v9546_v0 = vld [vmem:[%s12357_s1 + $0x4] ss:$8 sps:$4 sm:$0xff]   ;;  %v9548_v1 = vld [vmem:[%s12357_s1] ss:$8 sps:$4 sm:$0xff]   ;;  %v9549_v2 = vld [vmem:[%s12357_s1 + $0x14] ss:$8 sps:$4 sm:$0xff]  }
   0x2   :  { %267 = vmatprep.subr.bf16.mxu0 %v9546_v0  ;;  %v9551_v3 = vld [vmem:[%s12357_s1 + $0x10] ss:$8 sps:$4 sm:$0xff]   ;;  %v9552_v4 = vld [vmem:[%s12357_s1 + $0x24] ss:$8 sps:$4 sm:$0xff]   ;;  %v9554_v5 = vld [vmem:[%s12357_s1 + $0x20] ss:$8 sps:$4 sm:$0xff]  }
   0x3   :  { %268 = vmatpush1.bf16.msra.mxu0 %v9548_v1  ;;  %v9555_v6 = vld [vmem:[%s12357_s1 + $0x34] ss:$8 sps:$4 sm:$0xff]   ;;  %v9557_v7 = vld [vmem:[%s12357_s1 + $0x30] ss:$8 sps:$4 sm:$0xff]   ;;  %v9558_v8 = vld [vmem:[%s12357_s1 + $0x44] ss:$8 sps:$4 sm:$0xff]  }
   0x4   :  { %269 = vmatprep.subr.bf16.mxu0 %v9549_v2  ;;  %v9560_v9 = vld [vmem:[%s12357_s1 + $0x40] ss:$8 sps:$4 sm:$0xff]   ;;  %v9561_v10 = vld [vmem:[%s12357_s1 + $0x54] ss:$8 sps:$4 sm:$0xff]   ;;  %v9563_v11 = vld [vmem:[%s12357_s1 + $0x50] ss:$8 sps:$4 sm:$0xff]  }
   0x5   :  { %v9564_v12 = vld [vmem:[%s12357_s1 + $0x64] ss:$8 sps:$4 sm:$0xff]   ;;  %v38_v14 = vld [vmem:[%s12358_s0 + $0x18] sm:$0xff]  ;;  %v9566_v16 = vld [vmem:[%s12357_s1 + $0x60] ss:$8 sps:$4 sm:$0xff]  }
   0x6   :  { %v36_v13 = vld [vmem:[%s12358_s0 + $0x8] sm:$0xff]  ;;  %v9567_v17 = vld [vmem:[%s12357_s1 + $0x74] ss:$8 sps:$4 sm:$0xff]   ;;  %v9569_v18 = vld [vmem:[%s12357_s1 + $0x70] ss:$8 sps:$4 sm:$0xff]  }
   0x7   :  { %270 = vmatpush1.bf16.msra.mxu0 %v9551_v3  ;;  %v54_v15 = vpack.c.bf16 %v38_v14, %v36_v13  ;;  %v9570_v19 = vld [vmem:[%s12357_s1 + $0x84] ss:$8 sps:$4 sm:$0xff]   ;;  %v9572_v20 = vld [vmem:[%s12357_s1 + $0x80] ss:$8 sps:$4 sm:$0xff]   ;;  %v9573_v21 = vld [vmem:[%s12357_s1 + $0x94] ss:$8 sps:$4 sm:$0xff]  }
   0x8   :  { %271 = vmatprep.subr.bf16.mxu0 %v9552_v4  ;;  %v9575_v22 = vld [vmem:[%s12357_s1 + $0x90] ss:$8 sps:$4 sm:$0xff]   ;;  %v9576_v23 = vld [vmem:[%s12357_s1 + $0xa4] ss:$8 sps:$4 sm:$0xff]   ;;  %v9578_v24 = vld [vmem:[%s12357_s1 + $0xa0] ss:$8 sps:$4 sm:$0xff]  }
   0x9   :  { %299 = vmatprep.mubr.bf16.mxu0 %v54_v15  ;;  %v9579_v25 = vld [vmem:[%s12357_s1 + $0xb4] ss:$8 sps:$4 sm:$0xff]   ;;  %v9581_v26 = vld [vmem:[%s12357_s1 + $0xb0] ss:$8 sps:$4 sm:$0xff]   ;;  %v9582_v27 = vld [vmem:[%s12357_s1 + $0xc4] ss:$8 sps:$4 sm:$0xff]  }
   0xa   :  { %v9584_v28 = vld [vmem:[%s12357_s1 + $0xc0] ss:$8 sps:$4 sm:$0xff]   ;;  %v9585_v29 = vld [vmem:[%s12357_s1 + $0xd4] ss:$8 sps:$4 sm:$0xff]   ;;  %v9587_v30 = vld [vmem:[%s12357_s1 + $0xd0] ss:$8 sps:$4 sm:$0xff]  }
   0xb   :  { %272 = vmatpush1.bf16.msra.mxu0 %v9554_v5  ;;  %v9588_v31 = vld [vmem:[%s12357_s1 + $0xe4] ss:$8 sps:$4 sm:$0xff]   ;;  %v9590_v32 = vld [vmem:[%s12357_s1 + $0xe0] ss:$8 sps:$4 sm:$0xff]   ;;  %v9591_v33 = vld [vmem:[%s12357_s1 + $0xf4] ss:$8 sps:$4 sm:$0xff]  }
   0xc   :  { %273 = vmatprep.subr.bf16.mxu0 %v9555_v6  ;;  %v9593_v34 = vld [vmem:[%s12357_s1 + $0xf0] ss:$8 sps:$4 sm:$0xff]   ;;  %v35_v35 = vld [vmem:[%s12358_s0] sm:$0xff]  ;;  %v40_v37 = vld [vmem:[%s12358_s0 + $0x28] sm:$0xff] }
   0xd   :  { %v37_v36 = vld [vmem:[%s12358_s0 + $0x10] sm:$0xff]  ;;  %v42_v38 = vld [vmem:[%s12358_s0 + $0x38] sm:$0xff]  ;;  %v39_v41 = vld [vmem:[%s12358_s0 + $0x20] sm:$0xff] }
   0xe   :  { %v53_v39 = vpack.c.bf16 %v37_v36, %v35_v35  ;;  %v56_v40 = vpack.c.bf16 %v42_v38, %v40_v37  ;;  %v41_v42 = vld [vmem:[%s12358_s0 + $0x30] sm:$0xff]  ;;  %v44_v43 = vld [vmem:[%s12358_s0 + $0x48] sm:$0xff]  ;;  %v46_v44 = vld [vmem:[%s12358_s0 + $0x58] sm:$0xff] }
   0xf   :  { %274 = vmatpush1.bf16.msra.mxu0 %v9557_v7  ;;  %v55_v45 = vpack.c.bf16 %v41_v42, %v39_v41  ;;  %v58_v46 = vpack.c.bf16 %v46_v44, %v44_v43  ;;  %v43_v47 = vld [vmem:[%s12358_s0 + $0x40] sm:$0xff]  ;;  %v45_v48 = vld [vmem:[%s12358_s0 + $0x50] sm:$0xff]  ;;  %v48_v49 = vld [vmem:[%s12358_s0 + $0x68] sm:$0xff] }
  0x10   :  { %275 = vmatprep.subr.bf16.mxu0 %v9558_v8  ;;  %v50_v50 = vld [vmem:[%s12358_s0 + $0x78] sm:$0xff]  ;;  %v57_v51 = vpack.c.bf16 %v45_v48, %v43_v47  ;;  %v47_v53 = vld [vmem:[%s12358_s0 + $0x60] sm:$0xff]  ;;  %v49_v54 = vld [vmem:[%s12358_s0 + $0x70] sm:$0xff] }
  0x11   :  { %v60_v52 = vpack.c.bf16 %v50_v50, %v48_v49  ;;  %v52_v55 = vld [vmem:[%s12358_s0 + $0x88] sm:$0xff]  ;;  %v59_v56 = vpack.c.bf16 %v49_v54, %v47_v53  ;;  %v51_v58 = vld [vmem:[%s12358_s0 + $0x80] sm:$0xff]  ;;  %v9602_v4 = vld [vmem:[%s12359_s5 + $0xd0] sm:$0xff]  }
  0x12   :  { %v62_v57 = vpack.c.bf16 %v52_v55, %v52_v55  ;;  %v61_v59 = vpack.c.bf16 %v51_v58, %v51_v58  ;;  %v9594_v60 = vld [vmem:[%s12359_s5 + $0xc0] sm:$0xff]   ;;  %v9598_v0 = vld [vmem:[%s12359_s5 + $0xc8] sm:$0xff]   ;;  %v9603_v5 = vld [vmem:[%s12359_s5 + $0x1d0] sm:$0xff]  }
  0x13   :  { %276 = vmatpush1.bf16.msra.mxu0 %v9560_v9  ;;  %8753 = vmatprep.subr.bf16.mxu1 %v9594_v60  ;;  %v9595_v61 = vld [vmem:[%s12359_s5 + $0x1c0] sm:$0xff]   ;;  %v9599_v1 = vld [vmem:[%s12359_s5 + $0x1c8] sm:$0xff]   ;;  %v9604_v6 = vld [vmem:[%s12359_s5 + $0x90] sm:$0xff]  }
  0x14   :  { %277 = vmatprep.subr.bf16.mxu0 %v9561_v10  ;;  %v9596_v62 = vld [vmem:[%s12359_s5 + $0x80] sm:$0xff]   ;;  %v9600_v2 = vld [vmem:[%s12359_s5 + $0x88] sm:$0xff]   ;;  %v9605_v7 = vld [vmem:[%s12359_s5 + $0x190] sm:$0xff]  }
  0x15   :  { %v9597_v63 = vld [vmem:[%s12359_s5 + $0x180] sm:$0xff]   ;;  %8754 = vmatpush3.bf16.msra.mxu1 %v9596_v62  ;;  %v9601_v3 = vld [vmem:[%s12359_s5 + $0x188] sm:$0xff]   ;;  %v9606_v8 = vld [vmem:[%s12359_s5 + $0xd8] sm:$0xff]  }
  0x16   :  { %8755 = vmatprep.subr.bf16.mxu1 %v9598_v0  ;;  %v9607_v9 = vld [vmem:[%s12359_s5 + $0x1d8] sm:$0xff]   ;;  %v9610_v13 = vld [vmem:[%s12359_s5 + $0xe0] sm:$0xff]  }
  0x17   :  { %278 = vmatpush1.bf16.msra.mxu0 %v9563_v11  ;;  %v9608_v10 = vld [vmem:[%s12359_s5 + $0x98] sm:$0xff]   ;;  %v97_v11 = vlaneseq  ;;  %v9611_v14 = vld [vmem:[%s12359_s5 + $0x1e0] sm:$0xff]  }
  0x18   :  { %279 = vmatprep.subr.bf16.mxu0 %v9564_v12  ;;  %v9609_v12 = vld [vmem:[%s12359_s5 + $0x198] sm:$0xff]   ;;  %v9612_v15 = vld [vmem:[%s12359_s5 + $0xa0] sm:$0xff]  }
  0x19   :  { %8756 = vmatpush3.bf16.msra.mxu1 %v9600_v2  ;;  %v9624_v36 = vld [vmem:[%s12359_s5 + $0xb8] sm:$0xff]   ;;  %v9626_v43 = vld [vmem:[%s12359_s5 + $0x40] sm:$0xff]  }
  0x1a   :  { %8757 = vmatprep.subr.bf16.mxu1 %v9602_v4 }
  0x1b   :  { %280 = vmatpush1.bf16.msra.mxu0 %v9566_v16  ;;  %v10432_v16 = vshrl.u32 %v97_v11, 7 }
  0x1c   :  { %281 = vmatprep.subr.bf16.mxu0 %v9567_v17  ;;  %v9613_v17 = vld [vmem:[%s12359_s5 + $0x1a0] sm:$0xff]  }
  0x1d   :  { %8758 = vmatpush3.bf16.msra.mxu1 %v9604_v6 }
  0x1e   :  { %8759 = vmatprep.subr.bf16.mxu1 %v9606_v8 }
  0x1f   :  { %282 = vmatpush1.bf16.msra.mxu0 %v9569_v18  ;;  %v9614_v18 = vld [vmem:[%s12359_s5 + $0xe8] sm:$0xff]  }
  0x20   :  { %283 = vmatprep.subr.bf16.mxu0 %v9570_v19  ;;  %v9615_v19 = vld [vmem:[%s12359_s5 + $0x1e8] sm:$0xff]  }
  0x21   :  { %8760 = vmatpush3.bf16.msra.mxu1 %v9608_v10 }
  0x22   :  { %8761 = vmatprep.subr.bf16.mxu1 %v9610_v13 }
  0x23   :  { %284 = vmatpush1.bf16.msra.mxu0 %v9572_v20  ;;  %v95_v20 = vld [vmem:[%s12360_s2] sm:$0x3] }
  0x24   :  { %285 = vmatprep.subr.bf16.mxu0 %v9573_v21  ;;  %v9616_v21 = vld [vmem:[%s12359_s5 + $0xa8] sm:$0xff]  }
  0x25   :  { %8762 = vmatpush3.bf16.msra.mxu1 %v9612_v15 }
  0x26   :  { %8763 = vmatprep.subr.bf16.mxu1 %v9614_v18 }
  0x27   :  { %286 = vmatpush1.bf16.msra.mxu0 %v9575_v22  ;;  %v10450_v22 = vsub.s32 0, %v10432_v16 }
  0x28   :  { %287 = vmatprep.subr.bf16.mxu0 %v9576_v23  ;;  %v9617_v23 = vld [vmem:[%s12359_s5 + $0x1a8] sm:$0xff]  }
  0x29   :  { %8764 = vmatpush3.bf16.msra.mxu1 %v9616_v21 }
  0x2b   :  { %288 = vmatpush1.bf16.msra.mxu0 %v9578_v24  ;;  %v10456_v24 = vsub.s32 1, %v10432_v16 }
  0x2c   :  { %289 = vmatprep.subr.bf16.mxu0 %v9579_v25  ;;  %v9618_v25 = vld [vmem:[%s12359_s5 + $0xf0] sm:$0xff]  }
  0x2d   :  { %8765 = vmatprep.subr.bf16.mxu1 %v9618_v25 }
  0x2f   :  { %290 = vmatpush1.bf16.msra.mxu0 %v9581_v26  ;;  %v9619_v26 = vld [vmem:[%s12359_s5 + $0x1f0] sm:$0xff]  }
  0x30   :  { %291 = vmatprep.subr.bf16.mxu0 %v9582_v27  ;;  %v9620_v27 = vld [vmem:[%s12359_s5 + $0xb0] sm:$0xff]  }
  0x31   :  { %8766 = vmatpush3.bf16.msra.mxu1 %v9620_v27 }
  0x33   :  { %292 = vmatpush1.bf16.msra.mxu0 %v9584_v28  ;;  %v10468_v28 = vrot.slane %v95_v20, %v10450_v22 }
  0x34   :  { %293 = vmatprep.subr.bf16.mxu0 %v9585_v29  ;;  %v9621_v29 = vld [vmem:[%s12359_s5 + $0x1b0] sm:$0xff]  }
  0x37   :  { %294 = vmatpush1.bf16.msra.mxu0 %v9587_v30 }
  0x38   :  { %295 = vmatprep.subr.bf16.mxu0 %v9588_v31  ;;  %v10474_v31 = vrot.slane %v95_v20, %v10456_v24 }
  0x3b   :  { %296 = vmatpush1.bf16.msra.mxu0 %v9590_v32  ;;  %v9622_v32 = vld [vmem:[%s12359_s5 + $0xf8] sm:$0xff]  }
  0x3c   :  { %297 = vmatprep.subr.bf16.mxu0 %v9591_v33  ;;  %8767 = vmatprep.subr.bf16.mxu1 %v9622_v32 }
  0x3d   :  { %8768 = vmatpush3.bf16.msra.mxu1 %v9624_v36 }
  0x3e   :  { %8775 = vmatprep.subr.bf16.mxu1 %v9626_v43 }
  0x3f   :  { %298 = vmatpush1.bf16.msra.mxu0 %v9593_v34  ;;  %v9623_v34 = vld [vmem:[%s12359_s5 + $0x1f8] sm:$0xff]  }
  0x40   :  { %8819 = vmatprep.subr.bf16.mxu0 %v9595_v61 }
  0x42   :  { %300 = vmatmul.mubr.bf16.vlgmr.msra.gmra.mrb[0].mxu0 %v53_v39 }
  0x43   :  { %309 = vmatprep.mubr.bf16.mxu0 %v56_v40  ;;  %8820 = vmatpush3.bf16.msra.mxu0 %v9597_v63  ;;  %v9625_v40 = vld [vmem:[%s12359_s5 + $0x1b8] sm:$0xff]  }
  0x44   :  { %8821 = vmatprep.subr.bf16.mxu0 %v9599_v1 }
  0x47   :  { %8822 = vmatpush3.bf16.msra.mxu0 %v9601_v3 }
  0x48   :  { %8823 = vmatprep.subr.bf16.mxu0 %v9603_v5 }
  0x4a   :  { %310 = vmatmul.mubr.bf16.gmra.mrb[4].mxu0 %v55_v45  ;;  %v9627_v45 = vld [vmem:[%s12359_s5 + $0x2c0] sm:$0xff]  }
  0x4b   :  { %319 = vmatprep.mubr.bf16.mxu0 %v58_v46  ;;  %8824 = vmatpush3.bf16.msra.mxu0 %v9605_v7 }
  0x4c   :  { %8825 = vmatprep.subr.bf16.mxu0 %v9607_v9 }
  0x4f   :  { %8826 = vmatpush3.bf16.msra.mxu0 %v9609_v12 }
  0x50   :  { %8827 = vmatprep.subr.bf16.mxu0 %v9611_v14 }
  0x52   :  { %320 = vmatmul.mubr.bf16.gmra.mrb[8].mxu0 %v57_v51 }
  0x53   :  { %329 = vmatprep.mubr.bf16.mxu0 %v60_v52  ;;  %8828 = vmatpush3.bf16.msra.mxu0 %v9613_v17 }
  0x54   :  { %8829 = vmatprep.subr.bf16.mxu0 %v9615_v19 }
  0x57   :  { %8830 = vmatpush3.bf16.msra.mxu0 %v9617_v23 }
  0x58   :  { %8831 = vmatprep.subr.bf16.mxu0 %v9619_v26 }
  0x5a   :  { %330 = vmatmul.mubr.bf16.gmra.mrb[12].mxu0 %v59_v56 }
  0x5b   :  { %339 = vmatprep.mubr.bf16.mxu0 %v62_v57  ;;  %8832 = vmatpush3.bf16.msra.mxu0 %v9621_v29 }
  0x5c   :  { %8833 = vmatprep.subr.bf16.mxu0 %v9623_v34 }
  0x5f   :  { %8834 = vmatpush3.bf16.msra.mxu0 %v9625_v40 }
  0x60   :  { %8863 = vmatprep.subr.bf16.mxu0 %v9627_v45 }
  0x62   :  { %340 = vmatmul.mubr.bf16.gmra.mrb[16].mxu0 %v61_v59 }
 0x115   :  { %v301_v30 = vpop.f32.mrb[0].mxu0 }
 0x116   :  { %v303_v33 = vpop.f32.mrb[1].mxu0  ;;  %v10486_v37 = vadd.f32 %v301_v30, %v10468_v28 }
 0x117   :  { %v305_v35 = vpop.f32.mrb[2].mxu0  ;;  %v10495_v41 = vadd.f32 %v303_v33, %v10474_v31 }
 0x118   :  { %v10489_v38 = vadd.f32 %v305_v35, %v10468_v28  ;;  %v307_v39 = vpop.f32.mrb[3].mxu0 }
 0x119   :  { %v10498_v42 = vadd.f32 %v307_v39, %v10474_v31 }
 0x11a   :  { %v348_v44 = vadd.f32 %v10489_v38, %v10486_v37 }
 0x11b   :  { %v362_v46 = vadd.f32 %v10498_v42, %v10495_v41 }
 0x11d   :  { %v311_v47 = vpop.f32.mrb[4].mxu0 }
 0x11e   :  { %v312_v48 = vadd.f32 %v311_v47, %v10468_v28  ;;  %v313_v49 = vpop.f32.mrb[5].mxu0 }
 0x11f   :  { %v10512_v50 = vadd.f32 %v313_v49, %v10474_v31  ;;  %v315_v51 = vpop.f32.mrb[6].mxu0 }
 0x120   :  { %v349_v52 = vadd.f32 %v348_v44, %v312_v48  ;;  %v316_v53 = vadd.f32 %v315_v51, %v10468_v28  ;;  %v317_v54 = vpop.f32.mrb[7].mxu0 }
 0x121   :  { %v363_v55 = vadd.f32 %v362_v46, %v10512_v50  ;;  %v10517_v56 = vadd.f32 %v317_v54, %v10474_v31 }
 0x122   :  { %v350_v57 = vadd.f32 %v349_v52, %v316_v53 }
 0x123   :  { %v364_v58 = vadd.f32 %v363_v55, %v10517_v56 }
 0x125   :  { %v321_v59 = vpop.f32.mrb[8].mxu0 }
 0x126   :  { %v322_v60 = vadd.f32 %v321_v59, %v10468_v28  ;;  %v323_v61 = vpop.f32.mrb[9].mxu0 }
 0x127   :  { %v324_v62 = vadd.f32 %v323_v61, %v10474_v31  ;;  %v325_v63 = vpop.f32.mrb[10].mxu0 }
 0x128   :  { %v351_v0 = vadd.f32 %v350_v57, %v322_v60  ;;  %v326_v1 = vadd.f32 %v325_v63, %v10468_v28  ;;  %v327_v2 = vpop.f32.mrb[11].mxu0 }
 0x129   :  { %v365_v3 = vadd.f32 %v364_v58, %v324_v62  ;;  %v328_v4 = vadd.f32 %v327_v2, %v10474_v31 }
 0x12a   :  { %v352_v5 = vadd.f32 %v351_v0, %v326_v1 }
 0x12b   :  { %v366_v6 = vadd.f32 %v365_v3, %v328_v4 }
 0x12d   :  { %v331_v7 = vpop.f32.mrb[12].mxu0 }
 0x12e   :  { %v332_v8 = vadd.f32 %v331_v7, %v10468_v28  ;;  %v333_v9 = vpop.f32.mrb[13].mxu0 }
 0x12f   :  { %v334_v10 = vadd.f32 %v333_v9, %v10474_v31  ;;  %v335_v11 = vpop.f32.mrb[14].mxu0 }
 0x130   :  { %v353_v12 = vadd.f32 %v352_v5, %v332_v8  ;;  %v336_v13 = vadd.f32 %v335_v11, %v10468_v28  ;;  %v337_v14 = vpop.f32.mrb[15].mxu0 }
 0x131   :  { %v367_v15 = vadd.f32 %v366_v6, %v334_v10  ;;  %v338_v17 = vadd.f32 %v337_v14, %v10474_v31 }
 0x132   :  { %v354_v18 = vadd.f32 %v353_v12, %v336_v13 }
 0x133   :  { %v368_v19 = vadd.f32 %v367_v15, %v338_v17 }
 0x135   :  { %v341_v20 = vpop.f32.mrb[16].mxu0 }
 0x136   :  { %v342_v21 = vadd.f32 %v341_v20, %v10468_v28  ;;  %v343_v23 = vpop.f32.mrb[17].mxu0 }
 0x137   :  { %v344_v25 = vadd.f32 %v343_v23, %v10474_v31  ;;  %v345_v26 = vpop.f32.mrb[18].mxu0 }
 0x138   :  { %v355_v27 = vadd.f32 %v354_v18, %v342_v21  ;;  %v346_v29 = vpop.f32.mrb[19].mxu0 }
 0x139   :  { %v369_v30 = vadd.f32 %v368_v19, %v344_v25 }
 0x13a   :  { %v356_v32 = vrot.slane %v355_v27, 4 }
 0x13b   :  { %v370_v33 = vrot.slane %v369_v30, 4 }
 0x13c   :  { %v357_v34 = vadd.f32 %v356_v32, %v355_v27 }
 0x13d   :  { %v371_v35 = vadd.f32 %v370_v33, %v369_v30 }
 0x13e   :  { %v358_v36 = vrot.slane %v357_v34, 2 }
 0x13f   :  { %v372_v39 = vrot.slane %v371_v35, 2 }
 0x140   :  { %v359_v40 = vadd.f32 %v358_v36, %v357_v34 }
 0x141   :  { %v373_v43 = vadd.f32 %v372_v39, %v371_v35 }
 0x142   :  { %v360_v44 = vrot.slane %v359_v40, 1 }
 0x143   :  { %v374_v45 = vrot.slane %v373_v43, 1 }
 0x144   :  { %v361_v46 = vadd.f32 %v360_v44, %v359_v40 }
 0x145   :  { %v375_v47 = vadd.f32 %v374_v45, %v373_v43 }
 0x146   :  { %v377_v28 = vmul.f32 0.013888889, %v361_v46 }
 0x147   :  { %v378_v49 = vmul.f32 0.013888889, %v375_v47 }
 0x148   :  { %v10531_v31 = vsub.f32 %v10486_v37, %v377_v28  ;;  %v10534_v51 = vsub.f32 %v10489_v38, %v377_v28  ;;  %v10536_v52 = vsub.f32 %v312_v48, %v377_v28  ;;  %v10538_v54 = vsub.f32 %v316_v53, %v377_v28 }
 0x149   :  { %v10540_v55 = vsub.f32 %v322_v60, %v377_v28  ;;  %v10542_v57 = vsub.f32 %v326_v1, %v377_v28  ;;  %v10544_v58 = vsub.f32 %v332_v8, %v377_v28  ;;  %v10546_v59 = vsub.f32 %v336_v13, %v377_v28 }
 0x14a   :  { %v10548_v61 = vsub.f32 %v342_v21, %v377_v28  ;;  %v397_v37 = vmul.f32 %v10531_v31, %v10531_v31  ;;  %v399_v38 = vmul.f32 %v10534_v51, %v10534_v51  ;;  %v401_v48 = vmul.f32 %v10536_v52, %v10536_v52 }
 0x14b   :  { %v403_v53 = vmul.f32 %v10538_v54, %v10538_v54  ;;  %v10559_v63 = vsub.f32 %v10495_v41, %v378_v49  ;;  %v10562_v0 = vsub.f32 %v10498_v42, %v378_v49  ;;  %v10565_v1 = vsub.f32 %v10512_v50, %v378_v49 }
 0x14c   :  { %v415_v60 = vadd.f32 %v399_v38, %v397_v37  ;;  %v10568_v2 = vsub.f32 %v10517_v56, %v378_v49  ;;  %v10570_v3 = vsub.f32 %v324_v62, %v378_v49  ;;  %v10572_v6 = vsub.f32 %v328_v4, %v378_v49 }
 0x14d   :  { %v10574_v7 = vsub.f32 %v334_v10, %v378_v49  ;;  %v10576_v8 = vsub.f32 %v338_v17, %v378_v49  ;;  %v10578_v41 = vsub.f32 %v344_v25, %v378_v49  ;;  %v398_v42 = vmul.f32 %v10559_v63, %v10559_v63 }
 0x14e   :  { %v416_v5 = vadd.f32 %v415_v60, %v401_v48  ;;  %v400_v50 = vmul.f32 %v10562_v0, %v10562_v0  ;;  %v405_v56 = vmul.f32 %v10540_v55, %v10540_v55  ;;  %v402_v4 = vmul.f32 %v10565_v1, %v10565_v1 }
 0x14f   :  { %v407_v10 = vmul.f32 %v10542_v57, %v10542_v57  ;;  %v404_v12 = vmul.f32 %v10568_v2, %v10568_v2  ;;  %v409_v14 = vmul.f32 %v10544_v58, %v10544_v58  ;;  %v406_v17 = vmul.f32 %v10570_v3, %v10570_v3 }
 0x150   :  { %v417_v62 = vadd.f32 %v416_v5, %v403_v53  ;;  %v429_v9 = vadd.f32 %v400_v50, %v398_v42  ;;  %v411_v19 = vmul.f32 %v10546_v59, %v10546_v59  ;;  %v408_v21 = vmul.f32 %v10572_v6, %v10572_v6 }
 0x151   :  { %v413_v25 = vmul.f32 %v10548_v61, %v10548_v61  ;;  %v410_v27 = vmul.f32 %v10574_v7, %v10574_v7  ;;  %v412_v32 = vmul.f32 %v10576_v8, %v10576_v8  ;;  %v414_v35 = vmul.f32 %v10578_v41, %v10578_v41 }
 0x152   :  { %v418_v11 = vadd.f32 %v417_v62, %v405_v56  ;;  %v430_v13 = vadd.f32 %v429_v9, %v402_v4  ;;  %v10174_v50 = vmov 1966171168  }
 0x153   :  { %v454_v56 = vunpack.c.l.s4 %v10174_v50 }
 0x154   :  { %v419_v15 = vadd.f32 %v418_v11, %v407_v10  ;;  %v431_v18 = vadd.f32 %v430_v13, %v404_v12  ;;  %v445_v13 = vld [vmem:[%s12361_s3] sm:$0x3] }
 0x155   :  { %v455_v62 = vunpack.c.0.s8 %v454_v56 }
 0x156   :  { %v420_v20 = vadd.f32 %v419_v15, %v409_v14  ;;  %v432_v23 = vadd.f32 %v431_v18, %v406_v17  ;;  %v498_v15 = vld [vmem:[%s12362_s4] sm:$0x3] }
 0x157   :  { %v458_v9 = vsub.s32 %v455_v62, %v10432_v16  ;;  %v10621_v16 = vrot.slane %v498_v15, %v10450_v22 }
 0x158   :  { %v421_v26 = vadd.f32 %v420_v20, %v411_v19  ;;  %v433_v29 = vadd.f32 %v432_v23, %v408_v21  ;;  %v507_v19 = vrot.slane %v498_v15, %v10456_v24 }
 0x15a   :  { %v422_v30 = vadd.f32 %v421_v26, %v413_v25  ;;  %v434_v33 = vadd.f32 %v433_v29, %v410_v27 }
 0x15c   :  { %v423_v34 = vrot.slane %v422_v30, 4  ;;  %v435_v36 = vadd.f32 %v434_v33, %v412_v32 }
 0x15e   :  { %v424_v39 = vadd.f32 %v423_v34, %v422_v30  ;;  %v436_v40 = vadd.f32 %v435_v36, %v414_v35 }
 0x160   :  { %v425_v43 = vrot.slane %v424_v39, 2  ;;  %v437_v44 = vrot.slane %v436_v40, 4 }
 0x162   :  { %v426_v45 = vadd.f32 %v425_v43, %v424_v39  ;;  %v438_v46 = vadd.f32 %v437_v44, %v436_v40 }
 0x164   :  { %v427_v47 = vrot.slane %v426_v45, 1  ;;  %v439_v28 = vrot.slane %v438_v46, 2 }
 0x166   :  { %v428_v49 = vadd.f32 %v427_v47, %v426_v45  ;;  %v440_v37 = vadd.f32 %v439_v28, %v438_v46 }
 0x168   :  { %v443_v38 = vmul.f32 0.013888889, %v428_v49  ;;  %v441_v48 = vrot.slane %v440_v37, 1 }
 0x16a   :  { %v446_v53 = vadd.f32 1e-05, %v443_v38  ;;  %v442_v60 = vadd.f32 %v441_v48, %v440_v37 }
 0x16c   :  { %v444_v5 = vmul.f32 0.013888889, %v442_v60  ;;  %10170 = vrsqrt.f32 %v446_v53 }
 0x16e   :  { %v447_v42 = vadd.f32 1e-05, %v444_v5 }
 0x170   :  { %10172 = vrsqrt.f32 %v447_v42 }
 0x176   :  { %v10171_v4 = vpop.eup %10170 }
 0x17a   :  { %v10173_v10 = vpop.eup %10172 }
 0x17b   :  { %v452_v11 = vcombine.low %v10171_v4, %v10173_v10 }
 0x17d   :  { %v459_v12 = vrot.slane %v452_v11, %v458_v9  ;;  %v9628_v11 = vld [vmem:[%s12359_s5] sm:$0xff]  }
 0x17f   :  { %v466_v14 = vrot.slane %v459_v12, %v458_v9 }
 0x181   :  { %v468_v17 = vmul.f32 %v466_v14, %v445_v13  ;;  %v9629_v14 = vld [vmem:[%s12359_s5 + $0x280] sm:$0xff]  }
 0x183   :  { %v477_v18 = vrot.slane %v468_v17, %v10456_v24  ;;  %v10618_v20 = vrot.slane %v468_v17, %v10450_v22 }
 0x185   :  { %v481_v21 = vmul.f32 %v477_v18, %v10559_v63  ;;  %v483_v23 = vmul.f32 %v477_v18, %v10562_v0  ;;  %v485_v25 = vmul.f32 %v477_v18, %v10565_v1  ;;  %v487_v26 = vmul.f32 %v477_v18, %v10568_v2 }
 0x186   :  { %v489_v27 = vmul.f32 %v477_v18, %v10570_v3  ;;  %v491_v29 = vmul.f32 %v477_v18, %v10572_v6  ;;  %v493_v24 = vmul.f32 %v477_v18, %v10574_v7  ;;  %v495_v30 = vmul.f32 %v477_v18, %v10576_v8 }
 0x187   :  { %v497_v32 = vmul.f32 %v477_v18, %v10578_v41  ;;  %v511_v22 = vadd.f32 %v507_v19, %v481_v21  ;;  %v513_v33 = vadd.f32 %v507_v19, %v483_v23  ;;  %v515_v34 = vadd.f32 %v507_v19, %v485_v25  ;;  %v9631_v21 = vld [vmem:[%s12359_s5 + $0x2c8] sm:$0xff]  }
 0x188   :  { %v517_v63 = vadd.f32 %v507_v19, %v487_v26  ;;  %v519_v35 = vadd.f32 %v507_v19, %v489_v27  ;;  %v521_v0 = vadd.f32 %v507_v19, %v491_v29  ;;  %v523_v36 = vadd.f32 %v507_v19, %v493_v24  ;;  %v9632_v23 = vld [vmem:[%s12359_s5 + $0x8] sm:$0xff]   ;;  %v9634_v29 = vld [vmem:[%s12359_s5 + $0x50] sm:$0xff]  }
 0x189   :  { %v525_v1 = vadd.f32 %v507_v19, %v495_v30  ;;  %v527_v39 = vadd.f32 %v507_v19, %v497_v32  ;;  %v529_v2 = vmax.f32 %v511_v22, 0.0  ;;  %v531_v40 = vmax.f32 %v513_v33, 0.0  ;;  %v9633_v27 = vld [vmem:[%s12359_s5 + $0x288] sm:$0xff]   ;;  %v9635_v30 = vld [vmem:[%s12359_s5 + $0x2d0] sm:$0xff]  }
 0x18a   :  { %v533_v3 = vmax.f32 %v515_v34, 0.0  ;;  %v535_v43 = vmax.f32 %v517_v63, 0.0  ;;  %v537_v6 = vmax.f32 %v519_v35, 0.0  ;;  %v539_v44 = vmax.f32 %v521_v0, 0.0  ;;  %v9636_v22 = vld [vmem:[%s12359_s5 + $0x10] sm:$0xff]   ;;  %v9638_v34 = vld [vmem:[%s12359_s5 + $0x58] sm:$0xff]  }
 0x18b   :  { %v541_v7 = vmax.f32 %v523_v36, 0.0  ;;  %v543_v45 = vmax.f32 %v525_v1, 0.0  ;;  %v545_v8 = vmax.f32 %v527_v39, 0.0  ;;  %547 = vst [vmem:[#allocation2 + $0x8] sm:$0xff] %v529_v2  ;;  %549 = vst [vmem:[#allocation2 + $0x18] sm:$0xff] %v531_v40  ;;  %v480_v41 = vmul.f32 %v10618_v20, %v10531_v31  ;;  %v9637_v33 = vld [vmem:[%s12359_s5 + $0x290] sm:$0xff]  }
 0x18c   :  { %551 = vst [vmem:[#allocation2 + $0x28] sm:$0xff] %v533_v3  ;;  %553 = vst [vmem:[#allocation2 + $0x38] sm:$0xff] %v535_v43  ;;  %v482_v46 = vmul.f32 %v10618_v20, %v10534_v51  ;;  %v484_v47 = vmul.f32 %v10618_v20, %v10536_v52  ;;  %v486_v56 = vmul.f32 %v10618_v20, %v10538_v54  ;;  %v9630_v54 = vld [vmem:[%s12359_s5 + $0x48] sm:$0xff]   ;;  %v9639_v63 = vld [vmem:[%s12359_s5 + $0x2d8] sm:$0xff]  }
 0x18d   :  { %555 = vst [vmem:[#allocation2 + $0x48] sm:$0xff] %v537_v6  ;;  %557 = vst [vmem:[#allocation2 + $0x58] sm:$0xff] %v539_v44  ;;  %v510_v28 = vadd.f32 %v10621_v16, %v480_v41  ;;  %v488_v62 = vmul.f32 %v10618_v20, %v10540_v55  ;;  %v9640_v35 = vld [vmem:[%s12359_s5 + $0x18] sm:$0xff]   ;;  %v9642_v36 = vld [vmem:[%s12359_s5 + $0x60] sm:$0xff]  }
 0x18e   :  { %559 = vst [vmem:[#allocation2 + $0x68] sm:$0xff] %v541_v7  ;;  %561 = vst [vmem:[#allocation2 + $0x78] sm:$0xff] %v543_v45  ;;  %v512_v49 = vadd.f32 %v10621_v16, %v482_v46  ;;  %v514_v37 = vadd.f32 %v10621_v16, %v484_v47  ;;  %v516_v55 = vadd.f32 %v10621_v16, %v486_v56  ;;  %v9641_v0 = vld [vmem:[%s12359_s5 + $0x298] sm:$0xff]   ;;  %v9643_v1 = vld [vmem:[%s12359_s5 + $0x2e0] sm:$0xff]  }
 0x18f   :  { %563 = vst [vmem:[#allocation2 + $0x88] sm:$0xff] %v545_v8  ;;  %v528_v31 = vmax.f32 %v510_v28, 0.0  ;;  %v518_v19 = vadd.f32 %v10621_v16, %v488_v62  ;;  %v9644_v39 = vld [vmem:[%s12359_s5 + $0x20] sm:$0xff]   ;;  %v9646_v40 = vld [vmem:[%s12359_s5 + $0x68] sm:$0xff]   ;;  %v9650_v44 = vld [vmem:[%s12359_s5 + $0x70] sm:$0xff]  }
 0x190   :  { %v530_v38 = vmax.f32 %v512_v49, 0.0  ;;  %v532_v48 = vmax.f32 %v514_v37, 0.0  ;;  %v534_v24 = vmax.f32 %v516_v55, 0.0  ;;  %v9645_v2 = vld [vmem:[%s12359_s5 + $0x2a0] sm:$0xff]   ;;  %v9647_v3 = vld [vmem:[%s12359_s5 + $0x2e8] sm:$0xff]   ;;  %v9651_v7 = vld [vmem:[%s12359_s5 + $0x2f0] sm:$0xff]  }
 0x191   :  { %546 = vst [vmem:[#allocation2] sm:$0xff] %v528_v31  ;;  %v536_v32 = vmax.f32 %v518_v19, 0.0  ;;  %v9648_v43 = vld [vmem:[%s12359_s5 + $0x28] sm:$0xff]   ;;  %v9652_v45 = vld [vmem:[%s12359_s5 + $0x30] sm:$0xff]   ;;  %v9654_v41 = vld [vmem:[%s12359_s5 + $0x78] sm:$0xff]  }
 0x192   :  { %v601_v53 = vld [vmem:[#allocation2 + $0x8] sm:$0xc]  ;;  %v1096_v60 = vld [vmem:[#allocation2 + $0x8] sm:$0xc0]  ;;  %548 = vst [vmem:[#allocation2 + $0x10] sm:$0xff] %v530_v38  ;;  %550 = vst [vmem:[#allocation2 + $0x20] sm:$0xff] %v532_v48 }
 0x193   :  { %v603_v51 = vpack.c.bf16 %v601_v53, %v601_v53  ;;  %v1098_v5 = vpack.c.bf16 %v1096_v60, %v1096_v60  ;;  %v1450_v50 = vld [vmem:[#allocation2 + $0x18] sm:$0xc]  ;;  %v565_v15 = vld [vmem:[#allocation2 + $0x8] sm:$0x3]  ;;  %552 = vst [vmem:[#allocation2 + $0x30] sm:$0xff] %v534_v24  ;;  %554 = vst [vmem:[#allocation2 + $0x40] sm:$0xff] %v536_v32 }
 0x194   :  { %v1452_v13 = vpack.c.bf16 %v1450_v50, %v1450_v50  ;;  %v567_v25 = vpack.c.bf16 %v565_v15, %v565_v15  ;;  %v9649_v6 = vld [vmem:[%s12359_s5 + $0x2a8] sm:$0xff]   ;;  %v9653_v8 = vld [vmem:[%s12359_s5 + $0x2b0] sm:$0xff]   ;;  %v9655_v46 = vld [vmem:[%s12359_s5 + $0x2f8] sm:$0xff]  }
 0x195   :  { %v640_v52 = vrot.slane %v603_v51, 1  ;;  %v1135_v42 = vrot.slane %v1098_v5, 3  ;;  %v9656_v47 = vld [vmem:[%s12359_s5 + $0x38] sm:$0xff]   ;;  %v9658_v37 = vld [vmem:[%s12359_s5 + $0x140] sm:$0xff]   ;;  %v916_v31 = vld [vmem:[#allocation2 + $0x8] sm:$0x30] }
 0x196   :  { %v1489_v26 = vrot.slane %v1452_v13, 1  ;;  %v9657_v28 = vld [vmem:[%s12359_s5 + $0x2b8] sm:$0xff]   ;;  %v9659_v53 = vld [vmem:[%s12359_s5 + $0x3c0] sm:$0xff]   ;;  %v918_v51 = vpack.c.bf16 %v916_v31, %v916_v31  ;;  %v9662_v62 = vld [vmem:[%s12359_s5 + $0x148] sm:$0xff]   ;;  %v490_v13 = vmul.f32 %v10618_v20, %v10542_v57 }
 0x197   :  { %771 = vmatprep.mubr.bf16.mxu1 %v640_v52  ;;  %1266 = vmatprep.mubr.bf16.mxu0 %v1135_v42  ;;  %v1810_v38 = vld [vmem:[#allocation2 + $0x18] sm:$0xc0]  ;;  %v9660_v5 = vld [vmem:[%s12359_s5 + $0x100] sm:$0xff]   ;;  %v9667_v15 = vld [vmem:[%s12359_s5 + $0x3d0] sm:$0xff]  }
 0x198   :  { %v600_v4 = vld [vmem:[#allocation2] sm:$0xc]  ;;  %v1095_v9 = vld [vmem:[#allocation2] sm:$0xc0]  ;;  %v564_v60 = vld [vmem:[#allocation2] sm:$0x3]  ;;  %v1812_v52 = vpack.c.bf16 %v1810_v38, %v1810_v38 }
 0x199   :  { %v602_v10 = vpack.c.bf16 %v600_v4, %v600_v4  ;;  %v1097_v12 = vpack.c.bf16 %v1095_v9, %v1095_v9  ;;  %v1449_v49 = vld [vmem:[#allocation2 + $0x10] sm:$0xc]  ;;  %v9661_v42 = vld [vmem:[%s12359_s5 + $0x380] sm:$0xff]   ;;  %v566_v50 = vpack.c.bf16 %v564_v60, %v564_v60  ;;  %v955_v4 = vrot.slane %v918_v51, 2  ;;  %v9663_v9 = vld [vmem:[%s12359_s5 + $0x3c8] sm:$0xff]  }
 0x19a   :  { %v1451_v48 = vpack.c.bf16 %v1449_v49, %v1449_v49  ;;  %v9668_v55 = vld [vmem:[%s12359_s5 + $0x110] sm:$0xff]   ;;  %v9671_v19 = vld [vmem:[%s12359_s5 + $0x3d8] sm:$0xff]   ;;  %v9678_v24 = vld [vmem:[%s12359_s5 + $0x168] sm:$0xff]  }
 0x19b   :  { %v639_v17 = vrot.slane %v602_v10, 1  ;;  %v1134_v18 = vrot.slane %v1097_v12, 3  ;;  %v1849_v10 = vrot.slane %v1812_v52, 3  ;;  %v9665_v12 = vld [vmem:[%s12359_s5 + $0x388] sm:$0xff]   ;;  %v9669_v57 = vld [vmem:[%s12359_s5 + $0x390] sm:$0xff]  }
 0x19c   :  { %v1488_v56 = vrot.slane %v1451_v48, 1  ;;  %v9680_v32 = vld [vmem:[%s12359_s5 + $0x128] sm:$0xff]   ;;  %v9698_v60 = vld [vmem:[%s12359_s5 + $0x250] sm:$0xff]  }
 0x19d   :  { %772 = vmatmul.mubr.bf16.vlgmr.msra.gmra.mrb[0].mxu1 %v639_v17  ;;  %1267 = vmatmul.mubr.bf16.vlgmr.msra.gmra.mrb[20].mxu0 %v1134_v18  ;;  %v9670_v18 = vld [vmem:[%s12359_s5 + $0x158] sm:$0xff]   ;;  %v9696_v38 = vld [vmem:[%s12359_s5 + $0x208] sm:$0xff]   ;;  %v9699_v51 = vld [vmem:[%s12359_s5 + $0x4d0] sm:$0xff]  }
 0x19e   :  { %8776 = vmatpush3.bf16.msra.mxu1 %v9628_v11  ;;  %8864 = vmatpush3.bf16.msra.mxu0 %v9629_v14  ;;  %v9664_v11 = vld [vmem:[%s12359_s5 + $0x108] sm:$0xff]   ;;  %v9666_v14 = vld [vmem:[%s12359_s5 + $0x150] sm:$0xff]  }
 0x19f   :  { %907 = vmatprep.mubr.bf16.mxu1 %v567_v25  ;;  %1620 = vmatprep.mubr.bf16.mxu0 %v1489_v26  ;;  %v9674_v25 = vld [vmem:[%s12359_s5 + $0x160] sm:$0xff]   ;;  %v9701_v52 = vld [vmem:[%s12359_s5 + $0x490] sm:$0xff]  }
 0x1a0   :  { %8777 = vmatprep.subr.bf16.mxu1 %v9630_v54  ;;  %8865 = vmatprep.subr.bf16.mxu0 %v9631_v21  ;;  %v520_v54 = vadd.f32 %v10621_v16, %v490_v13  ;;  %v9672_v21 = vld [vmem:[%s12359_s5 + $0x118] sm:$0xff]   ;;  %v9675_v26 = vld [vmem:[%s12359_s5 + $0x3e0] sm:$0xff]   ;;  %v9711_v13 = vld [vmem:[%s12359_s5 + $0x4e8] sm:$0xff]  }
 0x1a2   :  { %8778 = vmatpush3.bf16.msra.mxu1 %v9632_v23  ;;  %8866 = vmatpush3.bf16.msra.mxu0 %v9633_v27  ;;  %v538_v17 = vmax.f32 %v520_v54, 0.0  ;;  %v9673_v23 = vld [vmem:[%s12359_s5 + $0x398] sm:$0xff]   ;;  %v9676_v27 = vld [vmem:[%s12359_s5 + $0x120] sm:$0xff]   ;;  %v9714_v54 = vld [vmem:[%s12359_s5 + $0x270] sm:$0xff]  }
 0x1a3   :  { %8779 = vmatprep.subr.bf16.mxu1 %v9634_v29  ;;  %8867 = vmatprep.subr.bf16.mxu0 %v9635_v30  ;;  %v9677_v29 = vld [vmem:[%s12359_s5 + $0x3a0] sm:$0xff]   ;;  %v9679_v30 = vld [vmem:[%s12359_s5 + $0x3e8] sm:$0xff]  }
 0x1a4   :  { %556 = vst [vmem:[#allocation2 + $0x50] sm:$0xff] %v538_v17  ;;  %v9717_v17 = vld [vmem:[%s12359_s5 + $0x4b0] sm:$0xff]  }
 0x1a6   :  { %8780 = vmatpush3.bf16.msra.mxu1 %v9636_v22  ;;  %8868 = vmatpush3.bf16.msra.mxu0 %v9637_v33  ;;  %v9681_v22 = vld [vmem:[%s12359_s5 + $0x3a8] sm:$0xff]   ;;  %v9682_v33 = vld [vmem:[%s12359_s5 + $0x170] sm:$0xff]  }
 0x1a7   :  { %8781 = vmatprep.subr.bf16.mxu1 %v9638_v34  ;;  %8869 = vmatprep.subr.bf16.mxu0 %v9639_v63  ;;  %v9683_v34 = vld [vmem:[%s12359_s5 + $0x3f0] sm:$0xff]  }
 0x1a8   :  { %v9684_v63 = vld [vmem:[%s12359_s5 + $0x130] sm:$0xff]  }
 0x1aa   :  { %8782 = vmatpush3.bf16.msra.mxu1 %v9640_v35  ;;  %8870 = vmatpush3.bf16.msra.mxu0 %v9641_v0  ;;  %v9685_v35 = vld [vmem:[%s12359_s5 + $0x3b0] sm:$0xff]   ;;  %v9686_v0 = vld [vmem:[%s12359_s5 + $0x178] sm:$0xff]  }
 0x1ab   :  { %8783 = vmatprep.subr.bf16.mxu1 %v9642_v36  ;;  %8871 = vmatprep.subr.bf16.mxu0 %v9643_v1  ;;  %v9687_v36 = vld [vmem:[%s12359_s5 + $0x3f8] sm:$0xff]  }
 0x1ac   :  { %v9688_v1 = vld [vmem:[%s12359_s5 + $0x138] sm:$0xff]  }
 0x1ae   :  { %8784 = vmatpush3.bf16.msra.mxu1 %v9644_v39  ;;  %8872 = vmatpush3.bf16.msra.mxu0 %v9645_v2  ;;  %v915_v39 = vld [vmem:[#allocation2] sm:$0x30]  ;;  %v9689_v2 = vld [vmem:[%s12359_s5 + $0x3b8] sm:$0xff]  }
 0x1af   :  { %8785 = vmatprep.subr.bf16.mxu1 %v9646_v40  ;;  %8873 = vmatprep.subr.bf16.mxu0 %v9647_v3  ;;  %v9690_v40 = vld [vmem:[%s12359_s5 + $0x240] sm:$0xff]   ;;  %v1809_v3 = vld [vmem:[#allocation2 + $0x10] sm:$0xc0] }
 0x1b2   :  { %8786 = vmatpush3.bf16.msra.mxu1 %v9648_v43  ;;  %8874 = vmatpush3.bf16.msra.mxu0 %v9649_v6  ;;  %v9691_v43 = vld [vmem:[%s12359_s5 + $0x4c0] sm:$0xff]   ;;  %v917_v6 = vpack.c.bf16 %v915_v39, %v915_v39 }
 0x1b3   :  { %8787 = vmatprep.subr.bf16.mxu1 %v9650_v44  ;;  %8875 = vmatprep.subr.bf16.mxu0 %v9651_v7  ;;  %v2164_v44 = vld [vmem:[#allocation2 + $0x28] sm:$0xc]  ;;  %v1811_v7 = vpack.c.bf16 %v1809_v3, %v1809_v3 }
 0x1b4   :  { %v9729_v3 = vld [vmem:[%s12359_s5 + $0x588] sm:$0xff]  }
 0x1b5   :  { %v1848_v49 = vrot.slane %v1811_v7, 3  ;;  %v492_v7 = vmul.f32 %v10618_v20, %v10544_v58  ;;  %v9736_v58 = vld [vmem:[%s12359_s5 + $0x318] sm:$0xff]  }
 0x1b6   :  { %8788 = vmatpush3.bf16.msra.mxu1 %v9652_v45  ;;  %8876 = vmatpush3.bf16.msra.mxu0 %v9653_v8  ;;  %v9692_v45 = vld [vmem:[%s12359_s5 + $0x200] sm:$0xff]  }
 0x1b7   :  { %8789 = vmatprep.subr.bf16.mxu1 %v9654_v41  ;;  %8877 = vmatprep.subr.bf16.mxu0 %v9655_v46  ;;  %v9693_v8 = vld [vmem:[%s12359_s5 + $0x480] sm:$0xff]   ;;  %v1276_v41 = vld [vmem:[#allocation2 + $0x18] sm:$0x3]  ;;  %v2166_v46 = vpack.c.bf16 %v2164_v44, %v2164_v44  ;;  %v9732_v44 = vld [vmem:[%s12359_s5 + $0x310] sm:$0xff]  }
 0x1b8   :  { %v1278_v31 = vpack.c.bf16 %v1276_v41, %v1276_v41  ;;  %v522_v41 = vadd.f32 %v10621_v16, %v492_v7  ;;  %v9779_v7 = vld [vmem:[%s12359_s5 + $0x6f0] sm:$0xff]  }
 0x1b9   :  { %v2203_v48 = vrot.slane %v2166_v46, 1  ;;  %v9735_v46 = vld [vmem:[%s12359_s5 + $0x5d8] sm:$0xff]  }
 0x1ba   :  { %8790 = vmatpush3.bf16.msra.mxu1 %v9656_v47  ;;  %8878 = vmatpush3.bf16.msra.mxu0 %v9657_v28  ;;  %v954_v47 = vrot.slane %v917_v6, 2  ;;  %v9694_v28 = vld [vmem:[%s12359_s5 + $0x248] sm:$0xff]   ;;  %v9731_v6 = vld [vmem:[%s12359_s5 + $0x5d0] sm:$0xff]  }
 0x1bb   :  { %8797 = vmatprep.subr.bf16.mxu1 %v9658_v37  ;;  %8907 = vmatprep.subr.bf16.mxu0 %v9659_v53  ;;  %v9695_v37 = vld [vmem:[%s12359_s5 + $0x4c8] sm:$0xff]  }
 0x1bc   :  { %v9697_v53 = vld [vmem:[%s12359_s5 + $0x488] sm:$0xff]  }
 0x1bd   :  { %908 = vmatmul.mubr.bf16.vlgmr.msra.gmra.mrb[4].mxu1 %v566_v50  ;;  %1621 = vmatmul.mubr.bf16.vlgmr.msra.gmra.mrb[24].mxu0 %v1488_v56  ;;  %v9703_v50 = vld [vmem:[%s12359_s5 + $0x4d8] sm:$0xff]  }
 0x1be   :  { %8798 = vmatpush3.bf16.msra.mxu1 %v9660_v5  ;;  %1086 = vmatprep.mubr.bf16.mxu1 %v955_v4  ;;  %v9700_v5 = vld [vmem:[%s12359_s5 + $0x210] sm:$0xff]   ;;  %v9704_v56 = vld [vmem:[%s12359_s5 + $0x218] sm:$0xff]   ;;  %v9706_v4 = vld [vmem:[%s12359_s5 + $0x260] sm:$0xff]  }
 0x1bf   :  { %8908 = vmatpush3.bf16.msra.mxu0 %v9661_v42  ;;  %1980 = vmatprep.mubr.bf16.mxu0 %v1849_v10  ;;  %v9702_v42 = vld [vmem:[%s12359_s5 + $0x258] sm:$0xff]   ;;  %v9708_v10 = vld [vmem:[%s12359_s5 + $0x220] sm:$0xff]  }
 0x1c0   :  { %8799 = vmatprep.subr.bf16.mxu1 %v9662_v62  ;;  %8909 = vmatprep.subr.bf16.mxu0 %v9663_v9  ;;  %v9705_v62 = vld [vmem:[%s12359_s5 + $0x498] sm:$0xff]   ;;  %v9707_v9 = vld [vmem:[%s12359_s5 + $0x4e0] sm:$0xff]  }
 0x1c2   :  { %8800 = vmatpush3.bf16.msra.mxu1 %v9664_v11  ;;  %v9709_v11 = vld [vmem:[%s12359_s5 + $0x4a0] sm:$0xff]  }
 0x1c3   :  { %8910 = vmatpush3.bf16.msra.mxu0 %v9665_v12  ;;  %8801 = vmatprep.subr.bf16.mxu1 %v9666_v14  ;;  %v9710_v12 = vld [vmem:[%s12359_s5 + $0x268] sm:$0xff]  }
 0x1c4   :  { %8911 = vmatprep.subr.bf16.mxu0 %v9667_v15  ;;  %v9712_v14 = vld [vmem:[%s12359_s5 + $0x228] sm:$0xff]  }
 0x1c5   :  { %v9713_v15 = vld [vmem:[%s12359_s5 + $0x4a8] sm:$0xff]  }
 0x1c6   :  { %8802 = vmatpush3.bf16.msra.mxu1 %v9668_v55  ;;  %v9715_v55 = vld [vmem:[%s12359_s5 + $0x4f0] sm:$0xff]  }
 0x1c7   :  { %8912 = vmatpush3.bf16.msra.mxu0 %v9669_v57  ;;  %8803 = vmatprep.subr.bf16.mxu1 %v9670_v18  ;;  %v9716_v57 = vld [vmem:[%s12359_s5 + $0x230] sm:$0xff]   ;;  %v9718_v18 = vld [vmem:[%s12359_s5 + $0x278] sm:$0xff]  }
 0x1c8   :  { %8913 = vmatprep.subr.bf16.mxu0 %v9671_v19  ;;  %v9719_v19 = vld [vmem:[%s12359_s5 + $0x4f8] sm:$0xff]  }
 0x1ca   :  { %8804 = vmatpush3.bf16.msra.mxu1 %v9672_v21  ;;  %v9720_v21 = vld [vmem:[%s12359_s5 + $0x238] sm:$0xff]  }
 0x1cb   :  { %8914 = vmatpush3.bf16.msra.mxu0 %v9673_v23  ;;  %8805 = vmatprep.subr.bf16.mxu1 %v9674_v25  ;;  %v9721_v23 = vld [vmem:[%s12359_s5 + $0x4b8] sm:$0xff]   ;;  %v9722_v25 = vld [vmem:[%s12359_s5 + $0x340] sm:$0xff]  }
 0x1cc   :  { %8915 = vmatprep.subr.bf16.mxu0 %v9675_v26  ;;  %v2163_v26 = vld [vmem:[#allocation2 + $0x20] sm:$0xc] }
 0x1ce   :  { %8806 = vmatpush3.bf16.msra.mxu1 %v9676_v27  ;;  %v9723_v27 = vld [vmem:[%s12359_s5 + $0x5c0] sm:$0xff]  }
 0x1cf   :  { %8916 = vmatpush3.bf16.msra.mxu0 %v9677_v29  ;;  %8807 = vmatprep.subr.bf16.mxu1 %v9678_v24  ;;  %v1630_v29 = vld [vmem:[#allocation2 + $0x18] sm:$0x30]  ;;  %v2524_v24 = vld [vmem:[#allocation2 + $0x28] sm:$0xc0] }
 0x1d0   :  { %8917 = vmatprep.subr.bf16.mxu0 %v9679_v30  ;;  %v1275_v30 = vld [vmem:[#allocation2 + $0x10] sm:$0x3] }
 0x1d2   :  { %8808 = vmatpush3.bf16.msra.mxu1 %v9680_v32  ;;  %v2165_v32 = vpack.c.bf16 %v2163_v26, %v2163_v26 }
 0x1d3   :  { %8918 = vmatpush3.bf16.msra.mxu0 %v9681_v22  ;;  %8809 = vmatprep.subr.bf16.mxu1 %v9682_v33  ;;  %v9724_v22 = vld [vmem:[%s12359_s5 + $0x300] sm:$0xff]   ;;  %v1632_v33 = vpack.c.bf16 %v1630_v29, %v1630_v29 }
 0x1d4   :  { %8919 = vmatprep.subr.bf16.mxu0 %v9683_v34  ;;  %v9725_v34 = vld [vmem:[%s12359_s5 + $0x580] sm:$0xff]  }
 0x1d5   :  { %v1669_v39 = vrot.slane %v1632_v33, 2  ;;  %v9765_v33 = vld [vmem:[%s12359_s5 + $0x690] sm:$0xff]  }
 0x1d6   :  { %8810 = vmatpush3.bf16.msra.mxu1 %v9684_v63  ;;  %v2526_v63 = vpack.c.bf16 %v2524_v24, %v2524_v24  ;;  %v9761_v24 = vld [vmem:[%s12359_s5 + $0x688] sm:$0xff]  }
 0x1d7   :  { %8920 = vmatpush3.bf16.msra.mxu0 %v9685_v35  ;;  %8811 = vmatprep.subr.bf16.mxu1 %v9686_v0  ;;  %v1277_v35 = vpack.c.bf16 %v1275_v30, %v1275_v30  ;;  %v9726_v0 = vld [vmem:[%s12359_s5 + $0x348] sm:$0xff]   ;;  %v9762_v30 = vld [vmem:[%s12359_s5 + $0x450] sm:$0xff]  }
 0x1d8   :  { %8921 = vmatprep.subr.bf16.mxu0 %v9687_v36  ;;  %v2202_v36 = vrot.slane %v2165_v32, 1  ;;  %v9763_v32 = vld [vmem:[%s12359_s5 + $0x6d0] sm:$0xff]  }
 0x1da   :  { %8812 = vmatpush3.bf16.msra.mxu1 %v9688_v1  ;;  %v9727_v1 = vld [vmem:[%s12359_s5 + $0x5c8] sm:$0xff]  }
 0x1db   :  { %8922 = vmatpush3.bf16.msra.mxu0 %v9689_v2  ;;  %8841 = vmatprep.subr.bf16.mxu1 %v9690_v40  ;;  %v9728_v2 = vld [vmem:[%s12359_s5 + $0x308] sm:$0xff]   ;;  %v2563_v40 = vrot.slane %v2526_v63, 3  ;;  %v9767_v63 = vld [vmem:[%s12359_s5 + $0x6d8] sm:$0xff]  }
 0x1dc   :  { %8951 = vmatprep.subr.bf16.mxu0 %v9691_v43  ;;  %v9730_v43 = vld [vmem:[%s12359_s5 + $0x350] sm:$0xff]  }
 0x1dd   :  { %1087 = vmatmul.mubr.bf16.vlgmr.msra.gmra.mrb[8].mxu1 %v954_v47  ;;  %v540_v47 = vmax.f32 %v522_v41, 0.0  ;;  %v9782_v41 = vld [vmem:[%s12359_s5 + $0x478] sm:$0xff]  }
 0x1de   :  { %1981 = vmatmul.mubr.bf16.vlgmr.msra.gmra.mrb[28].mxu0 %v1848_v49  ;;  %8842 = vmatpush3.bf16.msra.mxu1 %v9692_v45  ;;  %v9733_v45 = vld [vmem:[%s12359_s5 + $0x590] sm:$0xff]   ;;  %v9738_v49 = vld [vmem:[%s12359_s5 + $0x360] sm:$0xff]  }
 0x1df   :  { %1440 = vmatprep.mubr.bf16.mxu1 %v1278_v31  ;;  %8952 = vmatpush3.bf16.msra.mxu0 %v9693_v8  ;;  %v9734_v8 = vld [vmem:[%s12359_s5 + $0x358] sm:$0xff]   ;;  %558 = vst [vmem:[#allocation2 + $0x60] sm:$0xff] %v540_v47  ;;  %v9740_v31 = vld [vmem:[%s12359_s5 + $0x320] sm:$0xff]  }
 0x1e0   :  { %2334 = vmatprep.mubr.bf16.mxu0 %v2203_v48  ;;  %8843 = vmatprep.subr.bf16.mxu1 %v9694_v28  ;;  %v9737_v28 = vld [vmem:[%s12359_s5 + $0x598] sm:$0xff]   ;;  %v9742_v48 = vld [vmem:[%s12359_s5 + $0x368] sm:$0xff]  }
 0x1e1   :  { %8953 = vmatprep.subr.bf16.mxu0 %v9695_v37  ;;  %v9739_v37 = vld [vmem:[%s12359_s5 + $0x5e0] sm:$0xff]   ;;  %v9785_v47 = vld [vmem:[%s12359_s5 + $0x6b8] sm:$0xff]  }
 0x1e2   :  { %8844 = vmatpush3.bf16.msra.mxu1 %v9696_v38  ;;  %v9741_v38 = vld [vmem:[%s12359_s5 + $0x5a0] sm:$0xff]  }
 0x1e3   :  { %8954 = vmatpush3.bf16.msra.mxu0 %v9697_v53  ;;  %8845 = vmatprep.subr.bf16.mxu1 %v9698_v60  ;;  %v9743_v53 = vld [vmem:[%s12359_s5 + $0x5e8] sm:$0xff]  }
 0x1e4   :  { %8955 = vmatprep.subr.bf16.mxu0 %v9699_v51  ;;  %v9744_v60 = vld [vmem:[%s12359_s5 + $0x328] sm:$0xff]  }
 0x1e5   :  { %v9745_v51 = vld [vmem:[%s12359_s5 + $0x5a8] sm:$0xff]  }
 0x1e6   :  { %8846 = vmatpush3.bf16.msra.mxu1 %v9700_v5  ;;  %v9746_v5 = vld [vmem:[%s12359_s5 + $0x370] sm:$0xff]  }
 0x1e7   :  { %8956 = vmatpush3.bf16.msra.mxu0 %v9701_v52  ;;  %8847 = vmatprep.subr.bf16.mxu1 %v9702_v42  ;;  %v9747_v52 = vld [vmem:[%s12359_s5 + $0x5f0] sm:$0xff]  }
 0x1e8   :  { %8957 = vmatprep.subr.bf16.mxu0 %v9703_v50  ;;  %v9748_v42 = vld [vmem:[%s12359_s5 + $0x330] sm:$0xff]  }
 0x1e9   :  { %v9749_v50 = vld [vmem:[%s12359_s5 + $0x5b0] sm:$0xff]  }
 0x1ea   :  { %8848 = vmatpush3.bf16.msra.mxu1 %v9704_v56  ;;  %v9750_v56 = vld [vmem:[%s12359_s5 + $0x378] sm:$0xff]  }
 0x1eb   :  { %8958 = vmatpush3.bf16.msra.mxu0 %v9705_v62  ;;  %8849 = vmatprep.subr.bf16.mxu1 %v9706_v4  ;;  %v9751_v62 = vld [vmem:[%s12359_s5 + $0x5f8] sm:$0xff]  }
 0x1ec   :  { %8959 = vmatprep.subr.bf16.mxu0 %v9707_v9  ;;  %v9752_v4 = vld [vmem:[%s12359_s5 + $0x338] sm:$0xff]   ;;  %v1629_v9 = vld [vmem:[#allocation2 + $0x10] sm:$0x30] }
 0x1ee   :  { %8850 = vmatpush3.bf16.msra.mxu1 %v9708_v10  ;;  %v9753_v10 = vld [vmem:[%s12359_s5 + $0x5b8] sm:$0xff]  }
 0x1ef   :  { %8960 = vmatpush3.bf16.msra.mxu0 %v9709_v11  ;;  %8851 = vmatprep.subr.bf16.mxu1 %v9710_v12  ;;  %v9754_v11 = vld [vmem:[%s12359_s5 + $0x440] sm:$0xff]  }
 0x1f0   :  { %8961 = vmatprep.subr.bf16.mxu0 %v9711_v13  ;;  %v2523_v12 = vld [vmem:[#allocation2 + $0x20] sm:$0xc0] }
 0x1f1   :  { %v9755_v13 = vld [vmem:[%s12359_s5 + $0x6c0] sm:$0xff]  }
 0x1f2   :  { %8852 = vmatpush3.bf16.msra.mxu1 %v9712_v14  ;;  %v1631_v14 = vpack.c.bf16 %v1629_v9, %v1629_v9  ;;  %v9792_v9 = vld [vmem:[%s12359_s5 + $0x508] sm:$0xff]  }
 0x1f3   :  { %8962 = vmatpush3.bf16.msra.mxu0 %v9713_v15  ;;  %8853 = vmatprep.subr.bf16.mxu1 %v9714_v54  ;;  %v2878_v15 = vld [vmem:[#allocation2 + $0x38] sm:$0xc]  ;;  %v2525_v54 = vpack.c.bf16 %v2523_v12, %v2523_v12  ;;  %v9794_v12 = vld [vmem:[%s12359_s5 + $0x550] sm:$0xff]  }
 0x1f4   :  { %8963 = vmatprep.subr.bf16.mxu0 %v9715_v55  ;;  %v9756_v55 = vld [vmem:[%s12359_s5 + $0x400] sm:$0xff]  }
 0x1f6   :  { %8854 = vmatpush3.bf16.msra.mxu1 %v9716_v57  ;;  %v1990_v57 = vld [vmem:[#allocation2 + $0x28] sm:$0x3] }
 0x1f7   :  { %8964 = vmatpush3.bf16.msra.mxu0 %v9717_v17  ;;  %8855 = vmatprep.subr.bf16.mxu1 %v9718_v18  ;;  %v9757_v17 = vld [vmem:[%s12359_s5 + $0x680] sm:$0xff]   ;;  %v2880_v18 = vpack.c.bf16 %v2878_v15, %v2878_v15  ;;  %v1992_v26 = vpack.c.bf16 %v1990_v57, %v1990_v57  ;;  %v9797_v15 = vld [vmem:[%s12359_s5 + $0x790] sm:$0xff]   ;;  %v9800_v57 = vld [vmem:[%s12359_s5 + $0x518] sm:$0xff]  }
 0x1f8   :  { %8965 = vmatprep.subr.bf16.mxu0 %v9719_v19  ;;  %v1668_v19 = vrot.slane %v1631_v14, 2  ;;  %v9796_v14 = vld [vmem:[%s12359_s5 + $0x510] sm:$0xff]  }
 0x1f9   :  { %v2917_v29 = vrot.slane %v2880_v18, 1  ;;  %v9802_v18 = vld [vmem:[%s12359_s5 + $0x560] sm:$0xff]  }
 0x1fa   :  { %8856 = vmatpush3.bf16.msra.mxu1 %v9720_v21  ;;  %v9758_v21 = vld [vmem:[%s12359_s5 + $0x448] sm:$0xff]  }
 0x1fb   :  { %8966 = vmatpush3.bf16.msra.mxu0 %v9721_v23  ;;  %8885 = vmatprep.subr.bf16.mxu1 %v9722_v25  ;;  %v2562_v23 = vrot.slane %v2525_v54, 3  ;;  %v9759_v25 = vld [vmem:[%s12359_s5 + $0x6c8] sm:$0xff]   ;;  %v9798_v54 = vld [vmem:[%s12359_s5 + $0x558] sm:$0xff]  }
 0x1fc   :  { %8995 = vmatprep.subr.bf16.mxu0 %v9723_v27  ;;  %v9760_v27 = vld [vmem:[%s12359_s5 + $0x408] sm:$0xff]  }
 0x1fd   :  { %1441 = vmatmul.mubr.bf16.vlgmr.msra.gmra.mrb[12].mxu1 %v1277_v35  ;;  %v9768_v35 = vld [vmem:[%s12359_s5 + $0x418] sm:$0xff]  }
 0x1fe   :  { %2335 = vmatmul.mubr.bf16.vlgmr.msra.gmra.mrb[32].mxu0 %v2202_v36  ;;  %8886 = vmatpush3.bf16.msra.mxu1 %v9724_v22  ;;  %v9764_v22 = vld [vmem:[%s12359_s5 + $0x410] sm:$0xff]   ;;  %v9770_v36 = vld [vmem:[%s12359_s5 + $0x460] sm:$0xff]  }
 0x1ff   :  { %1800 = vmatprep.mubr.bf16.mxu1 %v1669_v39  ;;  %8996 = vmatpush3.bf16.msra.mxu0 %v9725_v34  ;;  %v9766_v34 = vld [vmem:[%s12359_s5 + $0x458] sm:$0xff]   ;;  %v9772_v39 = vld [vmem:[%s12359_s5 + $0x420] sm:$0xff]  }
 0x200   :  { %2694 = vmatprep.mubr.bf16.mxu0 %v2563_v40  ;;  %8887 = vmatprep.subr.bf16.mxu1 %v9726_v0  ;;  %v9769_v0 = vld [vmem:[%s12359_s5 + $0x698] sm:$0xff]   ;;  %v9774_v40 = vld [vmem:[%s12359_s5 + $0x468] sm:$0xff]  }
 0x201   :  { %8997 = vmatprep.subr.bf16.mxu0 %v9727_v1  ;;  %v9771_v1 = vld [vmem:[%s12359_s5 + $0x6e0] sm:$0xff]  }
 0x202   :  { %8888 = vmatpush3.bf16.msra.mxu1 %v9728_v2  ;;  %v9773_v2 = vld [vmem:[%s12359_s5 + $0x6a0] sm:$0xff]  }
 0x203   :  { %8998 = vmatpush3.bf16.msra.mxu0 %v9729_v3  ;;  %8889 = vmatprep.subr.bf16.mxu1 %v9730_v43  ;;  %v9775_v3 = vld [vmem:[%s12359_s5 + $0x6e8] sm:$0xff]  }
 0x204   :  { %8999 = vmatprep.subr.bf16.mxu0 %v9731_v6  ;;  %v9776_v43 = vld [vmem:[%s12359_s5 + $0x428] sm:$0xff]  }
 0x205   :  { %v9777_v6 = vld [vmem:[%s12359_s5 + $0x6a8] sm:$0xff]  }
 0x206   :  { %8890 = vmatpush3.bf16.msra.mxu1 %v9732_v44  ;;  %v9778_v44 = vld [vmem:[%s12359_s5 + $0x470] sm:$0xff]  }
 0x207   :  { %9000 = vmatpush3.bf16.msra.mxu0 %v9733_v45  ;;  %8891 = vmatprep.subr.bf16.mxu1 %v9734_v8  ;;  %v9780_v45 = vld [vmem:[%s12359_s5 + $0x430] sm:$0xff]  }
 0x208   :  { %9001 = vmatprep.subr.bf16.mxu0 %v9735_v46  ;;  %v9781_v8 = vld [vmem:[%s12359_s5 + $0x6b0] sm:$0xff]   ;;  %v9783_v46 = vld [vmem:[%s12359_s5 + $0x6f8] sm:$0xff]  }
 0x20a   :  { %8892 = vmatpush3.bf16.msra.mxu1 %v9736_v58  ;;  %v9784_v58 = vld [vmem:[%s12359_s5 + $0x438] sm:$0xff]  }
 0x20b   :  { %9002 = vmatpush3.bf16.msra.mxu0 %v9737_v28  ;;  %8893 = vmatprep.subr.bf16.mxu1 %v9738_v49  ;;  %v9786_v28 = vld [vmem:[%s12359_s5 + $0x540] sm:$0xff]   ;;  %v2877_v49 = vld [vmem:[#allocation2 + $0x30] sm:$0xc] }
 0x20c   :  { %9003 = vmatprep.subr.bf16.mxu0 %v9739_v37  ;;  %v1989_v37 = vld [vmem:[#allocation2 + $0x20] sm:$0x3] }
 0x20e   :  { %8894 = vmatpush3.bf16.msra.mxu1 %v9740_v31  ;;  %v2344_v31 = vld [vmem:[#allocation2 + $0x28] sm:$0x30] }
 0x20f   :  { %9004 = vmatpush3.bf16.msra.mxu0 %v9741_v38  ;;  %8895 = vmatprep.subr.bf16.mxu1 %v9742_v48  ;;  %v3238_v38 = vld [vmem:[#allocation2 + $0x38] sm:$0xc0]  ;;  %v2879_v48 = vpack.c.bf16 %v2877_v49, %v2877_v49  ;;  %v9824_v49 = vld [vmem:[%s12359_s5 + $0x608] sm:$0xff]  }
 0x210   :  { %9005 = vmatprep.subr.bf16.mxu0 %v9743_v53  ;;  %v9787_v53 = vld [vmem:[%s12359_s5 + $0x7c0] sm:$0xff]  }
 0x212   :  { %8896 = vmatpush3.bf16.msra.mxu1 %v9744_v60  ;;  %v9788_v60 = vld [vmem:[%s12359_s5 + $0x500] sm:$0xff]  }
 0x213   :  { %9006 = vmatpush3.bf16.msra.mxu0 %v9745_v51  ;;  %8897 = vmatprep.subr.bf16.mxu1 %v9746_v5  ;;  %v2346_v51 = vpack.c.bf16 %v2344_v31, %v2344_v31  ;;  %v9789_v5 = vld [vmem:[%s12359_s5 + $0x780] sm:$0xff]   ;;  %v9825_v31 = vld [vmem:[%s12359_s5 + $0x888] sm:$0xff]  }
 0x214   :  { %9007 = vmatprep.subr.bf16.mxu0 %v9747_v52  ;;  %v3240_v52 = vpack.c.bf16 %v3238_v38, %v3238_v38  ;;  %v9826_v38 = vld [vmem:[%s12359_s5 + $0x650] sm:$0xff]  }
 0x216   :  { %8898 = vmatpush3.bf16.msra.mxu1 %v9748_v42  ;;  %v1991_v42 = vpack.c.bf16 %v1989_v37, %v1989_v37 }
 0x217   :  { %9008 = vmatpush3.bf16.msra.mxu0 %v9749_v50  ;;  %8899 = vmatprep.subr.bf16.mxu1 %v9750_v56  ;;  %v9790_v50 = vld [vmem:[%s12359_s5 + $0x548] sm:$0xff]   ;;  %v2916_v56 = vrot.slane %v2879_v48, 1  ;;  %v9827_v48 = vld [vmem:[%s12359_s5 + $0x8d0] sm:$0xff]  }
 0x218   :  { %9009 = vmatprep.subr.bf16.mxu0 %v9751_v62  ;;  %v9791_v62 = vld [vmem:[%s12359_s5 + $0x7c8] sm:$0xff]  }
 0x21a   :  { %8900 = vmatpush3.bf16.msra.mxu1 %v9752_v4  ;;  %v2383_v4 = vrot.slane %v2346_v51, 2  ;;  %v9830_v51 = vld [vmem:[%s12359_s5 + $0x658] sm:$0xff]  }
 0x21b   :  { %9010 = vmatpush3.bf16.msra.mxu0 %v9753_v10  ;;  %8929 = vmatprep.subr.bf16.mxu1 %v9754_v11  ;;  %v3277_v10 = vrot.slane %v3240_v52, 3  ;;  %v9793_v11 = vld [vmem:[%s12359_s5 + $0x788] sm:$0xff]   ;;  %v9832_v52 = vld [vmem:[%s12359_s5 + $0x618] sm:$0xff]  }
 0x21c   :  { %9039 = vmatprep.subr.bf16.mxu0 %v9755_v13  ;;  %v9795_v13 = vld [vmem:[%s12359_s5 + $0x7d0] sm:$0xff]  }
 0x21d   :  { %1801 = vmatmul.mubr.bf16.vlgmr.msra.gmra.mrb[16].mxu1 %v1668_v19  ;;  %v494_v19 = vmul.f32 %v10618_v20, %v10546_v59  ;;  %v9806_v59 = vld [vmem:[%s12359_s5 + $0x568] sm:$0xff]  }
 0x21e   :  { %2695 = vmatmul.mubr.bf16.vlgmr.msra.gmra.mrb[36].mxu0 %v2562_v23  ;;  %8930 = vmatpush3.bf16.msra.mxu1 %v9756_v55  ;;  %v9799_v55 = vld [vmem:[%s12359_s5 + $0x7d8] sm:$0xff]   ;;  %v9804_v23 = vld [vmem:[%s12359_s5 + $0x520] sm:$0xff]  }
 0x21f   :  { %2154 = vmatprep.mubr.bf16.mxu1 %v1992_v26  ;;  %9040 = vmatpush3.bf16.msra.mxu0 %v9757_v17  ;;  %v9801_v17 = vld [vmem:[%s12359_s5 + $0x798] sm:$0xff]   ;;  %v9805_v26 = vld [vmem:[%s12359_s5 + $0x7a0] sm:$0xff]  }
 0x220   :  { %3048 = vmatprep.mubr.bf16.mxu0 %v2917_v29  ;;  %8931 = vmatprep.subr.bf16.mxu1 %v9758_v21  ;;  %v9803_v21 = vld [vmem:[%s12359_s5 + $0x7e0] sm:$0xff]  }
 0x221   :  { %9041 = vmatprep.subr.bf16.mxu0 %v9759_v25  ;;  %v524_v25 = vadd.f32 %v10621_v16, %v494_v19 }
 0x222   :  { %8932 = vmatpush3.bf16.msra.mxu1 %v9760_v27  ;;  %v9807_v27 = vld [vmem:[%s12359_s5 + $0x7e8] sm:$0xff]  }
 0x223   :  { %9042 = vmatpush3.bf16.msra.mxu0 %v9761_v24  ;;  %8933 = vmatprep.subr.bf16.mxu1 %v9762_v30  ;;  %v542_v29 = vmax.f32 %v524_v25, 0.0  ;;  %v9808_v24 = vld [vmem:[%s12359_s5 + $0x528] sm:$0xff]   ;;  %v9845_v25 = vld [vmem:[%s12359_s5 + $0x8b0] sm:$0xff]  }
 0x224   :  { %9043 = vmatprep.subr.bf16.mxu0 %v9763_v32  ;;  %v9809_v30 = vld [vmem:[%s12359_s5 + $0x7a8] sm:$0xff]   ;;  %v9810_v32 = vld [vmem:[%s12359_s5 + $0x570] sm:$0xff]  }
 0x225   :  { %560 = vst [vmem:[#allocation2 + $0x70] sm:$0xff] %v542_v29  ;;  %v9847_v29 = vld [vmem:[%s12359_s5 + $0x8f8] sm:$0xff]  }
 0x226   :  { %8934 = vmatpush3.bf16.msra.mxu1 %v9764_v22  ;;  %v9811_v22 = vld [vmem:[%s12359_s5 + $0x7f0] sm:$0xff]  }
 0x227   :  { %9044 = vmatpush3.bf16.msra.mxu0 %v9765_v33  ;;  %8935 = vmatprep.subr.bf16.mxu1 %v9766_v34  ;;  %v9812_v33 = vld [vmem:[%s12359_s5 + $0x530] sm:$0xff]  }
 0x228   :  { %9045 = vmatprep.subr.bf16.mxu0 %v9767_v63  ;;  %v9813_v34 = vld [vmem:[%s12359_s5 + $0x7b0] sm:$0xff]   ;;  %v9814_v63 = vld [vmem:[%s12359_s5 + $0x578] sm:$0xff]  }
 0x22a   :  { %8936 = vmatpush3.bf16.msra.mxu1 %v9768_v35  ;;  %v9815_v35 = vld [vmem:[%s12359_s5 + $0x7f8] sm:$0xff]  }
 0x22b   :  { %9046 = vmatpush3.bf16.msra.mxu0 %v9769_v0  ;;  %8937 = vmatprep.subr.bf16.mxu1 %v9770_v36  ;;  %v9816_v0 = vld [vmem:[%s12359_s5 + $0x538] sm:$0xff]   ;;  %v2343_v36 = vld [vmem:[#allocation2 + $0x20] sm:$0x30] }
 0x22c   :  { %9047 = vmatprep.subr.bf16.mxu0 %v9771_v1  ;;  %v9817_v1 = vld [vmem:[%s12359_s5 + $0x7b8] sm:$0xff]  }
 0x22e   :  { %8938 = vmatpush3.bf16.msra.mxu1 %v9772_v39  ;;  %v9818_v39 = vld [vmem:[%s12359_s5 + $0x640] sm:$0xff]  }
 0x22f   :  { %9048 = vmatpush3.bf16.msra.mxu0 %v9773_v2  ;;  %8939 = vmatprep.subr.bf16.mxu1 %v9774_v40  ;;  %v3237_v2 = vld [vmem:[#allocation2 + $0x30] sm:$0xc0]  ;;  %v9819_v40 = vld [vmem:[%s12359_s5 + $0x8c0] sm:$0xff]  }
 0x230   :  { %9049 = vmatprep.subr.bf16.mxu0 %v9775_v3  ;;  %v2345_v3 = vpack.c.bf16 %v2343_v36, %v2343_v36  ;;  %v9852_v36 = vld [vmem:[%s12359_s5 + $0x700] sm:$0xff]  }
 0x232   :  { %8940 = vmatpush3.bf16.msra.mxu1 %v9776_v43  ;;  %v3592_v43 = vld [vmem:[#allocation2 + $0x48] sm:$0xc] }
 0x233   :  { %9050 = vmatpush3.bf16.msra.mxu0 %v9777_v6  ;;  %8941 = vmatprep.subr.bf16.mxu1 %v9778_v44  ;;  %v3239_v6 = vpack.c.bf16 %v3237_v2, %v3237_v2  ;;  %v9820_v44 = vld [vmem:[%s12359_s5 + $0x600] sm:$0xff]  }
 0x234   :  { %9051 = vmatprep.subr.bf16.mxu0 %v9779_v7  ;;  %v2704_v7 = vld [vmem:[#allocation2 + $0x38] sm:$0x3] }
 0x236   :  { %8942 = vmatpush3.bf16.msra.mxu1 %v9780_v45  ;;  %v9821_v45 = vld [vmem:[%s12359_s5 + $0x880] sm:$0xff]  }
 0x237   :  { %9052 = vmatpush3.bf16.msra.mxu0 %v9781_v8  ;;  %8943 = vmatprep.subr.bf16.mxu1 %v9782_v41  ;;  %v3594_v8 = vpack.c.bf16 %v3592_v43, %v3592_v43  ;;  %v2382_v41 = vrot.slane %v2345_v3, 2  ;;  %v9854_v3 = vld [vmem:[%s12359_s5 + $0x748] sm:$0xff]  }
 0x238   :  { %9053 = vmatprep.subr.bf16.mxu0 %v9783_v46  ;;  %v9822_v46 = vld [vmem:[%s12359_s5 + $0x648] sm:$0xff]  }
 0x239   :  { %v3631_v37 = vrot.slane %v3594_v8, 1  ;;  %v9857_v8 = vld [vmem:[%s12359_s5 + $0x988] sm:$0xff]  }
 0x23a   :  { %8944 = vmatpush3.bf16.msra.mxu1 %v9784_v58  ;;  %v3276_v58 = vrot.slane %v3239_v6, 3  ;;  %v9855_v6 = vld [vmem:[%s12359_s5 + $0x9c8] sm:$0xff]  }
 0x23b   :  { %9054 = vmatpush3.bf16.msra.mxu0 %v9785_v47  ;;  %8973 = vmatprep.subr.bf16.mxu1 %v9786_v28  ;;  %v9823_v47 = vld [vmem:[%s12359_s5 + $0x8c8] sm:$0xff]   ;;  %v2706_v28 = vpack.c.bf16 %v2704_v7, %v2704_v7 }
 0x23c   :  { %9083 = vmatprep.subr.bf16.mxu0 %v9787_v53  ;;  %v9828_v53 = vld [vmem:[%s12359_s5 + $0x610] sm:$0xff]   ;;  %v9856_v7 = vld [vmem:[%s12359_s5 + $0x708] sm:$0xff]  }
 0x23d   :  { %2155 = vmatmul.mubr.bf16.vlgmr.msra.gmra.mrb[20].mxu1 %v1991_v42  ;;  %v9833_v42 = vld [vmem:[%s12359_s5 + $0x898] sm:$0xff]  }
 0x23e   :  { %3049 = vmatmul.mubr.bf16.vlgmr.msra.gmra.mrb[40].mxu0 %v2916_v56  ;;  %8974 = vmatpush3.bf16.msra.mxu1 %v9788_v60  ;;  %v9829_v60 = vld [vmem:[%s12359_s5 + $0x890] sm:$0xff]   ;;  %v9835_v56 = vld [vmem:[%s12359_s5 + $0x8e0] sm:$0xff]  }
 0x23f   :  { %2514 = vmatprep.mubr.bf16.mxu1 %v2383_v4  ;;  %9084 = vmatpush3.bf16.msra.mxu0 %v9789_v5  ;;  %v9831_v5 = vld [vmem:[%s12359_s5 + $0x8d8] sm:$0xff]   ;;  %v9837_v4 = vld [vmem:[%s12359_s5 + $0x8a0] sm:$0xff]  }
 0x240   :  { %3408 = vmatprep.mubr.bf16.mxu0 %v3277_v10  ;;  %8975 = vmatprep.subr.bf16.mxu1 %v9790_v50  ;;  %v9834_v50 = vld [vmem:[%s12359_s5 + $0x660] sm:$0xff]   ;;  %v9839_v10 = vld [vmem:[%s12359_s5 + $0x8e8] sm:$0xff]  }
 0x241   :  { %9085 = vmatprep.subr.bf16.mxu0 %v9791_v62  ;;  %v9836_v62 = vld [vmem:[%s12359_s5 + $0x620] sm:$0xff]  }
 0x242   :  { %8976 = vmatpush3.bf16.msra.mxu1 %v9792_v9  ;;  %v9838_v9 = vld [vmem:[%s12359_s5 + $0x668] sm:$0xff]  }
 0x243   :  { %9086 = vmatpush3.bf16.msra.mxu0 %v9793_v11  ;;  %8977 = vmatprep.subr.bf16.mxu1 %v9794_v12  ;;  %v9840_v11 = vld [vmem:[%s12359_s5 + $0x628] sm:$0xff]  }
 0x244   :  { %9087 = vmatprep.subr.bf16.mxu0 %v9795_v13  ;;  %v9841_v12 = vld [vmem:[%s12359_s5 + $0x8a8] sm:$0xff]   ;;  %v9842_v13 = vld [vmem:[%s12359_s5 + $0x670] sm:$0xff]  }
 0x246   :  { %8978 = vmatpush3.bf16.msra.mxu1 %v9796_v14 }
 0x247   :  { %9088 = vmatpush3.bf16.msra.mxu0 %v9797_v15  ;;  %8979 = vmatprep.subr.bf16.mxu1 %v9798_v54  ;;  %v9843_v54 = vld [vmem:[%s12359_s5 + $0x8f0] sm:$0xff]  }
 0x248   :  { %9089 = vmatprep.subr.bf16.mxu0 %v9799_v55 }
 0x24a   :  { %8980 = vmatpush3.bf16.msra.mxu1 %v9800_v57 }
 0x24b   :  { %9090 = vmatpush3.bf16.msra.mxu0 %v9801_v17  ;;  %8981 = vmatprep.subr.bf16.mxu1 %v9802_v18 }
 0x24c   :  { %9091 = vmatprep.subr.bf16.mxu0 %v9803_v21 }
 0x24e   :  { %8982 = vmatpush3.bf16.msra.mxu1 %v9804_v23  ;;  %v9844_v23 = vld [vmem:[%s12359_s5 + $0x630] sm:$0xff]  }
 0x24f   :  { %9092 = vmatpush3.bf16.msra.mxu0 %v9805_v26  ;;  %8983 = vmatprep.subr.bf16.mxu1 %v9806_v59 }
 0x250   :  { %9093 = vmatprep.subr.bf16.mxu0 %v9807_v27  ;;  %v9846_v27 = vld [vmem:[%s12359_s5 + $0x678] sm:$0xff]  }
 0x252   :  { %8984 = vmatpush3.bf16.msra.mxu1 %v9808_v24  ;;  %v9848_v24 = vld [vmem:[%s12359_s5 + $0x638] sm:$0xff]  }
 0x253   :  { %9094 = vmatpush3.bf16.msra.mxu0 %v9809_v30  ;;  %8985 = vmatprep.subr.bf16.mxu1 %v9810_v32  ;;  %v9849_v30 = vld [vmem:[%s12359_s5 + $0x8b8] sm:$0xff]   ;;  %v9850_v32 = vld [vmem:[%s12359_s5 + $0x740] sm:$0xff]  }
 0x254   :  { %9095 = vmatprep.subr.bf16.mxu0 %v9811_v22  ;;  %v3591_v22 = vld [vmem:[#allocation2 + $0x40] sm:$0xc] }
 0x256   :  { %8986 = vmatpush3.bf16.msra.mxu1 %v9812_v33  ;;  %v2703_v33 = vld [vmem:[#allocation2 + $0x30] sm:$0x3] }
 0x257   :  { %9096 = vmatpush3.bf16.msra.mxu0 %v9813_v34  ;;  %8987 = vmatprep.subr.bf16.mxu1 %v9814_v63  ;;  %v3058_v34 = vld [vmem:[#allocation2 + $0x38] sm:$0x30]  ;;  %v3952_v63 = vld [vmem:[#allocation2 + $0x48] sm:$0xc0] }
 0x258   :  { %9097 = vmatprep.subr.bf16.mxu0 %v9815_v35  ;;  %v3593_v35 = vpack.c.bf16 %v3591_v22, %v3591_v22  ;;  %v3954_v2 = vpack.c.bf16 %v3952_v63, %v3952_v63  ;;  %v9884_v22 = vld [vmem:[%s12359_s5 + $0x800] sm:$0xff]  }
 0x25a   :  { %8988 = vmatpush3.bf16.msra.mxu1 %v9816_v0  ;;  %v9851_v0 = vld [vmem:[%s12359_s5 + $0x9c0] sm:$0xff]   ;;  %v3630_v43 = vrot.slane %v3593_v35, 1 }
 0x25b   :  { %9098 = vmatpush3.bf16.msra.mxu0 %v9817_v1  ;;  %9017 = vmatprep.subr.bf16.mxu1 %v9818_v39  ;;  %v3060_v1 = vpack.c.bf16 %v3058_v34, %v3058_v34  ;;  %v9853_v39 = vld [vmem:[%s12359_s5 + $0x980] sm:$0xff]  }
 0x25c   :  { %9127 = vmatprep.subr.bf16.mxu0 %v9819_v40  ;;  %v2705_v40 = vpack.c.bf16 %v2703_v33, %v2703_v33  ;;  %v3418_v33 = vld [vmem:[#allocation2 + $0x48] sm:$0x3]  ;;  %v9885_v34 = vld [vmem:[%s12359_s5 + $0xa80] sm:$0xff]  }
 0x25d   :  { %2515 = vmatmul.mubr.bf16.vlgmr.msra.gmra.mrb[24].mxu1 %v2382_v41  ;;  %v9858_v41 = vld [vmem:[%s12359_s5 + $0x750] sm:$0xff]  }
 0x25e   :  { %3409 = vmatmul.mubr.bf16.vlgmr.msra.gmra.mrb[44].mxu0 %v3276_v58  ;;  %9018 = vmatpush3.bf16.msra.mxu1 %v9820_v44  ;;  %v3097_v44 = vrot.slane %v3060_v1, 2  ;;  %v9860_v58 = vld [vmem:[%s12359_s5 + $0x710] sm:$0xff]   ;;  %v9887_v1 = vld [vmem:[%s12359_s5 + $0xac8] sm:$0xff]  }
 0x25f   :  { %2868 = vmatprep.mubr.bf16.mxu1 %v2706_v28  ;;  %9128 = vmatpush3.bf16.msra.mxu0 %v9821_v45  ;;  %v3991_v45 = vrot.slane %v3954_v2, 3  ;;  %v9862_v28 = vld [vmem:[%s12359_s5 + $0x758] sm:$0xff]   ;;  %v9888_v2 = vld [vmem:[%s12359_s5 + $0x808] sm:$0xff]  }
 0x260   :  { %3762 = vmatprep.mubr.bf16.mxu0 %v3631_v37  ;;  %9019 = vmatprep.subr.bf16.mxu1 %v9822_v46  ;;  %v9859_v46 = vld [vmem:[%s12359_s5 + $0x9d0] sm:$0xff]   ;;  %v9864_v37 = vld [vmem:[%s12359_s5 + $0x718] sm:$0xff]  }
 0x261   :  { %9129 = vmatprep.subr.bf16.mxu0 %v9823_v47  ;;  %v9861_v47 = vld [vmem:[%s12359_s5 + $0x990] sm:$0xff]  }
 0x262   :  { %9020 = vmatpush3.bf16.msra.mxu1 %v9824_v49  ;;  %v9863_v49 = vld [vmem:[%s12359_s5 + $0x9d8] sm:$0xff]  }
 0x263   :  { %9130 = vmatpush3.bf16.msra.mxu0 %v9825_v31  ;;  %9021 = vmatprep.subr.bf16.mxu1 %v9826_v38  ;;  %v9865_v31 = vld [vmem:[%s12359_s5 + $0x998] sm:$0xff]   ;;  %v9866_v38 = vld [vmem:[%s12359_s5 + $0x760] sm:$0xff]  }
 0x264   :  { %9131 = vmatprep.subr.bf16.mxu0 %v9827_v48  ;;  %v9867_v48 = vld [vmem:[%s12359_s5 + $0x9e0] sm:$0xff]  }
 0x266   :  { %9022 = vmatpush3.bf16.msra.mxu1 %v9828_v53  ;;  %v9868_v53 = vld [vmem:[%s12359_s5 + $0x720] sm:$0xff]  }
 0x267   :  { %9132 = vmatpush3.bf16.msra.mxu0 %v9829_v60  ;;  %9023 = vmatprep.subr.bf16.mxu1 %v9830_v51  ;;  %v9869_v60 = vld [vmem:[%s12359_s5 + $0x9a0] sm:$0xff]   ;;  %v496_v51 = vmul.f32 %v10618_v20, %v10548_v61  ;;  %v9873_v61 = vld [vmem:[%s12359_s5 + $0x9a8] sm:$0xff]  }
 0x268   :  { %9133 = vmatprep.subr.bf16.mxu0 %v9831_v5  ;;  %v9870_v5 = vld [vmem:[%s12359_s5 + $0x768] sm:$0xff]  }
 0x26a   :  { %9024 = vmatpush3.bf16.msra.mxu1 %v9832_v52  ;;  %v9871_v52 = vld [vmem:[%s12359_s5 + $0x9e8] sm:$0xff]  }
 0x26b   :  { %9134 = vmatpush3.bf16.msra.mxu0 %v9833_v42  ;;  %9025 = vmatprep.subr.bf16.mxu1 %v9834_v50  ;;  %v526_v42 = vadd.f32 %v10621_v16, %v496_v51  ;;  %v9872_v50 = vld [vmem:[%s12359_s5 + $0x728] sm:$0xff]   ;;  %v9875_v16 = vld [vmem:[%s12359_s5 + $0x9f0] sm:$0xff]  }
 0x26c   :  { %9135 = vmatprep.subr.bf16.mxu0 %v9835_v56  ;;  %v9874_v56 = vld [vmem:[%s12359_s5 + $0x770] sm:$0xff]  }
 0x26d   :  { %v544_v20 = vmax.f32 %v526_v42, 0.0  ;;  %v9907_v51 = vld [vmem:[%s12359_s5 + $0xaf0] sm:$0xff]  }
 0x26e   :  { %9026 = vmatpush3.bf16.msra.mxu1 %v9836_v62 }
 0x26f   :  { %9136 = vmatpush3.bf16.msra.mxu0 %v9837_v4  ;;  %9027 = vmatprep.subr.bf16.mxu1 %v9838_v9  ;;  %562 = vst [vmem:[#allocation2 + $0x80] sm:$0xff] %v544_v20  ;;  %v9908_v20 = vld [vmem:[%s12359_s5 + $0x830] sm:$0xff]  }
 0x270   :  { %v8769_v14 = vpop.f32.mrb[0].mxu1  ;;  %v8835_v15 = vpop.f32.mrb[20].mxu0  ;;  %9137 = vmatprep.subr.bf16.mxu0 %v9839_v10 }
 0x271   :  { %v8770_v55 = vpop.f32.mrb[1].mxu1  ;;  %v8836_v57 = vpop.f32.mrb[21].mxu0 }
 0x272   :  { %v11304_v17 = vadd.f32 %v8770_v55, %v8769_v14  ;;  %v11306_v18 = vadd.f32 %v8836_v57, %v8835_v15  ;;  %9028 = vmatpush3.bf16.msra.mxu1 %v9840_v11  ;;  %v8772_v19 = vpop.f32.mrb[2].mxu1  ;;  %v8838_v21 = vpop.f32.mrb[22].mxu0  ;;  %v9876_v11 = vld [vmem:[%s12359_s5 + $0x730] sm:$0xff]  }
 0x273   :  { %9138 = vmatpush3.bf16.msra.mxu0 %v9841_v12  ;;  %v8773_v26 = vpop.f32.mrb[3].mxu1  ;;  %v8839_v59 = vpop.f32.mrb[23].mxu0  ;;  %9029 = vmatprep.subr.bf16.mxu1 %v9842_v13  ;;  %v9877_v57 = vld [vmem:[%s12359_s5 + $0x9b0] sm:$0xff]   ;;  %v9878_v19 = vld [vmem:[%s12359_s5 + $0x778] sm:$0xff]  }
 0x274   :  { %9139 = vmatprep.subr.bf16.mxu0 %v9843_v54  ;;  %v9879_v21 = vld [vmem:[%s12359_s5 + $0x9f8] sm:$0xff]   ;;  %v3057_v26 = vld [vmem:[#allocation2 + $0x30] sm:$0x30] }
 0x275   :  { %v9881_v59 = vld [vmem:[%s12359_s5 + $0x9b8] sm:$0xff]  }
 0x276   :  { %9030 = vmatpush3.bf16.msra.mxu1 %v9844_v23 }
 0x277   :  { %9140 = vmatpush3.bf16.msra.mxu0 %v9845_v25  ;;  %9031 = vmatprep.subr.bf16.mxu1 %v9846_v27  ;;  %v9880_v25 = vld [vmem:[%s12359_s5 + $0x738] sm:$0xff]   ;;  %v9882_v27 = vld [vmem:[%s12359_s5 + $0x840] sm:$0xff]  }
 0x278   :  { %9141 = vmatprep.subr.bf16.mxu0 %v9847_v29  ;;  %v3951_v29 = vld [vmem:[#allocation2 + $0x40] sm:$0xc0] }
 0x27a   :  { %9032 = vmatpush3.bf16.msra.mxu1 %v9848_v24  ;;  %v3059_v24 = vpack.c.bf16 %v3057_v26, %v3057_v26  ;;  %v9915_v26 = vld [vmem:[%s12359_s5 + $0xbc0] sm:$0xff]  }
 0x27b   :  { %9142 = vmatpush3.bf16.msra.mxu0 %v9849_v30  ;;  %9061 = vmatprep.subr.bf16.mxu1 %v9850_v32  ;;  %v4306_v30 = vld [vmem:[#allocation2 + $0x58] sm:$0xc]  ;;  %v3953_v32 = vpack.c.bf16 %v3951_v29, %v3951_v29 }
 0x27c   :  { %9171 = vmatprep.subr.bf16.mxu0 %v9851_v0  ;;  %v4308_v63 = vpack.c.bf16 %v4306_v30, %v4306_v30  ;;  %v3096_v35 = vrot.slane %v3059_v24, 2  ;;  %v9886_v0 = vld [vmem:[%s12359_s5 + $0x848] sm:$0xff]  }
 0x27d   :  { %2869 = vmatmul.mubr.bf16.vlgmr.msra.gmra.mrb[28].mxu1 %v2705_v40  ;;  %v9918_v24 = vld [vmem:[%s12359_s5 + $0x948] sm:$0xff]  }
 0x27e   :  { %3763 = vmatmul.mubr.bf16.vlgmr.msra.gmra.mrb[48].mxu0 %v3630_v43  ;;  %9062 = vmatpush3.bf16.msra.mxu1 %v9852_v36  ;;  %v3990_v36 = vrot.slane %v3953_v32, 3  ;;  %v4345_v40 = vrot.slane %v4308_v63, 1  ;;  %v9890_v43 = vld [vmem:[%s12359_s5 + $0x850] sm:$0xff]   ;;  %v9919_v32 = vld [vmem:[%s12359_s5 + $0xbc8] sm:$0xff]  }
 0x27f   :  { %3228 = vmatprep.mubr.bf16.mxu1 %v3097_v44  ;;  %9172 = vmatpush3.bf16.msra.mxu0 %v9853_v39  ;;  %v3420_v39 = vpack.c.bf16 %v3418_v33, %v3418_v33  ;;  %v9892_v44 = vld [vmem:[%s12359_s5 + $0x810] sm:$0xff]   ;;  %v9920_v33 = vld [vmem:[%s12359_s5 + $0x908] sm:$0xff]  }
 0x280   :  { %4122 = vmatprep.mubr.bf16.mxu0 %v3991_v45  ;;  %9063 = vmatprep.subr.bf16.mxu1 %v9854_v3  ;;  %v9889_v3 = vld [vmem:[%s12359_s5 + $0xa88] sm:$0xff]   ;;  %v9894_v45 = vld [vmem:[%s12359_s5 + $0x858] sm:$0xff]  }
 0x281   :  { %9173 = vmatprep.subr.bf16.mxu0 %v9855_v6  ;;  %v9891_v6 = vld [vmem:[%s12359_s5 + $0xad0] sm:$0xff]   ;;  %v9921_v63 = vld [vmem:[%s12359_s5 + $0xb88] sm:$0xff]  }
 0x282   :  { %9064 = vmatpush3.bf16.msra.mxu1 %v9856_v7  ;;  %v9893_v7 = vld [vmem:[%s12359_s5 + $0xa90] sm:$0xff]  }
 0x283   :  { %9174 = vmatpush3.bf16.msra.mxu0 %v9857_v8  ;;  %9065 = vmatprep.subr.bf16.mxu1 %v9858_v41  ;;  %v9895_v8 = vld [vmem:[%s12359_s5 + $0xad8] sm:$0xff]  }
 0x284   :  { %9175 = vmatprep.subr.bf16.mxu0 %v9859_v46  ;;  %v9896_v41 = vld [vmem:[%s12359_s5 + $0x818] sm:$0xff]  }
 0x285   :  { %v9897_v46 = vld [vmem:[%s12359_s5 + $0xa98] sm:$0xff]  }
 0x286   :  { %9066 = vmatpush3.bf16.msra.mxu1 %v9860_v58  ;;  %v9898_v58 = vld [vmem:[%s12359_s5 + $0x860] sm:$0xff]  }
 0x287   :  { %9176 = vmatpush3.bf16.msra.mxu0 %v9861_v47  ;;  %9067 = vmatprep.subr.bf16.mxu1 %v9862_v28  ;;  %v9899_v47 = vld [vmem:[%s12359_s5 + $0xae0] sm:$0xff]  }
 0x288   :  { %9177 = vmatprep.subr.bf16.mxu0 %v9863_v49  ;;  %v9900_v28 = vld [vmem:[%s12359_s5 + $0x820] sm:$0xff]  }
 0x289   :  { %v9901_v49 = vld [vmem:[%s12359_s5 + $0xaa0] sm:$0xff]  }
 0x28a   :  { %9068 = vmatpush3.bf16.msra.mxu1 %v9864_v37  ;;  %v9902_v37 = vld [vmem:[%s12359_s5 + $0x868] sm:$0xff]  }
 0x28b   :  { %9178 = vmatpush3.bf16.msra.mxu0 %v9865_v31  ;;  %9069 = vmatprep.subr.bf16.mxu1 %v9866_v38  ;;  %v9903_v31 = vld [vmem:[%s12359_s5 + $0xae8] sm:$0xff]  }
 0x28c   :  { %9179 = vmatprep.subr.bf16.mxu0 %v9867_v48  ;;  %v9904_v38 = vld [vmem:[%s12359_s5 + $0x828] sm:$0xff]  }
 0x28d   :  { %v9905_v48 = vld [vmem:[%s12359_s5 + $0xaa8] sm:$0xff]  }
 0x28e   :  { %9070 = vmatpush3.bf16.msra.mxu1 %v9868_v53  ;;  %v9906_v53 = vld [vmem:[%s12359_s5 + $0x870] sm:$0xff]  }
 0x28f   :  { %9180 = vmatpush3.bf16.msra.mxu0 %v9869_v60  ;;  %9071 = vmatprep.subr.bf16.mxu1 %v9870_v5 }
 0x290   :  { %v8791_v62 = vpop.f32.mrb[4].mxu1  ;;  %v8879_v4 = vpop.f32.mrb[24].mxu0  ;;  %9181 = vmatprep.subr.bf16.mxu0 %v9871_v52 }
 0x291   :  { %v8792_v9 = vpop.f32.mrb[5].mxu1  ;;  %v8880_v10 = vpop.f32.mrb[25].mxu0 }
 0x292   :  { %v8793_v12 = vadd.f32 %v8792_v9, %v8791_v62  ;;  %v11410_v13 = vadd.f32 %v8880_v10, %v8879_v4  ;;  %v8794_v14 = vpop.f32.mrb[6].mxu1  ;;  %v8882_v15 = vpop.f32.mrb[26].mxu0  ;;  %9072 = vmatpush3.bf16.msra.mxu1 %v9872_v50  ;;  %v9910_v9 = vld [vmem:[%s12359_s5 + $0x878] sm:$0xff]  }
 0x293   :  { %9182 = vmatpush3.bf16.msra.mxu0 %v9873_v61  ;;  %v8795_v54 = vpop.f32.mrb[7].mxu1  ;;  %v8883_v55 = vpop.f32.mrb[27].mxu0  ;;  %9073 = vmatprep.subr.bf16.mxu1 %v9874_v56  ;;  %v9909_v56 = vld [vmem:[%s12359_s5 + $0xab0] sm:$0xff]   ;;  %v9911_v10 = vld [vmem:[%s12359_s5 + $0xaf8] sm:$0xff]  }
 0x294   :  { %v11422_v23 = vadd.f32 %v8793_v12, %v11304_v17  ;;  %9183 = vmatprep.subr.bf16.mxu0 %v9875_v16  ;;  %v9883_v17 = vld [vmem:[%s12359_s5 + $0xac0] sm:$0xff]   ;;  %v9912_v14 = vld [vmem:[%s12359_s5 + $0x838] sm:$0xff]   ;;  %v4305_v55 = vld [vmem:[#allocation2 + $0x50] sm:$0xc] }
 0x295   :  { %v9913_v15 = vld [vmem:[%s12359_s5 + $0xab8] sm:$0xff]   ;;  %v9914_v54 = vld [vmem:[%s12359_s5 + $0x940] sm:$0xff]  }
 0x296   :  { %9074 = vmatpush3.bf16.msra.mxu1 %v9876_v11 }
 0x297   :  { %9184 = vmatpush3.bf16.msra.mxu0 %v9877_v57  ;;  %9075 = vmatprep.subr.bf16.mxu1 %v9878_v19  ;;  %v3417_v57 = vld [vmem:[#allocation2 + $0x40] sm:$0x3]  ;;  %v3772_v19 = vld [vmem:[#allocation2 + $0x48] sm:$0x30] }
 0x298   :  { %9185 = vmatprep.subr.bf16.mxu0 %v9879_v21 }
 0x29a   :  { %9076 = vmatpush3.bf16.msra.mxu1 %v9880_v25  ;;  %v4307_v25 = vpack.c.bf16 %v4305_v55, %v4305_v55  ;;  %v9948_v55 = vld [vmem:[%s12359_s5 + $0xa00] sm:$0xff]  }
 0x29b   :  { %9186 = vmatpush3.bf16.msra.mxu0 %v9881_v59  ;;  %9105 = vmatprep.subr.bf16.mxu1 %v9882_v27  ;;  %v9916_v59 = vld [vmem:[%s12359_s5 + $0x900] sm:$0xff]   ;;  %v3774_v27 = vpack.c.bf16 %v3772_v19, %v3772_v19 }
 0x29c   :  { %9215 = vmatprep.subr.bf16.mxu0 %v9883_v17  ;;  %v3419_v17 = vpack.c.bf16 %v3417_v57, %v3417_v57  ;;  %v4344_v30 = vrot.slane %v4307_v25, 1  ;;  %v4132_v57 = vld [vmem:[#allocation2 + $0x58] sm:$0x3]  ;;  %v9951_v25 = vld [vmem:[%s12359_s5 + $0xcc8] sm:$0xff]  }
 0x29d   :  { %3229 = vmatmul.mubr.bf16.vlgmr.msra.gmra.mrb[32].mxu1 %v3096_v35  ;;  %v9922_v35 = vld [vmem:[%s12359_s5 + $0x950] sm:$0xff]  }
 0x29e   :  { %4123 = vmatmul.mubr.bf16.vlgmr.msra.gmra.mrb[52].mxu0 %v3990_v36  ;;  %9106 = vmatpush3.bf16.msra.mxu1 %v9884_v22  ;;  %v3811_v22 = vrot.slane %v3774_v27, 2  ;;  %v9924_v36 = vld [vmem:[%s12359_s5 + $0x910] sm:$0xff]   ;;  %v4134_v27 = vpack.c.bf16 %v4132_v57, %v4132_v57 }
 0x29f   :  { %3582 = vmatprep.mubr.bf16.mxu1 %v3420_v39  ;;  %9216 = vmatpush3.bf16.msra.mxu0 %v9885_v34  ;;  %v9926_v39 = vld [vmem:[%s12359_s5 + $0x958] sm:$0xff]  }
 0x2a0   :  { %4476 = vmatprep.mubr.bf16.mxu0 %v4345_v40  ;;  %9107 = vmatprep.subr.bf16.mxu1 %v9886_v0  ;;  %v9923_v0 = vld [vmem:[%s12359_s5 + $0xbd0] sm:$0xff]   ;;  %v9928_v40 = vld [vmem:[%s12359_s5 + $0x918] sm:$0xff]  }
 0x2a1   :  { %9217 = vmatprep.subr.bf16.mxu0 %v9887_v1  ;;  %v9925_v1 = vld [vmem:[%s12359_s5 + $0xb90] sm:$0xff]  }
 0x2a2   :  { %9108 = vmatpush3.bf16.msra.mxu1 %v9888_v2  ;;  %v9927_v2 = vld [vmem:[%s12359_s5 + $0xbd8] sm:$0xff]  }
 0x2a3   :  { %9218 = vmatpush3.bf16.msra.mxu0 %v9889_v3  ;;  %9109 = vmatprep.subr.bf16.mxu1 %v9890_v43  ;;  %v9929_v3 = vld [vmem:[%s12359_s5 + $0xb98] sm:$0xff]   ;;  %v9930_v43 = vld [vmem:[%s12359_s5 + $0x960] sm:$0xff]  }
 0x2a4   :  { %9219 = vmatprep.subr.bf16.mxu0 %v9891_v6  ;;  %v9931_v6 = vld [vmem:[%s12359_s5 + $0xbe0] sm:$0xff]  }
 0x2a6   :  { %9110 = vmatpush3.bf16.msra.mxu1 %v9892_v44  ;;  %v9932_v44 = vld [vmem:[%s12359_s5 + $0x920] sm:$0xff]  }
 0x2a7   :  { %9220 = vmatpush3.bf16.msra.mxu0 %v9893_v7  ;;  %9111 = vmatprep.subr.bf16.mxu1 %v9894_v45  ;;  %v9933_v7 = vld [vmem:[%s12359_s5 + $0xba0] sm:$0xff]   ;;  %v9934_v45 = vld [vmem:[%s12359_s5 + $0x968] sm:$0xff]  }
 0x2a8   :  { %9221 = vmatprep.subr.bf16.mxu0 %v9895_v8  ;;  %v9935_v8 = vld [vmem:[%s12359_s5 + $0xbe8] sm:$0xff]  }
 0x2aa   :  { %9112 = vmatpush3.bf16.msra.mxu1 %v9896_v41  ;;  %v9936_v41 = vld [vmem:[%s12359_s5 + $0x928] sm:$0xff]  }
 0x2ab   :  { %9222 = vmatpush3.bf16.msra.mxu0 %v9897_v46  ;;  %9113 = vmatprep.subr.bf16.mxu1 %v9898_v58  ;;  %v9937_v46 = vld [vmem:[%s12359_s5 + $0xba8] sm:$0xff]   ;;  %v9938_v58 = vld [vmem:[%s12359_s5 + $0x970] sm:$0xff]  }
 0x2ac   :  { %9223 = vmatprep.subr.bf16.mxu0 %v9899_v47 }
 0x2ae   :  { %9114 = vmatpush3.bf16.msra.mxu1 %v9900_v28  ;;  %v9939_v28 = vld [vmem:[%s12359_s5 + $0xbf0] sm:$0xff]  }
 0x2af   :  { %9224 = vmatpush3.bf16.msra.mxu0 %v9901_v49  ;;  %9115 = vmatprep.subr.bf16.mxu1 %v9902_v37 }
 0x2b0   :  { %v8813_v60 = vpop.f32.mrb[8].mxu1  ;;  %9225 = vmatprep.subr.bf16.mxu0 %v9903_v31  ;;  %v9940_v31 = vld [vmem:[%s12359_s5 + $0x930] sm:$0xff]  }
 0x2b1   :  { %v8923_v5 = vpop.f32.mrb[28].mxu0  ;;  %v8814_v52 = vpop.f32.mrb[9].mxu1 }
 0x2b2   :  { %v8815_v42 = vadd.f32 %v8814_v52, %v8813_v60  ;;  %v8924_v50 = vpop.f32.mrb[29].mxu0  ;;  %v8816_v61 = vpop.f32.mrb[10].mxu1  ;;  %9116 = vmatpush3.bf16.msra.mxu1 %v9904_v38  ;;  %v9941_v38 = vld [vmem:[%s12359_s5 + $0xbb0] sm:$0xff]  }
 0x2b3   :  { %v11514_v62 = vadd.f32 %v8924_v50, %v8923_v5  ;;  %v8926_v4 = vpop.f32.mrb[30].mxu0  ;;  %9226 = vmatpush3.bf16.msra.mxu0 %v9905_v48  ;;  %v8817_v16 = vpop.f32.mrb[11].mxu1  ;;  %9117 = vmatprep.subr.bf16.mxu1 %v9906_v53  ;;  %v9943_v50 = vld [vmem:[%s12359_s5 + $0xbf8] sm:$0xff]  }
 0x2b4   :  { %v1094_v11 = vadd.f32 %v8815_v42, %v11422_v23  ;;  %v8927_v12 = vpop.f32.mrb[31].mxu0  ;;  %9227 = vmatprep.subr.bf16.mxu0 %v9907_v51  ;;  %v4666_v23 = vld [vmem:[#allocation2 + $0x58] sm:$0xc0]  ;;  %v3771_v4 = vld [vmem:[#allocation2 + $0x40] sm:$0x30] }
 0x2b5   :  { %v4668_v29 = vpack.c.bf16 %v4666_v23, %v4666_v23  ;;  %v9942_v42 = vld [vmem:[%s12359_s5 + $0x978] sm:$0xff]   ;;  %v3773_v12 = vpack.c.bf16 %v3771_v4, %v3771_v4 }
 0x2b6   :  { %9118 = vmatpush3.bf16.msra.mxu1 %v9908_v20  ;;  %v11533_v21 = vadd.f32 %v11306_v18, %v1094_v11  ;;  %v9917_v18 = vld [vmem:[%s12359_s5 + $0xb80] sm:$0xff]   ;;  %v9945_v16 = vld [vmem:[%s12359_s5 + $0xbb8] sm:$0xff]  }
 0x2b7   :  { %9228 = vmatpush3.bf16.msra.mxu0 %v9909_v56  ;;  %9119 = vmatprep.subr.bf16.mxu1 %v9910_v9  ;;  %v4705_v34 = vrot.slane %v4668_v29, 3  ;;  %v9944_v56 = vld [vmem:[%s12359_s5 + $0x938] sm:$0xff]   ;;  %v9946_v9 = vld [vmem:[%s12359_s5 + $0xa40] sm:$0xff]   ;;  %v3810_v23 = vrot.slane %v3773_v12, 2  ;;  %v9982_v12 = vld [vmem:[%s12359_s5 + $0xb48] sm:$0xff]  }
 0x2b8   :  { %9229 = vmatprep.subr.bf16.mxu0 %v9911_v10  ;;  %v4665_v10 = vld [vmem:[#allocation2 + $0x50] sm:$0xc0] }
 0x2ba   :  { %9120 = vmatpush3.bf16.msra.mxu1 %v9912_v14  ;;  %v9947_v14 = vld [vmem:[%s12359_s5 + $0xcc0] sm:$0xff]  }
 0x2bb   :  { %9230 = vmatpush3.bf16.msra.mxu0 %v9913_v15  ;;  %9149 = vmatprep.subr.bf16.mxu1 %v9914_v54  ;;  %v5020_v15 = vld [vmem:[#allocation2 + $0x68] sm:$0xc]  ;;  %v4667_v54 = vpack.c.bf16 %v4665_v10, %v4665_v10 }
 0x2bc   :  { %9259 = vmatprep.subr.bf16.mxu0 %v9915_v26  ;;  %v5022_v19 = vpack.c.bf16 %v5020_v15, %v5020_v15  ;;  %v9983_v15 = vld [vmem:[%s12359_s5 + $0xdc8] sm:$0xff]  }
 0x2bd   :  { %3583 = vmatmul.mubr.bf16.vlgmr.msra.gmra.mrb[36].mxu1 %v3419_v17  ;;  %v4704_v26 = vrot.slane %v4667_v54, 3  ;;  %v9954_v17 = vld [vmem:[%s12359_s5 + $0xa50] sm:$0xff]  }
 0x2be   :  { %4477 = vmatmul.mubr.bf16.vlgmr.msra.gmra.mrb[56].mxu0 %v4344_v30  ;;  %9150 = vmatpush3.bf16.msra.mxu1 %v9916_v59  ;;  %v9952_v59 = vld [vmem:[%s12359_s5 + $0xa08] sm:$0xff]   ;;  %v5059_v29 = vrot.slane %v5022_v19, 1  ;;  %v9956_v30 = vld [vmem:[%s12359_s5 + $0xa10] sm:$0xff]  }
 0x2bf   :  { %3942 = vmatprep.mubr.bf16.mxu1 %v3811_v22  ;;  %9260 = vmatpush3.bf16.msra.mxu0 %v9917_v18  ;;  %v9953_v18 = vld [vmem:[%s12359_s5 + $0xc88] sm:$0xff]   ;;  %v9958_v22 = vld [vmem:[%s12359_s5 + $0xa58] sm:$0xff]  }
 0x2c0   :  { %4836 = vmatprep.mubr.bf16.mxu0 %v4705_v34  ;;  %9151 = vmatprep.subr.bf16.mxu1 %v9918_v24  ;;  %v9955_v24 = vld [vmem:[%s12359_s5 + $0xcd0] sm:$0xff]   ;;  %v9960_v34 = vld [vmem:[%s12359_s5 + $0xa18] sm:$0xff]  }
 0x2c1   :  { %9261 = vmatprep.subr.bf16.mxu0 %v9919_v32  ;;  %v9957_v32 = vld [vmem:[%s12359_s5 + $0xc90] sm:$0xff]  }
 0x2c2   :  { %9152 = vmatpush3.bf16.msra.mxu1 %v9920_v33  ;;  %v9959_v33 = vld [vmem:[%s12359_s5 + $0xcd8] sm:$0xff]  }
 0x2c3   :  { %9262 = vmatpush3.bf16.msra.mxu0 %v9921_v63  ;;  %9153 = vmatprep.subr.bf16.mxu1 %v9922_v35  ;;  %v9961_v63 = vld [vmem:[%s12359_s5 + $0xc98] sm:$0xff]   ;;  %v9962_v35 = vld [vmem:[%s12359_s5 + $0xa60] sm:$0xff]  }
 0x2c4   :  { %9263 = vmatprep.subr.bf16.mxu0 %v9923_v0  ;;  %v9963_v0 = vld [vmem:[%s12359_s5 + $0xce0] sm:$0xff]  }
 0x2c6   :  { %9154 = vmatpush3.bf16.msra.mxu1 %v9924_v36  ;;  %v9964_v36 = vld [vmem:[%s12359_s5 + $0xa20] sm:$0xff]  }
 0x2c7   :  { %9264 = vmatpush3.bf16.msra.mxu0 %v9925_v1  ;;  %9155 = vmatprep.subr.bf16.mxu1 %v9926_v39  ;;  %v9965_v1 = vld [vmem:[%s12359_s5 + $0xca0] sm:$0xff]   ;;  %v9966_v39 = vld [vmem:[%s12359_s5 + $0xa68] sm:$0xff]  }
 0x2c8   :  { %9265 = vmatprep.subr.bf16.mxu0 %v9927_v2  ;;  %v9967_v2 = vld [vmem:[%s12359_s5 + $0xce8] sm:$0xff]  }
 0x2ca   :  { %9156 = vmatpush3.bf16.msra.mxu1 %v9928_v40  ;;  %v9968_v40 = vld [vmem:[%s12359_s5 + $0xa28] sm:$0xff]  }
 0x2cb   :  { %9266 = vmatpush3.bf16.msra.mxu0 %v9929_v3  ;;  %9157 = vmatprep.subr.bf16.mxu1 %v9930_v43  ;;  %v9969_v3 = vld [vmem:[%s12359_s5 + $0xca8] sm:$0xff]   ;;  %v9970_v43 = vld [vmem:[%s12359_s5 + $0xa70] sm:$0xff]  }
 0x2cc   :  { %9267 = vmatprep.subr.bf16.mxu0 %v9931_v6  ;;  %v9971_v6 = vld [vmem:[%s12359_s5 + $0xcf0] sm:$0xff]  }
 0x2ce   :  { %9158 = vmatpush3.bf16.msra.mxu1 %v9932_v44 }
 0x2cf   :  { %9268 = vmatpush3.bf16.msra.mxu0 %v9933_v7  ;;  %9159 = vmatprep.subr.bf16.mxu1 %v9934_v45  ;;  %v9972_v7 = vld [vmem:[%s12359_s5 + $0xa30] sm:$0xff]  }
 0x2d0   :  { %v8857_v47 = vpop.f32.mrb[12].mxu1  ;;  %9269 = vmatprep.subr.bf16.mxu0 %v9935_v8 }
 0x2d1   :  { %v8967_v49 = vpop.f32.mrb[32].mxu0  ;;  %v8858_v37 = vpop.f32.mrb[13].mxu1 }
 0x2d2   :  { %v8859_v48 = vadd.f32 %v8858_v37, %v8857_v47  ;;  %v8968_v53 = vpop.f32.mrb[33].mxu0  ;;  %v8860_v60 = vpop.f32.mrb[14].mxu1  ;;  %9160 = vmatpush3.bf16.msra.mxu1 %v9936_v41  ;;  %v9973_v41 = vld [vmem:[%s12359_s5 + $0xcb0] sm:$0xff]  }
 0x2d3   :  { %v11616_v51 = vadd.f32 %v8968_v53, %v8967_v49  ;;  %v8970_v5 = vpop.f32.mrb[34].mxu0  ;;  %9270 = vmatpush3.bf16.msra.mxu0 %v9937_v46  ;;  %v8861_v52 = vpop.f32.mrb[15].mxu1  ;;  %9161 = vmatprep.subr.bf16.mxu1 %v9938_v58  ;;  %v9975_v49 = vld [vmem:[%s12359_s5 + $0xcf8] sm:$0xff]  }
 0x2d4   :  { %v1448_v61 = vadd.f32 %v8859_v48, %v11533_v21  ;;  %v8971_v20 = vpop.f32.mrb[35].mxu0  ;;  %9271 = vmatprep.subr.bf16.mxu0 %v9939_v28  ;;  %v9950_v21 = vld [vmem:[%s12359_s5 + $0xa48] sm:$0xff]   ;;  %v9974_v28 = vld [vmem:[%s12359_s5 + $0xa78] sm:$0xff]   ;;  %v9978_v52 = vld [vmem:[%s12359_s5 + $0xb40] sm:$0xff]  }
 0x2d5   :  { %v9976_v60 = vld [vmem:[%s12359_s5 + $0xa38] sm:$0xff]  }
 0x2d6   :  { %9162 = vmatpush3.bf16.msra.mxu1 %v9940_v31  ;;  %v11635_v11 = vadd.f32 %v11410_v13, %v1448_v61  ;;  %v9949_v13 = vld [vmem:[%s12359_s5 + $0xc80] sm:$0xff]   ;;  %v9977_v5 = vld [vmem:[%s12359_s5 + $0xcb8] sm:$0xff]  }
 0x2d7   :  { %9272 = vmatpush3.bf16.msra.mxu0 %v9941_v38  ;;  %9163 = vmatprep.subr.bf16.mxu1 %v9942_v42  ;;  %v5019_v42 = vld [vmem:[#allocation2 + $0x60] sm:$0xc]  ;;  %v4486_v61 = vld [vmem:[#allocation2 + $0x58] sm:$0x30] }
 0x2d8   :  { %9273 = vmatprep.subr.bf16.mxu0 %v9943_v50  ;;  %v4131_v50 = vld [vmem:[#allocation2 + $0x50] sm:$0x3]  ;;  %v5021_v4 = vpack.c.bf16 %v5019_v42, %v5019_v42  ;;  %v4488_v10 = vpack.c.bf16 %v4486_v61, %v4486_v61  ;;  %v10012_v42 = vld [vmem:[%s12359_s5 + $0xc00] sm:$0xff]  }
 0x2da   :  { %9164 = vmatpush3.bf16.msra.mxu1 %v9944_v56  ;;  %v5380_v56 = vld [vmem:[#allocation2 + $0x68] sm:$0xc0]  ;;  %v5058_v54 = vrot.slane %v5021_v4, 1  ;;  %v4525_v57 = vrot.slane %v4488_v10, 2 }
 0x2db   :  { %9274 = vmatpush3.bf16.msra.mxu0 %v9945_v16  ;;  %9193 = vmatprep.subr.bf16.mxu1 %v9946_v9  ;;  %v9979_v16 = vld [vmem:[%s12359_s5 + $0xdc0] sm:$0xff]  }
 0x2dc   :  { %9303 = vmatprep.subr.bf16.mxu0 %v9947_v14  ;;  %v9980_v9 = vld [vmem:[%s12359_s5 + $0xb00] sm:$0xff]   ;;  %v4133_v14 = vpack.c.bf16 %v4131_v50, %v4131_v50 }
 0x2dd   :  { %3943 = vmatmul.mubr.bf16.vlgmr.msra.gmra.mrb[40].mxu1 %v3810_v23  ;;  %v9987_v23 = vld [vmem:[%s12359_s5 + $0xdd0] sm:$0xff]  }
 0x2de   :  { %4837 = vmatmul.mubr.bf16.vlgmr.msra.gmra.mrb[60].mxu0 %v4704_v26  ;;  %9194 = vmatpush3.bf16.msra.mxu1 %v9948_v55  ;;  %v9984_v55 = vld [vmem:[%s12359_s5 + $0xb08] sm:$0xff]   ;;  %v9989_v26 = vld [vmem:[%s12359_s5 + $0xd90] sm:$0xff]  }
 0x2df   :  { %4296 = vmatprep.mubr.bf16.mxu1 %v4134_v27  ;;  %9304 = vmatpush3.bf16.msra.mxu0 %v9949_v13  ;;  %v9985_v13 = vld [vmem:[%s12359_s5 + $0xd88] sm:$0xff]   ;;  %v9991_v27 = vld [vmem:[%s12359_s5 + $0xdd8] sm:$0xff]  }
 0x2e0   :  { %5190 = vmatprep.mubr.bf16.mxu0 %v5059_v29  ;;  %9195 = vmatprep.subr.bf16.mxu1 %v9950_v21  ;;  %v9986_v21 = vld [vmem:[%s12359_s5 + $0xb50] sm:$0xff]   ;;  %v9993_v29 = vld [vmem:[%s12359_s5 + $0xd98] sm:$0xff]  }
 0x2e1   :  { %9305 = vmatprep.subr.bf16.mxu0 %v9951_v25  ;;  %v9988_v25 = vld [vmem:[%s12359_s5 + $0xb10] sm:$0xff]  }
 0x2e2   :  { %9196 = vmatpush3.bf16.msra.mxu1 %v9952_v59  ;;  %v9990_v59 = vld [vmem:[%s12359_s5 + $0xb58] sm:$0xff]  }
 0x2e3   :  { %9306 = vmatpush3.bf16.msra.mxu0 %v9953_v18  ;;  %9197 = vmatprep.subr.bf16.mxu1 %v9954_v17  ;;  %v9992_v18 = vld [vmem:[%s12359_s5 + $0xb18] sm:$0xff]   ;;  %v9994_v17 = vld [vmem:[%s12359_s5 + $0xb60] sm:$0xff]  }
 0x2e4   :  { %9307 = vmatprep.subr.bf16.mxu0 %v9955_v24  ;;  %v9995_v24 = vld [vmem:[%s12359_s5 + $0xde0] sm:$0xff]  }
 0x2e6   :  { %9198 = vmatpush3.bf16.msra.mxu1 %v9956_v30  ;;  %v9996_v30 = vld [vmem:[%s12359_s5 + $0xb20] sm:$0xff]  }
 0x2e7   :  { %9308 = vmatpush3.bf16.msra.mxu0 %v9957_v32  ;;  %9199 = vmatprep.subr.bf16.mxu1 %v9958_v22  ;;  %v9997_v32 = vld [vmem:[%s12359_s5 + $0xda0] sm:$0xff]   ;;  %v9998_v22 = vld [vmem:[%s12359_s5 + $0xb68] sm:$0xff]  }
 0x2e8   :  { %9309 = vmatprep.subr.bf16.mxu0 %v9959_v33  ;;  %v9999_v33 = vld [vmem:[%s12359_s5 + $0xde8] sm:$0xff]  }
 0x2ea   :  { %9200 = vmatpush3.bf16.msra.mxu1 %v9960_v34  ;;  %v10000_v34 = vld [vmem:[%s12359_s5 + $0xb28] sm:$0xff]  }
 0x2eb   :  { %9310 = vmatpush3.bf16.msra.mxu0 %v9961_v63  ;;  %9201 = vmatprep.subr.bf16.mxu1 %v9962_v35  ;;  %v10001_v63 = vld [vmem:[%s12359_s5 + $0xda8] sm:$0xff]   ;;  %v10002_v35 = vld [vmem:[%s12359_s5 + $0xb70] sm:$0xff]  }
 0x2ec   :  { %9311 = vmatprep.subr.bf16.mxu0 %v9963_v0  ;;  %v10003_v0 = vld [vmem:[%s12359_s5 + $0xdf0] sm:$0xff]  }
 0x2ee   :  { %9202 = vmatpush3.bf16.msra.mxu1 %v9964_v36 }
 0x2ef   :  { %9312 = vmatpush3.bf16.msra.mxu0 %v9965_v1  ;;  %9203 = vmatprep.subr.bf16.mxu1 %v9966_v39  ;;  %v10004_v1 = vld [vmem:[%s12359_s5 + $0xb30] sm:$0xff]  }
 0x2f0   :  { %v8901_v44 = vpop.f32.mrb[16].mxu1  ;;  %9313 = vmatprep.subr.bf16.mxu0 %v9967_v2 }
 0x2f1   :  { %v9011_v45 = vpop.f32.mrb[36].mxu0  ;;  %v8902_v8 = vpop.f32.mrb[17].mxu1 }
 0x2f2   :  { %v8903_v46 = vadd.f32 %v8902_v8, %v8901_v44  ;;  %v9012_v58 = vpop.f32.mrb[37].mxu0  ;;  %v8904_v47 = vpop.f32.mrb[18].mxu1  ;;  %9204 = vmatpush3.bf16.msra.mxu1 %v9968_v40  ;;  %v10005_v40 = vld [vmem:[%s12359_s5 + $0xdb0] sm:$0xff]  }
 0x2f3   :  { %v11724_v37 = vadd.f32 %v9012_v58, %v9011_v45  ;;  %v9014_v31 = vpop.f32.mrb[38].mxu0  ;;  %9314 = vmatpush3.bf16.msra.mxu0 %v9969_v3  ;;  %v8905_v38 = vpop.f32.mrb[19].mxu1  ;;  %9205 = vmatprep.subr.bf16.mxu1 %v9970_v43  ;;  %v10006_v3 = vld [vmem:[%s12359_s5 + $0xb78] sm:$0xff]   ;;  %v4485_v45 = vld [vmem:[#allocation2 + $0x50] sm:$0x30] }
 0x2f4   :  { %v1808_v48 = vadd.f32 %v8903_v46, %v11635_v11  ;;  %v9015_v53 = vpop.f32.mrb[39].mxu0  ;;  %9315 = vmatprep.subr.bf16.mxu0 %v9971_v6  ;;  %v5382_v11 = vpack.c.bf16 %v5380_v56, %v5380_v56  ;;  %v10009_v31 = vld [vmem:[%s12359_s5 + $0xdb8] sm:$0xff]   ;;  %v10014_v56 = vld [vmem:[%s12359_s5 + $0xc48] sm:$0xff]  }
 0x2f5   :  { %v10010_v53 = vld [vmem:[%s12359_s5 + $0xc40] sm:$0xff]  }
 0x2f6   :  { %9206 = vmatpush3.bf16.msra.mxu1 %v9972_v7  ;;  %v11737_v20 = vadd.f32 %v11514_v62, %v1808_v48  ;;  %v9981_v62 = vld [vmem:[%s12359_s5 + $0xd80] sm:$0xff]   ;;  %v5419_v19 = vrot.slane %v5382_v11, 3  ;;  %v10007_v7 = vld [vmem:[%s12359_s5 + $0xdf8] sm:$0xff]   ;;  %v4487_v48 = vpack.c.bf16 %v4485_v45, %v4485_v45  ;;  %v5733_v45 = vld [vmem:[#allocation2 + $0x70] sm:$0xc] }
 0x2f7   :  { %9316 = vmatpush3.bf16.msra.mxu0 %v9973_v41  ;;  %9207 = vmatprep.subr.bf16.mxu1 %v9974_v28  ;;  %v10008_v28 = vld [vmem:[%s12359_s5 + $0xb38] sm:$0xff]  }
 0x2f8   :  { %9317 = vmatprep.subr.bf16.mxu0 %v9975_v49  ;;  %v5379_v49 = vld [vmem:[#allocation2 + $0x60] sm:$0xc0]  ;;  %v4524_v61 = vrot.slane %v4487_v48, 2 }
 0x2fa   :  { %9208 = vmatpush3.bf16.msra.mxu1 %v9976_v60  ;;  %v5734_v60 = vld [vmem:[#allocation2 + $0x78] sm:$0xc] }
 0x2fb   :  { %9318 = vmatpush3.bf16.msra.mxu0 %v9977_v5  ;;  %9237 = vmatprep.subr.bf16.mxu1 %v9978_v52  ;;  %v5381_v5 = vpack.c.bf16 %v5379_v49, %v5379_v49  ;;  %v10011_v52 = vld [vmem:[%s12359_s5 + $0xec0] sm:$0xff]   ;;  %v5736_v50 = vpack.c.bf16 %v5734_v60, %v5734_v60 }
 0x2fc   :  { %9347 = vmatprep.subr.bf16.mxu0 %v9979_v16  ;;  %v10015_v16 = vld [vmem:[%s12359_s5 + $0xec8] sm:$0xff]   ;;  %v10043_v49 = vld [vmem:[%s12359_s5 + $0xfc0] sm:$0xff]  }
 0x2fd   :  { %4297 = vmatmul.mubr.bf16.vlgmr.msra.gmra.mrb[44].mxu1 %v4133_v14  ;;  %v5418_v4 = vrot.slane %v5381_v5, 3  ;;  %v5773_v11 = vrot.slane %v5736_v50, 1  ;;  %v10019_v14 = vld [vmem:[%s12359_s5 + $0xed0] sm:$0xff]   ;;  %v10046_v5 = vld [vmem:[%s12359_s5 + $0xd48] sm:$0xff]  }
 0x2fe   :  { %5191 = vmatmul.mubr.bf16.vlgmr.msra.gmra.mrb[64].mxu0 %v5058_v54  ;;  %9238 = vmatpush3.bf16.msra.mxu1 %v9980_v9  ;;  %v10016_v9 = vld [vmem:[%s12359_s5 + $0xc08] sm:$0xff]   ;;  %v10021_v54 = vld [vmem:[%s12359_s5 + $0xe90] sm:$0xff]  }
 0x2ff   :  { %4656 = vmatprep.mubr.bf16.mxu1 %v4525_v57  ;;  %9348 = vmatpush3.bf16.msra.mxu0 %v9981_v62  ;;  %v10017_v62 = vld [vmem:[%s12359_s5 + $0xe88] sm:$0xff]   ;;  %v10023_v57 = vld [vmem:[%s12359_s5 + $0xed8] sm:$0xff]  }
 0x300   :  { %5550 = vmatprep.mubr.bf16.mxu0 %v5419_v19  ;;  %9239 = vmatprep.subr.bf16.mxu1 %v9982_v12  ;;  %v10018_v12 = vld [vmem:[%s12359_s5 + $0xc50] sm:$0xff]   ;;  %v10025_v19 = vld [vmem:[%s12359_s5 + $0xe98] sm:$0xff]  }
 0x301   :  { %9349 = vmatprep.subr.bf16.mxu0 %v9983_v15  ;;  %v10020_v15 = vld [vmem:[%s12359_s5 + $0xc10] sm:$0xff]  }
 0x302   :  { %9240 = vmatpush3.bf16.msra.mxu1 %v9984_v55  ;;  %v10022_v55 = vld [vmem:[%s12359_s5 + $0xc58] sm:$0xff]  }
 0x303   :  { %9350 = vmatpush3.bf16.msra.mxu0 %v9985_v13  ;;  %9241 = vmatprep.subr.bf16.mxu1 %v9986_v21  ;;  %v10024_v13 = vld [vmem:[%s12359_s5 + $0xc18] sm:$0xff]   ;;  %v10026_v21 = vld [vmem:[%s12359_s5 + $0xc60] sm:$0xff]  }
 0x304   :  { %9351 = vmatprep.subr.bf16.mxu0 %v9987_v23  ;;  %v10027_v23 = vld [vmem:[%s12359_s5 + $0xee0] sm:$0xff]  }
 0x306   :  { %9242 = vmatpush3.bf16.msra.mxu1 %v9988_v25  ;;  %v10028_v25 = vld [vmem:[%s12359_s5 + $0xc20] sm:$0xff]  }
 0x307   :  { %9352 = vmatpush3.bf16.msra.mxu0 %v9989_v26  ;;  %9243 = vmatprep.subr.bf16.mxu1 %v9990_v59  ;;  %v10029_v26 = vld [vmem:[%s12359_s5 + $0xea0] sm:$0xff]   ;;  %v10030_v59 = vld [vmem:[%s12359_s5 + $0xc68] sm:$0xff]  }
 0x308   :  { %9353 = vmatprep.subr.bf16.mxu0 %v9991_v27  ;;  %v10031_v27 = vld [vmem:[%s12359_s5 + $0xee8] sm:$0xff]  }
 0x30a   :  { %9244 = vmatpush3.bf16.msra.mxu1 %v9992_v18  ;;  %v10032_v18 = vld [vmem:[%s12359_s5 + $0xc28] sm:$0xff]  }
 0x30b   :  { %9354 = vmatpush3.bf16.msra.mxu0 %v9993_v29  ;;  %9245 = vmatprep.subr.bf16.mxu1 %v9994_v17  ;;  %v10033_v29 = vld [vmem:[%s12359_s5 + $0xea8] sm:$0xff]   ;;  %v10034_v17 = vld [vmem:[%s12359_s5 + $0xc70] sm:$0xff]  }
 0x30c   :  { %9355 = vmatprep.subr.bf16.mxu0 %v9995_v24  ;;  %v10035_v24 = vld [vmem:[%s12359_s5 + $0xef0] sm:$0xff]  }
 0x30e   :  { %9246 = vmatpush3.bf16.msra.mxu1 %v9996_v30 }
 0x30f   :  { %9356 = vmatpush3.bf16.msra.mxu0 %v9997_v32  ;;  %9247 = vmatprep.subr.bf16.mxu1 %v9998_v22  ;;  %v10036_v32 = vld [vmem:[%s12359_s5 + $0xc30] sm:$0xff]  }
 0x310   :  { %v8945_v36 = vpop.f32.mrb[20].mxu1  ;;  %9357 = vmatprep.subr.bf16.mxu0 %v9999_v33 }
 0x311   :  { %v9055_v39 = vpop.f32.mrb[40].mxu0  ;;  %v8946_v2 = vpop.f32.mrb[21].mxu1 }
 0x312   :  { %v8947_v43 = vadd.f32 %v8946_v2, %v8945_v36  ;;  %v9056_v6 = vpop.f32.mrb[41].mxu0  ;;  %v8948_v44 = vpop.f32.mrb[22].mxu1  ;;  %9248 = vmatpush3.bf16.msra.mxu1 %v10000_v34  ;;  %v10037_v34 = vld [vmem:[%s12359_s5 + $0xeb0] sm:$0xff]   ;;  %v10038_v36 = vld [vmem:[%s12359_s5 + $0xc78] sm:$0xff]  }
 0x313   :  { %v11826_v8 = vadd.f32 %v9056_v6, %v9055_v39  ;;  %v9058_v41 = vpop.f32.mrb[42].mxu0  ;;  %9358 = vmatpush3.bf16.msra.mxu0 %v10001_v63  ;;  %v8949_v46 = vpop.f32.mrb[23].mxu1  ;;  %9249 = vmatprep.subr.bf16.mxu1 %v10002_v35  ;;  %v10040_v6 = vld [vmem:[%s12359_s5 + $0xc38] sm:$0xff]  }
 0x314   :  { %v2162_v58 = vadd.f32 %v8947_v43, %v11737_v20  ;;  %v9059_v47 = vpop.f32.mrb[43].mxu0  ;;  %9359 = vmatprep.subr.bf16.mxu0 %v10003_v0  ;;  %v10013_v20 = vld [vmem:[%s12359_s5 + $0xe80] sm:$0xff]   ;;  %v10041_v44 = vld [vmem:[%s12359_s5 + $0xeb8] sm:$0xff]   ;;  %v5200_v46 = vld [vmem:[#allocation2 + $0x68] sm:$0x30] }
 0x315   :  { %v4845_v41 = vld [vmem:[#allocation2 + $0x60] sm:$0x3]  ;;  %v6094_v47 = vld [vmem:[#allocation2 + $0x78] sm:$0xc0] }
 0x316   :  { %9250 = vmatpush3.bf16.msra.mxu1 %v10004_v1  ;;  %v11836_v38 = vadd.f32 %v11616_v51, %v2162_v58  ;;  %v4846_v51 = vld [vmem:[#allocation2 + $0x68] sm:$0x3]  ;;  %v10039_v1 = vld [vmem:[%s12359_s5 + $0xef8] sm:$0xff]   ;;  %v6096_v48 = vpack.c.bf16 %v6094_v47, %v6094_v47 }
 0x317   :  { %9360 = vmatpush3.bf16.msra.mxu0 %v10005_v40  ;;  %9251 = vmatprep.subr.bf16.mxu1 %v10006_v3  ;;  %v4848_v10 = vpack.c.bf16 %v4846_v51, %v4846_v51  ;;  %v10048_v51 = vld [vmem:[%s12359_s5 + $0xd08] sm:$0xff]  }
 0x318   :  { %9361 = vmatprep.subr.bf16.mxu0 %v10007_v7  ;;  %v10042_v7 = vld [vmem:[%s12359_s5 + $0xd40] sm:$0xff]   ;;  %v6133_v50 = vrot.slane %v6096_v48, 3  ;;  %v10080_v48 = vld [vmem:[%s12359_s5 + $0xe08] sm:$0xff]  }
 0x31a   :  { %9252 = vmatpush3.bf16.msra.mxu1 %v10008_v28  ;;  %v5735_v28 = vpack.c.bf16 %v5733_v45, %v5733_v45  ;;  %v10076_v45 = vld [vmem:[%s12359_s5 + $0xe00] sm:$0xff]  }
 0x31b   :  { %9362 = vmatpush3.bf16.msra.mxu0 %v10009_v31  ;;  %9281 = vmatprep.subr.bf16.mxu1 %v10010_v53  ;;  %v5202_v31 = vpack.c.bf16 %v5200_v46, %v5200_v46  ;;  %v4847_v53 = vpack.c.bf16 %v4845_v41, %v4845_v41  ;;  %v5560_v41 = vld [vmem:[#allocation2 + $0x78] sm:$0x3] }
 0x31c   :  { %9391 = vmatprep.subr.bf16.mxu0 %v10011_v52  ;;  %v5772_v60 = vrot.slane %v5735_v28, 1  ;;  %v10047_v52 = vld [vmem:[%s12359_s5 + $0xfc8] sm:$0xff]  }
 0x31d   :  { %4657 = vmatmul.mubr.bf16.vlgmr.msra.gmra.mrb[48].mxu1 %v4524_v61  ;;  %v10049_v61 = vld [vmem:[%s12359_s5 + $0xf88] sm:$0xff]  }
 0x31e   :  { %5551 = vmatmul.mubr.bf16.vlgmr.msra.gmra.mrb[68].mxu0 %v5418_v4  ;;  %9282 = vmatpush3.bf16.msra.mxu1 %v10012_v42  ;;  %v5239_v42 = vrot.slane %v5202_v31, 2  ;;  %v10052_v4 = vld [vmem:[%s12359_s5 + $0xd10] sm:$0xff]   ;;  %v10078_v28 = vld [vmem:[%s12359_s5 + $0xe48] sm:$0xff]  }
 0x31f   :  { %5010 = vmatprep.mubr.bf16.mxu1 %v4848_v10  ;;  %9392 = vmatpush3.bf16.msra.mxu0 %v10013_v20  ;;  %v10050_v20 = vld [vmem:[%s12359_s5 + $0xd50] sm:$0xff]   ;;  %v10055_v10 = vld [vmem:[%s12359_s5 + $0xfd8] sm:$0xff]   ;;  %v10079_v31 = vld [vmem:[%s12359_s5 + $0x10c8] sm:$0xff]  }
 0x320   :  { %5904 = vmatprep.mubr.bf16.mxu0 %v5773_v11  ;;  %9283 = vmatprep.subr.bf16.mxu1 %v10014_v56  ;;  %v10051_v56 = vld [vmem:[%s12359_s5 + $0xfd0] sm:$0xff]   ;;  %v10057_v11 = vld [vmem:[%s12359_s5 + $0xf98] sm:$0xff]  }
 0x321   :  { %9393 = vmatprep.subr.bf16.mxu0 %v10015_v16  ;;  %v10053_v16 = vld [vmem:[%s12359_s5 + $0xf90] sm:$0xff]  }
 0x322   :  { %9284 = vmatpush3.bf16.msra.mxu1 %v10016_v9  ;;  %v10054_v9 = vld [vmem:[%s12359_s5 + $0xd58] sm:$0xff]  }
 0x323   :  { %9394 = vmatpush3.bf16.msra.mxu0 %v10017_v62  ;;  %9285 = vmatprep.subr.bf16.mxu1 %v10018_v12  ;;  %v10056_v62 = vld [vmem:[%s12359_s5 + $0xd18] sm:$0xff]   ;;  %v10058_v12 = vld [vmem:[%s12359_s5 + $0xd60] sm:$0xff]  }
 0x324   :  { %9395 = vmatprep.subr.bf16.mxu0 %v10019_v14  ;;  %v10059_v14 = vld [vmem:[%s12359_s5 + $0xfe0] sm:$0xff]  }
 0x326   :  { %9286 = vmatpush3.bf16.msra.mxu1 %v10020_v15  ;;  %v10060_v15 = vld [vmem:[%s12359_s5 + $0xd20] sm:$0xff]  }
 0x327   :  { %9396 = vmatpush3.bf16.msra.mxu0 %v10021_v54  ;;  %9287 = vmatprep.subr.bf16.mxu1 %v10022_v55  ;;  %v10061_v54 = vld [vmem:[%s12359_s5 + $0xfa0] sm:$0xff]   ;;  %v10062_v55 = vld [vmem:[%s12359_s5 + $0xd68] sm:$0xff]  }
 0x328   :  { %9397 = vmatprep.subr.bf16.mxu0 %v10023_v57  ;;  %v10063_v57 = vld [vmem:[%s12359_s5 + $0xfe8] sm:$0xff]  }
 0x32a   :  { %9288 = vmatpush3.bf16.msra.mxu1 %v10024_v13  ;;  %v10064_v13 = vld [vmem:[%s12359_s5 + $0xd28] sm:$0xff]  }
 0x32b   :  { %9398 = vmatpush3.bf16.msra.mxu0 %v10025_v19  ;;  %9289 = vmatprep.subr.bf16.mxu1 %v10026_v21  ;;  %v10065_v19 = vld [vmem:[%s12359_s5 + $0xfa8] sm:$0xff]   ;;  %v10066_v21 = vld [vmem:[%s12359_s5 + $0xd70] sm:$0xff]  }
 0x32c   :  { %9399 = vmatprep.subr.bf16.mxu0 %v10027_v23 }
 0x32e   :  { %9290 = vmatpush3.bf16.msra.mxu1 %v10028_v25  ;;  %v10067_v25 = vld [vmem:[%s12359_s5 + $0xff0] sm:$0xff]  }
 0x32f   :  { %9400 = vmatpush3.bf16.msra.mxu0 %v10029_v26  ;;  %9291 = vmatprep.subr.bf16.mxu1 %v10030_v59  ;;  %v10068_v26 = vld [vmem:[%s12359_s5 + $0xd30] sm:$0xff]  }
 0x330   :  { %v8989_v30 = vpop.f32.mrb[24].mxu1  ;;  %9401 = vmatprep.subr.bf16.mxu0 %v10031_v27 }
 0x331   :  { %v9099_v22 = vpop.f32.mrb[44].mxu0  ;;  %v8990_v33 = vpop.f32.mrb[25].mxu1 }
 0x332   :  { %v8991_v63 = vadd.f32 %v8990_v33, %v8989_v30  ;;  %v9100_v35 = vpop.f32.mrb[45].mxu0  ;;  %v8992_v0 = vpop.f32.mrb[26].mxu1  ;;  %9292 = vmatpush3.bf16.msra.mxu1 %v10032_v18  ;;  %v10069_v18 = vld [vmem:[%s12359_s5 + $0xfb0] sm:$0xff]  }
 0x333   :  { %v11928_v39 = vadd.f32 %v9100_v35, %v9099_v22  ;;  %v9102_v2 = vpop.f32.mrb[46].mxu0  ;;  %9402 = vmatpush3.bf16.msra.mxu0 %v10033_v29  ;;  %v8993_v40 = vpop.f32.mrb[27].mxu1  ;;  %9293 = vmatprep.subr.bf16.mxu1 %v10034_v17  ;;  %v10070_v29 = vld [vmem:[%s12359_s5 + $0xd78] sm:$0xff]   ;;  %v5199_v22 = vld [vmem:[#allocation2 + $0x60] sm:$0x30] }
 0x334   :  { %v2522_v3 = vadd.f32 %v8991_v63, %v11836_v38  ;;  %v9103_v43 = vpop.f32.mrb[47].mxu0  ;;  %9403 = vmatprep.subr.bf16.mxu0 %v10035_v24  ;;  %v10044_v38 = vld [vmem:[%s12359_s5 + $0xd00] sm:$0xff]   ;;  %v6093_v2 = vld [vmem:[#allocation2 + $0x70] sm:$0xc0] }
 0x335   :  { %v10074_v40 = vld [vmem:[%s12359_s5 + $0xe40] sm:$0xff]   ;;  %v5201_v43 = vpack.c.bf16 %v5199_v22, %v5199_v22 }
 0x336   :  { %9294 = vmatpush3.bf16.msra.mxu1 %v10036_v32  ;;  %v11941_v58 = vadd.f32 %v11724_v37, %v2522_v3  ;;  %v10045_v37 = vld [vmem:[%s12359_s5 + $0xf80] sm:$0xff]   ;;  %v10071_v32 = vld [vmem:[%s12359_s5 + $0xff8] sm:$0xff]  }
 0x337   :  { %9404 = vmatpush3.bf16.msra.mxu0 %v10037_v34  ;;  %9295 = vmatprep.subr.bf16.mxu1 %v10038_v36  ;;  %v10072_v36 = vld [vmem:[%s12359_s5 + $0xd38] sm:$0xff]  }
 0x338   :  { %9405 = vmatprep.subr.bf16.mxu0 %v10039_v1  ;;  %v10073_v1 = vld [vmem:[%s12359_s5 + $0xfb8] sm:$0xff]  }
 0x33a   :  { %9296 = vmatpush3.bf16.msra.mxu1 %v10040_v6  ;;  %v6448_v6 = vld [vmem:[#allocation2 + $0x88] sm:$0xc] }
 0x33b   :  { %9406 = vmatpush3.bf16.msra.mxu0 %v10041_v44  ;;  %9325 = vmatprep.subr.bf16.mxu1 %v10042_v7  ;;  %v6095_v44 = vpack.c.bf16 %v6093_v2, %v6093_v2  ;;  %v10075_v7 = vld [vmem:[%s12359_s5 + $0x10c0] sm:$0xff]   ;;  %v6450_v46 = vpack.c.bf16 %v6448_v6, %v6448_v6 }
 0x33c   :  { %9435 = vmatprep.subr.bf16.mxu0 %v10043_v49  ;;  %v5562_v49 = vpack.c.bf16 %v5560_v41, %v5560_v41  ;;  %v10108_v2 = vld [vmem:[%s12359_s5 + $0xf00] sm:$0xff]  }
 0x33d   :  { %5011 = vmatmul.mubr.bf16.vlgmr.msra.gmra.mrb[52].mxu1 %v4847_v53  ;;  %v6132_v47 = vrot.slane %v6095_v44, 3  ;;  %v10081_v53 = vld [vmem:[%s12359_s5 + $0x1088] sm:$0xff]  }
 0x33e   :  { %5905 = vmatmul.mubr.bf16.vlgmr.msra.gmra.mrb[72].mxu0 %v5772_v60  ;;  %9326 = vmatpush3.bf16.msra.mxu1 %v10044_v38  ;;  %v6487_v38 = vrot.slane %v6450_v46, 1  ;;  %v10083_v60 = vld [vmem:[%s12359_s5 + $0x10d0] sm:$0xff]   ;;  %v10110_v44 = vld [vmem:[%s12359_s5 + $0xf48] sm:$0xff]  }
 0x33f   :  { %5370 = vmatprep.mubr.bf16.mxu1 %v5239_v42  ;;  %9436 = vmatpush3.bf16.msra.mxu0 %v10045_v37  ;;  %v10082_v37 = vld [vmem:[%s12359_s5 + $0xe50] sm:$0xff]   ;;  %v10086_v42 = vld [vmem:[%s12359_s5 + $0xe58] sm:$0xff]   ;;  %v10112_v46 = vld [vmem:[%s12359_s5 + $0xf08] sm:$0xff]  }
 0x340   :  { %6264 = vmatprep.mubr.bf16.mxu0 %v6133_v50  ;;  %9327 = vmatprep.subr.bf16.mxu1 %v10046_v5  ;;  %v10084_v5 = vld [vmem:[%s12359_s5 + $0xe10] sm:$0xff]   ;;  %v10088_v50 = vld [vmem:[%s12359_s5 + $0xe18] sm:$0xff]  }
 0x341   :  { %9437 = vmatprep.subr.bf16.mxu0 %v10047_v52  ;;  %v10085_v52 = vld [vmem:[%s12359_s5 + $0x1090] sm:$0xff]  }
 0x342   :  { %9328 = vmatpush3.bf16.msra.mxu1 %v10048_v51  ;;  %v10087_v51 = vld [vmem:[%s12359_s5 + $0x10d8] sm:$0xff]  }
 0x343   :  { %9438 = vmatpush3.bf16.msra.mxu0 %v10049_v61  ;;  %9329 = vmatprep.subr.bf16.mxu1 %v10050_v20  ;;  %v10089_v61 = vld [vmem:[%s12359_s5 + $0x1098] sm:$0xff]   ;;  %v10090_v20 = vld [vmem:[%s12359_s5 + $0xe60] sm:$0xff]  }
 0x344   :  { %9439 = vmatprep.subr.bf16.mxu0 %v10051_v56  ;;  %v10091_v56 = vld [vmem:[%s12359_s5 + $0x10e0] sm:$0xff]  }
 0x346   :  { %9330 = vmatpush3.bf16.msra.mxu1 %v10052_v4  ;;  %v10092_v4 = vld [vmem:[%s12359_s5 + $0xe20] sm:$0xff]  }
 0x347   :  { %9440 = vmatpush3.bf16.msra.mxu0 %v10053_v16  ;;  %9331 = vmatprep.subr.bf16.mxu1 %v10054_v9  ;;  %v10093_v16 = vld [vmem:[%s12359_s5 + $0x10a0] sm:$0xff]   ;;  %v10094_v9 = vld [vmem:[%s12359_s5 + $0xe68] sm:$0xff]  }
 0x348   :  { %9441 = vmatprep.subr.bf16.mxu0 %v10055_v10  ;;  %v10095_v10 = vld [vmem:[%s12359_s5 + $0x10e8] sm:$0xff]  }
 0x34a   :  { %9332 = vmatpush3.bf16.msra.mxu1 %v10056_v62  ;;  %v10096_v62 = vld [vmem:[%s12359_s5 + $0xe28] sm:$0xff]  }
 0x34b   :  { %9442 = vmatpush3.bf16.msra.mxu0 %v10057_v11  ;;  %9333 = vmatprep.subr.bf16.mxu1 %v10058_v12  ;;  %v10097_v11 = vld [vmem:[%s12359_s5 + $0x10a8] sm:$0xff]   ;;  %v10098_v12 = vld [vmem:[%s12359_s5 + $0xe70] sm:$0xff]  }
 0x34c   :  { %9443 = vmatprep.subr.bf16.mxu0 %v10059_v14 }
 0x34e   :  { %9334 = vmatpush3.bf16.msra.mxu1 %v10060_v15  ;;  %v10099_v15 = vld [vmem:[%s12359_s5 + $0x10f0] sm:$0xff]  }
 0x34f   :  { %9444 = vmatpush3.bf16.msra.mxu0 %v10061_v54  ;;  %9335 = vmatprep.subr.bf16.mxu1 %v10062_v55 }
 0x350   :  { %v9033_v23 = vpop.f32.mrb[28].mxu1  ;;  %9445 = vmatprep.subr.bf16.mxu0 %v10063_v57 }
 0x351   :  { %v9143_v59 = vpop.f32.mrb[48].mxu0  ;;  %v9034_v27 = vpop.f32.mrb[29].mxu1 }
 0x352   :  { %v9035_v17 = vadd.f32 %v9034_v27, %v9033_v23  ;;  %v9144_v24 = vpop.f32.mrb[49].mxu0  ;;  %v9036_v30 = vpop.f32.mrb[30].mxu1  ;;  %9336 = vmatpush3.bf16.msra.mxu1 %v10064_v13  ;;  %v10102_v27 = vld [vmem:[%s12359_s5 + $0xe78] sm:$0xff]  }
 0x353   :  { %v12030_v33 = vadd.f32 %v9144_v24, %v9143_v59  ;;  %v9146_v34 = vpop.f32.mrb[50].mxu0  ;;  %9446 = vmatpush3.bf16.msra.mxu0 %v10065_v19  ;;  %v9037_v63 = vpop.f32.mrb[31].mxu1  ;;  %9337 = vmatprep.subr.bf16.mxu1 %v10066_v21  ;;  %v10100_v21 = vld [vmem:[%s12359_s5 + $0xe30] sm:$0xff]   ;;  %v6447_v24 = vld [vmem:[#allocation2 + $0x80] sm:$0xc]  ;;  %v10104_v30 = vld [vmem:[%s12359_s5 + $0xe38] sm:$0xff]  }
 0x354   :  { %v2876_v35 = vadd.f32 %v9035_v17, %v11941_v58  ;;  %v9147_v0 = vpop.f32.mrb[51].mxu0  ;;  %9447 = vmatprep.subr.bf16.mxu0 %v10067_v25  ;;  %v10077_v58 = vld [vmem:[%s12359_s5 + $0x1080] sm:$0xff]   ;;  %v10101_v59 = vld [vmem:[%s12359_s5 + $0x10b0] sm:$0xff]   ;;  %v10103_v17 = vld [vmem:[%s12359_s5 + $0x10f8] sm:$0xff]  }
 0x355   :  { %v10105_v34 = vld [vmem:[%s12359_s5 + $0x10b8] sm:$0xff]   ;;  %v10106_v63 = vld [vmem:[%s12359_s5 + $0xf40] sm:$0xff]   ;;  %v5559_v0 = vld [vmem:[#allocation2 + $0x70] sm:$0x3] }
 0x356   :  { %9338 = vmatpush3.bf16.msra.mxu1 %v10068_v26  ;;  %v12043_v3 = vadd.f32 %v11826_v8, %v2876_v35  ;;  %v5238_v8 = vrot.slane %v5201_v43, 2  ;;  %v6808_v35 = vld [vmem:[#allocation2 + $0x88] sm:$0xc0]  ;;  %v10109_v43 = vld [vmem:[%s12359_s5 + $0x1180] sm:$0xff]  }
 0x357   :  { %9448 = vmatpush3.bf16.msra.mxu0 %v10069_v18  ;;  %9339 = vmatprep.subr.bf16.mxu1 %v10070_v29 }
 0x358   :  { %9449 = vmatprep.subr.bf16.mxu0 %v10071_v32  ;;  %v5914_v32 = vld [vmem:[#allocation2 + $0x78] sm:$0x30] }
 0x35a   :  { %9340 = vmatpush3.bf16.msra.mxu1 %v10072_v36  ;;  %v6449_v36 = vpack.c.bf16 %v6447_v24, %v6447_v24 }
 0x35b   :  { %9450 = vmatpush3.bf16.msra.mxu0 %v10073_v1  ;;  %9369 = vmatprep.subr.bf16.mxu1 %v10074_v40  ;;  %v10107_v1 = vld [vmem:[%s12359_s5 + $0x11c0] sm:$0xff]   ;;  %v6810_v40 = vpack.c.bf16 %v6808_v35, %v6808_v35  ;;  %v10141_v35 = vld [vmem:[%s12359_s5 + $0x1008] sm:$0xff]  }
 0x35c   :  { %9479 = vmatprep.subr.bf16.mxu0 %v10075_v7  ;;  %v6486_v6 = vrot.slane %v6449_v36, 1  ;;  %v10143_v36 = vld [vmem:[%s12359_s5 + $0x1010] sm:$0xff]  }
 0x35d   :  { %5371 = vmatmul.mubr.bf16.vlgmr.msra.gmra.mrb[56].mxu1 %v5238_v8  ;;  %v6847_v41 = vrot.slane %v6810_v40, 3  ;;  %v10113_v8 = vld [vmem:[%s12359_s5 + $0x1188] sm:$0xff]   ;;  %v10147_v40 = vld [vmem:[%s12359_s5 + $0x1020] sm:$0xff]  }
 0x35e   :  { %6265 = vmatmul.mubr.bf16.vlgmr.msra.gmra.mrb[76].mxu0 %v6132_v47  ;;  %9370 = vmatpush3.bf16.msra.mxu1 %v10076_v45  ;;  %v10111_v45 = vld [vmem:[%s12359_s5 + $0x11c8] sm:$0xff]   ;;  %v10115_v47 = vld [vmem:[%s12359_s5 + $0x11d0] sm:$0xff]  }
 0x35f   :  { %5724 = vmatprep.mubr.bf16.mxu1 %v5562_v49  ;;  %9480 = vmatpush3.bf16.msra.mxu0 %v10077_v58  ;;  %v10114_v58 = vld [vmem:[%s12359_s5 + $0xf50] sm:$0xff]  }
 0x360   :  { %6618 = vmatprep.mubr.bf16.mxu0 %v6487_v38  ;;  %9371 = vmatprep.subr.bf16.mxu1 %v10078_v28  ;;  %v10116_v28 = vld [vmem:[%s12359_s5 + $0xf10] sm:$0xff]   ;;  %v10119_v38 = vld [vmem:[%s12359_s5 + $0x11d8] sm:$0xff]  }
 0x361   :  { %9481 = vmatprep.subr.bf16.mxu0 %v10079_v31  ;;  %v10117_v49 = vld [vmem:[%s12359_s5 + $0x1190] sm:$0xff]   ;;  %v10118_v31 = vld [vmem:[%s12359_s5 + $0xf58] sm:$0xff]  }
 0x362   :  { %9372 = vmatpush3.bf16.msra.mxu1 %v10080_v48  ;;  %v10120_v48 = vld [vmem:[%s12359_s5 + $0xf18] sm:$0xff]  }
 0x363   :  { %9482 = vmatpush3.bf16.msra.mxu0 %v10081_v53  ;;  %9373 = vmatprep.subr.bf16.mxu1 %v10082_v37  ;;  %v10121_v53 = vld [vmem:[%s12359_s5 + $0x1198] sm:$0xff]   ;;  %v10122_v37 = vld [vmem:[%s12359_s5 + $0xf60] sm:$0xff]  }
 0x364   :  { %9483 = vmatprep.subr.bf16.mxu0 %v10083_v60  ;;  %v10123_v60 = vld [vmem:[%s12359_s5 + $0x11e0] sm:$0xff]  }
 0x366   :  { %9374 = vmatpush3.bf16.msra.mxu1 %v10084_v5  ;;  %v10124_v5 = vld [vmem:[%s12359_s5 + $0xf20] sm:$0xff]  }
 0x367   :  { %9484 = vmatpush3.bf16.msra.mxu0 %v10085_v52  ;;  %9375 = vmatprep.subr.bf16.mxu1 %v10086_v42  ;;  %v10125_v52 = vld [vmem:[%s12359_s5 + $0x11a0] sm:$0xff]   ;;  %v10126_v42 = vld [vmem:[%s12359_s5 + $0xf68] sm:$0xff]  }
 0x368   :  { %9485 = vmatprep.subr.bf16.mxu0 %v10087_v51  ;;  %v10127_v51 = vld [vmem:[%s12359_s5 + $0x11e8] sm:$0xff]  }
 0x36a   :  { %9376 = vmatpush3.bf16.msra.mxu1 %v10088_v50  ;;  %v10128_v50 = vld [vmem:[%s12359_s5 + $0xf28] sm:$0xff]  }
 0x36b   :  { %9486 = vmatpush3.bf16.msra.mxu0 %v10089_v61  ;;  %9377 = vmatprep.subr.bf16.mxu1 %v10090_v20  ;;  %v10129_v61 = vld [vmem:[%s12359_s5 + $0x11a8] sm:$0xff]   ;;  %v10130_v20 = vld [vmem:[%s12359_s5 + $0xf70] sm:$0xff]  }
 0x36c   :  { %9487 = vmatprep.subr.bf16.mxu0 %v10091_v56 }
 0x36e   :  { %9378 = vmatpush3.bf16.msra.mxu1 %v10092_v4  ;;  %v10131_v4 = vld [vmem:[%s12359_s5 + $0x11f0] sm:$0xff]  }
 0x36f   :  { %9488 = vmatpush3.bf16.msra.mxu0 %v10093_v16  ;;  %9379 = vmatprep.subr.bf16.mxu1 %v10094_v9 }
 0x370   :  { %v9077_v14 = vpop.f32.mrb[32].mxu1  ;;  %9489 = vmatprep.subr.bf16.mxu0 %v10095_v10 }
 0x371   :  { %v9187_v54 = vpop.f32.mrb[52].mxu0  ;;  %v9078_v55 = vpop.f32.mrb[33].mxu1 }
 0x372   :  { %v9079_v57 = vadd.f32 %v9078_v55, %v9077_v14  ;;  %v9188_v13 = vpop.f32.mrb[53].mxu0  ;;  %v9080_v19 = vpop.f32.mrb[34].mxu1  ;;  %9380 = vmatpush3.bf16.msra.mxu1 %v10096_v62  ;;  %v10133_v55 = vld [vmem:[%s12359_s5 + $0x11b0] sm:$0xff]  }
 0x373   :  { %v12123_v23 = vadd.f32 %v9188_v13, %v9187_v54  ;;  %v9190_v25 = vpop.f32.mrb[54].mxu0  ;;  %9490 = vmatpush3.bf16.msra.mxu0 %v10097_v11  ;;  %v9081_v26 = vpop.f32.mrb[35].mxu1  ;;  %9381 = vmatprep.subr.bf16.mxu1 %v10098_v12  ;;  %v10132_v12 = vld [vmem:[%s12359_s5 + $0xf30] sm:$0xff]  }
 0x374   :  { %v3236_v18 = vadd.f32 %v9079_v57, %v12043_v3  ;;  %v9191_v29 = vpop.f32.mrb[55].mxu0  ;;  %9491 = vmatprep.subr.bf16.mxu0 %v10099_v15  ;;  %v5561_v3 = vpack.c.bf16 %v5559_v0, %v5559_v0  ;;  %v10134_v57 = vld [vmem:[%s12359_s5 + $0xf78] sm:$0xff]   ;;  %v5913_v25 = vld [vmem:[#allocation2 + $0x70] sm:$0x30]  ;;  %v6807_v26 = vld [vmem:[#allocation2 + $0x80] sm:$0xc0] }
 0x375   :  { %v5915_v29 = vpack.c.bf16 %v5913_v25, %v5913_v25  ;;  %v6809_v24 = vpack.c.bf16 %v6807_v26, %v6807_v26  ;;  %v10142_v0 = vld [vmem:[%s12359_s5 + $0x1050] sm:$0xff]  }
 0x376   :  { %9382 = vmatpush3.bf16.msra.mxu1 %v10100_v21  ;;  %v12139_v22 = vadd.f32 %v11928_v39, %v3236_v18  ;;  %v5916_v39 = vpack.c.bf16 %v5914_v32, %v5914_v32  ;;  %v10135_v21 = vld [vmem:[%s12359_s5 + $0x11f8] sm:$0xff]   ;;  %v6274_v32 = vld [vmem:[#allocation2 + $0x88] sm:$0x3]  ;;  %v10167_v25 = vld [vmem:[%s12359_s5 + $0x1130] sm:$0xff]  }
 0x377   :  { %9492 = vmatpush3.bf16.msra.mxu0 %v10101_v59  ;;  %9383 = vmatprep.subr.bf16.mxu1 %v10102_v27  ;;  %v10136_v59 = vld [vmem:[%s12359_s5 + $0xf38] sm:$0xff]  }
 0x378   :  { %9493 = vmatprep.subr.bf16.mxu0 %v10103_v17  ;;  %v5953_v7 = vrot.slane %v5916_v39, 2  ;;  %v10137_v18 = vld [vmem:[%s12359_s5 + $0x11b8] sm:$0xff]   ;;  %v10138_v17 = vld [vmem:[%s12359_s5 + $0x1040] sm:$0xff]  }
 0x379   :  { %v10145_v39 = vld [vmem:[%s12359_s5 + $0x1018] sm:$0xff]  }
 0x37a   :  { %9384 = vmatpush3.bf16.msra.mxu1 %v10104_v30  ;;  %v10139_v30 = vld [vmem:[%s12359_s5 + $0x1000] sm:$0xff]  }
 0x37b   :  { %9494 = vmatpush3.bf16.msra.mxu0 %v10105_v34  ;;  %9413 = vmatprep.subr.bf16.mxu1 %v10106_v63  ;;  %v6846_v34 = vrot.slane %v6809_v24, 3  ;;  %v6276_v63 = vpack.c.bf16 %v6274_v32, %v6274_v32  ;;  %v6627_v24 = vld [vmem:[#allocation2 + $0x80] sm:$0x30] }
 0x37c   :  { %9523 = vmatprep.subr.bf16.mxu0 %v10107_v1  ;;  %v10144_v1 = vld [vmem:[%s12359_s5 + $0x1058] sm:$0xff]  }
 0x37d   :  { %5725 = vmatmul.mubr.bf16.vlgmr.msra.gmra.mrb[60].mxu1 %v5561_v3  ;;  %v10148_v3 = vld [vmem:[%s12359_s5 + $0x1068] sm:$0xff]  }
 0x37e   :  { %6619 = vmatmul.mubr.bf16.vlgmr.msra.gmra.mrb[80].mxu0 %v6486_v6  ;;  %9414 = vmatpush3.bf16.msra.mxu1 %v10108_v2  ;;  %v10146_v2 = vld [vmem:[%s12359_s5 + $0x1060] sm:$0xff]   ;;  %v10150_v6 = vld [vmem:[%s12359_s5 + $0x1070] sm:$0xff]  }
 0x37f   :  { %6084 = vmatprep.mubr.bf16.mxu1 %v5953_v7  ;;  %9524 = vmatpush3.bf16.msra.mxu0 %v10109_v43  ;;  %v10149_v43 = vld [vmem:[%s12359_s5 + $0x1028] sm:$0xff]  }
 0x380   :  { %6978 = vmatprep.mubr.bf16.mxu0 %v6847_v41  ;;  %9415 = vmatprep.subr.bf16.mxu1 %v10110_v44 }
 0x381   :  { %9525 = vmatprep.subr.bf16.mxu0 %v10111_v45 }
 0x382   :  { %9416 = vmatpush3.bf16.msra.mxu1 %v10112_v46 }
 0x383   :  { %9526 = vmatpush3.bf16.msra.mxu0 %v10113_v8  ;;  %9417 = vmatprep.subr.bf16.mxu1 %v10114_v58  ;;  %v10151_v58 = vld [vmem:[%s12359_s5 + $0x1030] sm:$0xff]  }
 0x384   :  { %9527 = vmatprep.subr.bf16.mxu0 %v10115_v47 }
 0x386   :  { %9418 = vmatpush3.bf16.msra.mxu1 %v10116_v28 }
 0x387   :  { %9528 = vmatpush3.bf16.msra.mxu0 %v10117_v49  ;;  %9419 = vmatprep.subr.bf16.mxu1 %v10118_v31  ;;  %v10152_v31 = vld [vmem:[%s12359_s5 + $0x1078] sm:$0xff]  }
 0x388   :  { %9529 = vmatprep.subr.bf16.mxu0 %v10119_v38 }
 0x38a   :  { %9420 = vmatpush3.bf16.msra.mxu1 %v10120_v48 }
 0x38b   :  { %9530 = vmatpush3.bf16.msra.mxu0 %v10121_v53  ;;  %9421 = vmatprep.subr.bf16.mxu1 %v10122_v37  ;;  %v6628_v53 = vld [vmem:[#allocation2 + $0x88] sm:$0x30]  ;;  %v10153_v37 = vld [vmem:[%s12359_s5 + $0x1038] sm:$0xff]  }
 0x38c   :  { %9531 = vmatprep.subr.bf16.mxu0 %v10123_v60 }
 0x38e   :  { %9422 = vmatpush3.bf16.msra.mxu1 %v10124_v5  ;;  %v10154_v5 = vld [vmem:[%s12359_s5 + $0x1140] sm:$0xff]  }
 0x38f   :  { %9532 = vmatpush3.bf16.msra.mxu0 %v10125_v52  ;;  %9423 = vmatprep.subr.bf16.mxu1 %v10126_v42  ;;  %v6273_v52 = vld [vmem:[#allocation2 + $0x80] sm:$0x3]  ;;  %v6630_v42 = vpack.c.bf16 %v6628_v53, %v6628_v53 }
 0x390   :  { %v9121_v56 = vpop.f32.mrb[36].mxu1  ;;  %9533 = vmatprep.subr.bf16.mxu0 %v10127_v51  ;;  %v10155_v51 = vld [vmem:[%s12359_s5 + $0x1100] sm:$0xff]  }
 0x391   :  { %v9231_v16 = vpop.f32.mrb[56].mxu0  ;;  %v9122_v9 = vpop.f32.mrb[37].mxu1 }
 0x392   :  { %v9123_v10 = vadd.f32 %v9122_v9, %v9121_v56  ;;  %v9232_v62 = vpop.f32.mrb[57].mxu0  ;;  %v9124_v11 = vpop.f32.mrb[38].mxu1  ;;  %9424 = vmatpush3.bf16.msra.mxu1 %v10128_v50  ;;  %v6275_v50 = vpack.c.bf16 %v6273_v52, %v6273_v52  ;;  %v10158_v56 = vld [vmem:[%s12359_s5 + $0x1150] sm:$0xff]   ;;  %v10161_v9 = vld [vmem:[%s12359_s5 + $0x1118] sm:$0xff]  }
 0x393   :  { %v12225_v14 = vadd.f32 %v9232_v62, %v9231_v16  ;;  %v9234_v15 = vpop.f32.mrb[58].mxu0  ;;  %9534 = vmatpush3.bf16.msra.mxu0 %v10129_v61  ;;  %v9125_v54 = vpop.f32.mrb[39].mxu1  ;;  %9425 = vmatprep.subr.bf16.mxu1 %v10130_v20  ;;  %v10156_v61 = vld [vmem:[%s12359_s5 + $0x1148] sm:$0xff]   ;;  %v6667_v20 = vrot.slane %v6630_v42, 2  ;;  %v10160_v16 = vld [vmem:[%s12359_s5 + $0x1158] sm:$0xff]   ;;  %v10163_v62 = vld [vmem:[%s12359_s5 + $0x1120] sm:$0xff]  }
 0x394   :  { %v3590_v13 = vadd.f32 %v9123_v10, %v12139_v22  ;;  %v9235_v19 = vpop.f32.mrb[59].mxu0  ;;  %9535 = vmatprep.subr.bf16.mxu0 %v10131_v4  ;;  %v10140_v22 = vld [vmem:[%s12359_s5 + $0x1048] sm:$0xff]   ;;  %v10159_v4 = vld [vmem:[%s12359_s5 + $0x1110] sm:$0xff]   ;;  %v10162_v10 = vld [vmem:[%s12359_s5 + $0x1160] sm:$0xff]  }
 0x395   :  { %v10164_v11 = vld [vmem:[%s12359_s5 + $0x1168] sm:$0xff]   ;;  %v10166_v15 = vld [vmem:[%s12359_s5 + $0x1170] sm:$0xff]  }
 0x396   :  { %9426 = vmatpush3.bf16.msra.mxu1 %v10132_v12  ;;  %v3770_v27 = vadd.f32 %v12030_v33, %v3590_v13  ;;  %v5952_v33 = vrot.slane %v5915_v29, 2  ;;  %v10165_v12 = vld [vmem:[%s12359_s5 + $0x1128] sm:$0xff]  }
 0x397   :  { %9536 = vmatpush3.bf16.msra.mxu0 %v10133_v55  ;;  %9427 = vmatprep.subr.bf16.mxu1 %v10134_v57 }
 0x398   :  { %9537 = vmatprep.subr.bf16.mxu0 %v10135_v21 }
 0x39a   :  { %9428 = vmatpush3.bf16.msra.mxu1 %v10136_v59 }
 0x39b   :  { %9538 = vmatpush3.bf16.msra.mxu0 %v10137_v18  ;;  %9457 = vmatprep.subr.bf16.mxu1 %v10138_v17  ;;  %v10168_v18 = vld [vmem:[%s12359_s5 + $0x1178] sm:$0xff]  }
 0x39d   :  { %6085 = vmatmul.mubr.bf16.vlgmr.msra.gmra.mrb[64].mxu1 %v5952_v33  ;;  %v6629_v33 = vpack.c.bf16 %v6627_v24, %v6627_v24 }
 0x39e   :  { %6979 = vmatmul.mubr.bf16.vlgmr.msra.gmra.mrb[84].mxu0 %v6846_v34  ;;  %9458 = vmatpush3.bf16.msra.mxu1 %v10139_v30  ;;  %v10169_v30 = vld [vmem:[%s12359_s5 + $0x1138] sm:$0xff]  }
 0x39f   :  { %6438 = vmatprep.mubr.bf16.mxu1 %v6276_v63  ;;  %9459 = vmatprep.subr.bf16.mxu1 %v10140_v22  ;;  %v6666_v22 = vrot.slane %v6629_v33, 2 }
 0x3a2   :  { %9460 = vmatpush3.bf16.msra.mxu1 %v10141_v35 }
 0x3a3   :  { %9461 = vmatprep.subr.bf16.mxu1 %v10142_v0 }
 0x3a6   :  { %9462 = vmatpush3.bf16.msra.mxu1 %v10143_v36 }
 0x3a7   :  { %9463 = vmatprep.subr.bf16.mxu1 %v10144_v1 }
 0x3aa   :  { %9464 = vmatpush3.bf16.msra.mxu1 %v10145_v39 }
 0x3ab   :  { %9465 = vmatprep.subr.bf16.mxu1 %v10146_v2 }
 0x3ae   :  { %9466 = vmatpush3.bf16.msra.mxu1 %v10147_v40 }
 0x3af   :  { %9467 = vmatprep.subr.bf16.mxu1 %v10148_v3 }
 0x3b0   :  { %v9165_v44 = vpop.f32.mrb[40].mxu1 }
 0x3b1   :  { %v9275_v7 = vpop.f32.mrb[60].mxu0  ;;  %v9166_v45 = vpop.f32.mrb[41].mxu1 }
 0x3b2   :  { %v9167_v41 = vadd.f32 %v9166_v45, %v9165_v44  ;;  %v9276_v46 = vpop.f32.mrb[61].mxu0  ;;  %v9168_v8 = vpop.f32.mrb[42].mxu1  ;;  %9468 = vmatpush3.bf16.msra.mxu1 %v10149_v43 }
 0x3b3   :  { %v12286_v47 = vadd.f32 %v9276_v46, %v9275_v7  ;;  %v9278_v28 = vpop.f32.mrb[62].mxu0  ;;  %v9169_v49 = vpop.f32.mrb[43].mxu1  ;;  %9469 = vmatprep.subr.bf16.mxu1 %v10150_v6 }
 0x3b4   :  { %v3950_v38 = vadd.f32 %v9167_v41, %v3770_v27  ;;  %v9279_v48 = vpop.f32.mrb[63].mxu0 }
 0x3b6   :  { %9470 = vmatpush3.bf16.msra.mxu1 %v10151_v58  ;;  %v4130_v60 = vadd.f32 %v12123_v23, %v3950_v38  ;;  %v10157_v23 = vld [vmem:[%s12359_s5 + $0x1108] sm:$0xff]  }
 0x3b7   :  { %9471 = vmatprep.subr.bf16.mxu1 %v10152_v31 }
 0x3ba   :  { %9472 = vmatpush3.bf16.msra.mxu1 %v10153_v37 }
 0x3bb   :  { %9501 = vmatprep.subr.bf16.mxu1 %v10154_v5 }
 0x3bd   :  { %6439 = vmatmul.mubr.bf16.vlgmr.msra.gmra.mrb[68].mxu1 %v6275_v50 }
 0x3be   :  { %9502 = vmatpush3.bf16.msra.mxu1 %v10155_v51  ;;  %6798 = vmatprep.mubr.bf16.mxu1 %v6667_v20 }
 0x3bf   :  { %9503 = vmatprep.subr.bf16.mxu1 %v10156_v61 }
 0x3c2   :  { %9504 = vmatpush3.bf16.msra.mxu1 %v10157_v23  ;;  %v14_v23 = vstv %s12363_s8 }
 0x3c3   :  { %9505 = vmatprep.subr.bf16.mxu1 %v10158_v56  ;;  %15 = vst [vmem:[#allocation3] sm:$0x1] %v14_v23 }
 0x3c6   :  { %9506 = vmatpush3.bf16.msra.mxu1 %v10159_v4 }
 0x3c7   :  { %9507 = vmatprep.subr.bf16.mxu1 %v10160_v16 }
 0x3ca   :  { %9508 = vmatpush3.bf16.msra.mxu1 %v10161_v9 }
 0x3cb   :  { %9509 = vmatprep.subr.bf16.mxu1 %v10162_v10 }
 0x3ce   :  { %9510 = vmatpush3.bf16.msra.mxu1 %v10163_v62 }
 0x3cf   :  { %9511 = vmatprep.subr.bf16.mxu1 %v10164_v11 }
 0x3d0   :  { %v9209_v54 = vpop.f32.mrb[44].mxu1 }
 0x3d1   :  { %v9319_v55 = vpop.f32.mrb[64].mxu0  ;;  %v9210_v57 = vpop.f32.mrb[45].mxu1 }
 0x3d2   :  { %v9211_v13 = vadd.f32 %v9210_v57, %v9209_v54  ;;  %v9320_v19 = vpop.f32.mrb[65].mxu0  ;;  %v9212_v21 = vpop.f32.mrb[46].mxu1  ;;  %9512 = vmatpush3.bf16.msra.mxu1 %v10165_v12 }
 0x3d3   :  { %v9321_v26 = vadd.f32 %v9320_v19, %v9319_v55  ;;  %v9322_v59 = vpop.f32.mrb[66].mxu0  ;;  %v9213_v27 = vpop.f32.mrb[47].mxu1  ;;  %9513 = vmatprep.subr.bf16.mxu1 %v10166_v15 }
 0x3d4   :  { %v4304_v29 = vadd.f32 %v9211_v13, %v4130_v60  ;;  %v9323_v17 = vpop.f32.mrb[67].mxu0 }
 0x3d6   :  { %9514 = vmatpush3.bf16.msra.mxu1 %v10167_v25  ;;  %v4484_v32 = vadd.f32 %v12225_v14, %v4304_v29 }
 0x3d7   :  { %9515 = vmatprep.subr.bf16.mxu1 %v10168_v18 }
 0x3da   :  { %9516 = vmatpush3.bf16.msra.mxu1 %v10169_v30 }
 0x3dd   :  { %6799 = vmatmul.mubr.bf16.vlgmr.msra.gmra.mrb[72].mxu1 %v6666_v22 }
 0x3f0   :  { %v9253_v34 = vpop.f32.mrb[48].mxu1 }
 0x3f1   :  { %v9363_v63 = vpop.f32.mrb[68].mxu0  ;;  %v9254_v35 = vpop.f32.mrb[49].mxu1 }
 0x3f2   :  { %v9255_v0 = vadd.f32 %v9254_v35, %v9253_v34  ;;  %v9364_v36 = vpop.f32.mrb[69].mxu0  ;;  %v9256_v1 = vpop.f32.mrb[50].mxu1 }
 0x3f3   :  { %v9365_v39 = vadd.f32 %v9364_v36, %v9363_v63  ;;  %v9366_v2 = vpop.f32.mrb[70].mxu0  ;;  %v9257_v40 = vpop.f32.mrb[51].mxu1 }
 0x3f4   :  { %v4664_v3 = vadd.f32 %v9255_v0, %v4484_v32  ;;  %v9367_v43 = vpop.f32.mrb[71].mxu0 }
 0x3f5   :  { %v8750_v43 = vld [vmem:[%s12364_s6] ss:$0 sm:$0xff] }
 0x3f6   :  { %v4844_v6 = vadd.f32 %v12286_v47, %v4664_v3 }
 0x410   :  { %v9297_v44 = vpop.f32.mrb[52].mxu1 }
 0x411   :  { %v9407_v14 = vpop.f32.mrb[72].mxu0  ;;  %v9298_v7 = vpop.f32.mrb[53].mxu1 }
 0x412   :  { %v9299_v45 = vadd.f32 %v9298_v7, %v9297_v44  ;;  %v9408_v41 = vpop.f32.mrb[73].mxu0  ;;  %v9300_v46 = vpop.f32.mrb[54].mxu1 }
 0x413   :  { %v9409_v8 = vadd.f32 %v9408_v41, %v9407_v14  ;;  %v9410_v58 = vpop.f32.mrb[74].mxu0  ;;  %v9301_v28 = vpop.f32.mrb[55].mxu1  ;;  %v8751_v14 = vld [vmem:[%s12365_s7] ss:$0 sm:$0xff]  ;;  %v8752_v46 = vld [vmem:[#allocation3] ss:$0 sm:$0xff] }
 0x414   :  { %v5018_v49 = vadd.f32 %v9299_v45, %v4844_v6  ;;  %v9411_v31 = vpop.f32.mrb[75].mxu0 }
 0x416   :  { %v5198_v38 = vadd.f32 %v9321_v26, %v5018_v49 }
 0x430   :  { %v9341_v48 = vpop.f32.mrb[56].mxu1 }
 0x431   :  { %v9451_v53 = vpop.f32.mrb[76].mxu0  ;;  %v9342_v37 = vpop.f32.mrb[57].mxu1 }
 0x432   :  { %v9343_v60 = vadd.f32 %v9342_v37, %v9341_v48  ;;  %v9452_v5 = vpop.f32.mrb[77].mxu0  ;;  %v9344_v52 = vpop.f32.mrb[58].mxu1 }
 0x433   :  { %v9453_v42 = vadd.f32 %v9452_v5, %v9451_v53  ;;  %v9454_v47 = vpop.f32.mrb[78].mxu0  ;;  %v9345_v51 = vpop.f32.mrb[59].mxu1 }
 0x434   :  { %v5378_v50 = vadd.f32 %v9343_v60, %v5198_v38  ;;  %v9455_v61 = vpop.f32.mrb[79].mxu0 }
 0x436   :  { %v5558_v20 = vadd.f32 %v9365_v39, %v5378_v50 }
 0x450   :  { %v9385_v56 = vpop.f32.mrb[60].mxu1 }
 0x451   :  { %v9495_v4 = vpop.f32.mrb[80].mxu0  ;;  %v9386_v16 = vpop.f32.mrb[61].mxu1 }
 0x452   :  { %v9387_v9 = vadd.f32 %v9386_v16, %v9385_v56  ;;  %v9496_v10 = vpop.f32.mrb[81].mxu0  ;;  %v9388_v62 = vpop.f32.mrb[62].mxu1 }
 0x453   :  { %v9497_v11 = vadd.f32 %v9496_v10, %v9495_v4  ;;  %v9498_v12 = vpop.f32.mrb[82].mxu0  ;;  %v9389_v15 = vpop.f32.mrb[63].mxu1 }
 0x454   :  { %v5732_v54 = vadd.f32 %v9387_v9, %v5558_v20  ;;  %v9499_v55 = vpop.f32.mrb[83].mxu0 }
 0x456   :  { %v5912_v57 = vadd.f32 %v9409_v8, %v5732_v54 }
 0x470   :  { %v9429_v13 = vpop.f32.mrb[64].mxu1 }
 0x471   :  { %v9539_v19 = vpop.f32.mrb[84].mxu0  ;;  %v9430_v21 = vpop.f32.mrb[65].mxu1 }
 0x472   :  { %v9431_v25 = vadd.f32 %v9430_v21, %v9429_v13  ;;  %v9540_v26 = vpop.f32.mrb[85].mxu0  ;;  %v9432_v59 = vpop.f32.mrb[66].mxu1 }
 0x473   :  { %v9541_v27 = vadd.f32 %v9540_v26, %v9539_v19  ;;  %v9542_v18 = vpop.f32.mrb[86].mxu0  ;;  %v9433_v29 = vpop.f32.mrb[67].mxu1 }
 0x474   :  { %v6092_v17 = vadd.f32 %v9431_v25, %v5912_v57  ;;  %v9543_v24 = vpop.f32.mrb[87].mxu0 }
 0x476   :  { %v6272_v30 = vadd.f32 %v9453_v42, %v6092_v17 }
 0x490   :  { %v9473_v32 = vpop.f32.mrb[68].mxu1 }
 0x491   :  { %v9474_v33 = vpop.f32.mrb[69].mxu1 }
 0x492   :  { %v9475_v22 = vadd.f32 %v9474_v33, %v9473_v32  ;;  %v9476_v34 = vpop.f32.mrb[70].mxu1 }
 0x493   :  { %v9477_v63 = vpop.f32.mrb[71].mxu1 }
 0x494   :  { %v6446_v35 = vadd.f32 %v9475_v22, %v6272_v30 }
 0x496   :  { %v6626_v0 = vadd.f32 %v9497_v11, %v6446_v35 }
 0x4b0   :  { %v9517_v36 = vpop.f32.mrb[72].mxu1 }
 0x4b1   :  { %v9518_v1 = vpop.f32.mrb[73].mxu1 }
 0x4b2   :  { %v9519_v39 = vadd.f32 %v9518_v1, %v9517_v36  ;;  %v9520_v2 = vpop.f32.mrb[74].mxu1 }
 0x4b3   :  { %v9521_v40 = vpop.f32.mrb[75].mxu1 }
 0x4b4   :  { %v6806_v3 = vadd.f32 %v9519_v39, %v6626_v0 }
 0x4b6   :  { %v6986_v6 = vadd.f32 %v9541_v27, %v6806_v3 }
 0x4b8   :  { %v6994_v44 = vadd.f32 %v8750_v43, %v6986_v6 }
 0x4ba   :  { %v6995_v7 = vmax.f32 %v6994_v44, 0.0 }
 0x4bc   :  { %v7003_v45 = vmul.f32 %v8751_v14, %v6995_v7 }
 0x4be   :  { %v7005_v41 = vsel %vm7004_vm0, %v7003_v45, 0.0 }
 0x4bf   :  { %7006 = vadd.xlane.f32.xlu0 %v7005_v41 }
 0x54c   :  { %v7007_v8 = vpop.xlane.xlu0 %7006 }
 0x54d   :  { %v7015_v58 = vadd.f32 %v8752_v46, %v7007_v8 }
 0x54f   :  { %7017 = vst.msk [vmem:[%s12366_s9] sm:$0x3] %vm7016_vm1, %v7015_v58 }

</bundles_post_ra>
